<compile_context>
chip_gen: v7x
topology: tpu7x:2x2x1
jax: 0.10.0
libtpu: 0.0.40
codegen_flags: <defaults>
</compile_context>

<pallas_src>
import math
import jax
import jax.numpy as jnp
from jax.experimental import pallas as pl
from jax.experimental.pallas import tpu as pltpu

LOGTWOPI = math.log(2.0 * math.pi)

# ---- module hyper-parameters (small demo sizes) ----
DIM = 8
S_EMB_DIM = 32
HIDDEN_DIM = 32
HARMONICS_DIM = 8
T_DIM = 16
COND_DIM = 784           # fixed by GFN.__init__ (StateEncodingVAE(dim, 784, ...))
LOG_VAR_RANGE = 4.0
T_SCALE = 1.0
PF_STD_PER_TRAJ = math.sqrt(T_SCALE)
TRAJ_LEN = 8
BATCH = 4
BB = 8                   # batch rows per grid step (sublane tile)

N_KERNEL_WEIGHTS = 16    # weights actually used inside the kernel (post-hoisting)

# lane indices in the packed per-step coefficient array (T, Bp, 8)
C_DTS, C_SQRT_DTS, C_LOG_DTS, C_COEF_B, C_INV_STD_B, C_LOG_VAR_B = range(6)


def _gelu(x):
    # tanh-approx GELU -> lowers to the EUP slot instead of an erf VALU polynomial.
    # TODO(synk): reference sub-nets may use exact-erf torch.nn.GELU(); small drift.
    return jax.nn.gelu(x, approximate=True)


def gfn_traj_kernel(*refs):
    """Whole-trajectory GFN.get_trajectory_fwd (default flags, condition path)."""
    s0_ref, condc_ref, tj_ref, noise_ref, coefs_ref = refs[:5]
    (ws1_ref, sw2_ref, sb2_ref, sw3_ref, sb3_ref,
     wja_ref, jw2_ref, jb2_ref, jw3_ref, jb3_ref,
     fw1_ref, fb1_ref, fw2_ref, fb2_ref, fw3_ref, fb3_ref) = refs[5:5 + N_KERNEL_WEIGHTS]
    (states_ref, logpf_ref, logpb_ref, logf_ref,
     semb_ref, pfv_ref) = refs[5 + N_KERNEL_WEIGHTS:]

    bf16 = jnp.bfloat16
    n_steps = noise_ref.shape[0]
    bb = noise_ref.shape[1]
    log_pf_std2 = 2.0 * math.log(PF_STD_PER_TRAJ)

    cond_c = condc_ref[...]                  # (BB, H) f32: cond @ W_c + b0, hoisted
    s = s0_ref[...]                          # (BB, DIM) f32 running state (carried value)

    # ---------------- sequential trajectory: only the s-carry chain --------------
    # Weights are re-read from VMEM inside the body instead of being preloaded
    # across the unrolled loop (no ~50-vreg live range -> no spills on the chain).
    for i in range(n_steps):
        c = coefs_ref[i]                     # (BB, 8): dts, sqrt_dts, ... (single vld)
        dts = c[:, C_DTS:C_DTS + 1]
        sqrt_dts = c[:, C_SQRT_DTS:C_SQRT_DTS + 1]
        eps = noise_ref[i]                   # (BB, DIM) f32  ~ N(0, 1)
        tj = tj_ref[i]                       # (BB, H)  f32  = t_emb @ Wjt + b1 (hoisted)

        # s_model (condition matmul hoisted; only s @ W_s per step)
        h = _gelu(jnp.dot(s.astype(bf16), ws1_ref[...],
                          preferred_element_type=jnp.float32) + cond_c)
        h = _gelu(jnp.dot(h.astype(bf16), sw2_ref[...],
                          preferred_element_type=jnp.float32) + sb2_ref[...])
        s_emb = _gelu(jnp.dot(h.astype(bf16), sw3_ref[...],
                              preferred_element_type=jnp.float32) + sb3_ref[...])

        # joint policy; final (H, 2*DIM) matmul kept merged, lane-split afterwards
        j = _gelu(jnp.dot(s_emb.astype(bf16), wja_ref[...],
                          preferred_element_type=jnp.float32) + tj)
        j = _gelu(jnp.dot(j.astype(bf16), jw2_ref[...],
                          preferred_element_type=jnp.float32) + jb2_ref[...])
        pf = jnp.dot(j.astype(bf16), jw3_ref[...],
                     preferred_element_type=jnp.float32) + jb3_ref[...]   # (BB, 2*DIM)
        pf_mean = pf[:, :DIM]
        pflogvars = jnp.tanh(pf[:, DIM:]) * LOG_VAR_RANGE + log_pf_std2

        # Euler-Maruyama step.  exploration_std is None -> sample std equals the
        # policy std, so the reconstructed forward noise equals eps exactly.
        s_new = s + dts * pf_mean + sqrt_dts * jnp.exp(0.5 * pflogvars) * eps

        states_ref[i] = s_new                # stashes for the post-loop batched work
        semb_ref[i] = s_emb
        pfv_ref[i] = pflogvars
        s = s_new

    # ------------- everything off the carry chain, batched over T steps ----------
    cf = coefs_ref[...]                      # (T, BB, 8)
    pfv_all = pfv_ref[...]                   # (T, BB, DIM)
    eps_all = noise_ref[...]                 # (T, BB, DIM)
    logpf_ref[...] = -0.5 * jnp.sum(
        eps_all * eps_all + LOGTWOPI + cf[:, :, C_LOG_DTS:C_LOG_DTS + 1] + pfv_all,
        axis=-1, keepdims=True)

    # backward transition (learn_pb=False -> corrections == 1); i==0 row is zero
    # exactly as in torch (loop body skipped), so no log(0)/rsqrt(0) is ever used.
    logpb_ref[0] = jnp.zeros((bb, 1), jnp.float32)
    if n_steps > 1:
        st = states_ref[...]                 # (T, BB, DIM)
        s_new_t, s_prev_t = st[1:], st[:-1]
        cft = cf[1:]
        back_mean = s_new_t - s_new_t * cft[:, :, C_COEF_B:C_COEF_B + 1]
        noise_bw = (s_prev_t - back_mean) * cft[:, :, C_INV_STD_B:C_INV_STD_B + 1]
        logpb_ref[pl.ds(1, n_steps - 1)] = -0.5 * jnp.sum(
            noise_bw * noise_bw + LOGTWOPI + cft[:, :, C_LOG_VAR_B:C_LOG_VAR_B + 1],
            axis=-1, keepdims=True)

    # flow MLP on all T*BB stashed state embeddings at once (T*BB sublanes occupancy)
    se = semb_ref[...].reshape(n_steps * bb, S_EMB_DIM).astype(bf16)
    f = _gelu(jnp.dot(se, fw1_ref[...],
                      preferred_element_type=jnp.float32) + fb1_ref[...])
    f = _gelu(jnp.dot(f.astype(bf16), fw2_ref[...],
                      preferred_element_type=jnp.float32) + fb2_ref[...])
    flow = jnp.dot(f.astype(bf16), fw3_ref[...],
                   preferred_element_type=jnp.float32) + fb3_ref[...]     # (T*BB, 1)
    logf_ref[...] = flow.reshape(n_steps, bb, 1)


# ----------------------------- parameters ---------------------------------

def _init_linear(key, fan_in, fan_out):
    k1, k2 = jax.random.split(key)
    bound = 1.0 / math.sqrt(fan_in)
    w = jax.random.uniform(k1, (fan_in, fan_out), jnp.float32, -bound, bound)
    b = jax.random.uniform(k2, (1, fan_out), jnp.float32, -bound, bound)
    return w, b


def init_params(key):
    keys = iter(jax.random.split(key, 16))
    params = []
    # t_model
    params += list(_init_linear(next(keys), 2 * HARMONICS_DIM, HIDDEN_DIM))
    params += list(_init_linear(next(keys), HIDDEN_DIM, T_DIM))
    # s_model
    params += list(_init_linear(next(keys), DIM + COND_DIM, HIDDEN_DIM))
    params += list(_init_linear(next(keys), HIDDEN_DIM, HIDDEN_DIM))
    params += list(_init_linear(next(keys), HIDDEN_DIM, S_EMB_DIM))
    # joint_model
    params += list(_init_linear(next(keys), S_EMB_DIM + T_DIM, HIDDEN_DIM))
    params += list(_init_linear(next(keys), HIDDEN_DIM, HIDDEN_DIM))
    params += list(_init_linear(next(keys), HIDDEN_DIM, 2 * DIM))
    # flow_model
    params += list(_init_linear(next(keys), S_EMB_DIM, HIDDEN_DIM))
    params += list(_init_linear(next(keys), HIDDEN_DIM, HIDDEN_DIM))
    params += list(_init_linear(next(keys), HIDDEN_DIM, 1))
    return params


# ------------------------------ wrapper ------------------------------------

def _pad_rows(x, axis, target, mode="constant"):
    pad = target - x.shape[axis]
    if pad <= 0:
        return x
    widths = [(0, 0)] * x.ndim
    widths[axis] = (0, pad)
    return jnp.pad(x, widths, mode=mode)


@jax.jit
def gfn_trajectory_fwd(s0, condition, ts, noise, params):
    """Pallas port of GFN.get_trajectory_fwd (default flags, condition path)."""
    bsz, dim = s0.shape
    traj_len = ts.shape[1] - 1
    b_pad = pl.cdiv(bsz, BB) * BB                # sublane-aligned, BB-blockable batch
    bf = lambda w: w.astype(jnp.bfloat16)        # MXU operands in bf16, accum f32

    (tw1, tb1, tw2, tb2,
     sw1, sb1, sw2, sb2, sw3, sb3,
     jw1, jb1, jw2, jb2, jw3, jb3,
     fw1, fb1, fw2, fb2, fw3, fb3) = params

    # ---- glue precompute (state-independent -> off the sequential critical path)
    s0_p = _pad_rows(s0.astype(jnp.float32), 0, b_pad)
    cond_p = _pad_rows(condition.astype(jnp.float32), 0, b_pad)
    ts_p = _pad_rows(ts.astype(jnp.float32), 0, b_pad, mode="edge")  # keep ts monotone
    noise_p = _pad_rows(noise.astype(jnp.float32), 1, b_pad)

    t_cur = ts_p[:, :-1]                          # (Bp, T)
    t_next = ts_p[:, 1:]
    dts = t_next - t_cur

    # t_model (harmonics + 2-layer GELU MLP) for every step at once, plus the
    # joint-layer-1 time contribution t_emb @ Wjt + b1 (all state-independent)
    pe = jnp.arange(1, HARMONICS_DIM + 1, dtype=jnp.float32) * 2.0 * math.pi
    ang = t_cur[:, :, None] * pe                                  # (Bp, T, HARM)
    t_feat = jnp.concatenate([jnp.sin(ang), jnp.cos(ang)], axis=-1)
    t_emb = _gelu(_gelu(t_feat @ tw1 + tb1) @ tw2 + tb2)          # (Bp, T, T_DIM)
    tj = t_emb @ jw1[S_EMB_DIM:] + jb1                            # (Bp, T, H)
    tj = jnp.transpose(tj, (1, 0, 2))                             # (T, Bp, H)

    # condition contribution of s_model layer 1 (the 784-wide matmul), once
    cond_contrib = cond_p @ sw1[dim:] + sb1                       # (Bp, H)

    # per-step ts-only coefficients, packed lane-wise (T, Bp, 8); column i==0 of the
    # backward-variance terms is never read (kernel zeroes logpb[0]) but is kept safe.
    coef_back = dts / t_next
    back_var = (PF_STD_PER_TRAJ ** 2) * dts * t_cur / t_next
    back_var_safe = back_var.at[:, 0].set(1.0)
    zeros = jnp.zeros_like(dts)
    coefs = jnp.stack([dts, jnp.sqrt(dts), jnp.log(dts), coef_back,
                       jax.lax.rsqrt(back_var_safe), jnp.log(back_var_safe),
                       zeros, zeros], axis=-1)                    # (Bp, T, 8)
    coefs = jnp.transpose(coefs, (1, 0, 2))                       # (T, Bp, 8)

    kernel_weights = [bf(sw1[:dim]), bf(sw2), sb2, bf(sw3), sb3,
                      bf(jw1[:S_EMB_DIM]), bf(jw2), jb2, bf(jw3), jb3,
                      bf(fw1), fb1, bf(fw2), fb2, bf(fw3), fb3]
    assert len(kernel_weights) == N_KERNEL_WEIGHTS

    bmap2 = lambda b: (b, 0)
    bmap3 = lambda b: (0, b, 0)
    wmap = lambda b: (0, 0)

    in_specs = ([pl.BlockSpec((BB, dim), bmap2),                   # s0
                 pl.BlockSpec((BB, HIDDEN_DIM), bmap2),            # cond contribution
                 pl.BlockSpec((traj_len, BB, HIDDEN_DIM), bmap3),  # time contribution
                 pl.BlockSpec((traj_len, BB, dim), bmap3),         # noise
                 pl.BlockSpec((traj_len, BB, 8), bmap3)]           # packed coefficients
                + [pl.BlockSpec(w.shape, wmap) for w in kernel_weights])
    out_specs = [pl.BlockSpec((traj_len, BB, dim), bmap3),         # states
                 pl.BlockSpec((traj_len, BB, 1), bmap3),           # logpf
                 pl.BlockSpec((traj_len, BB, 1), bmap3),           # logpb
                 pl.BlockSpec((traj_len, BB, 1), bmap3)]           # logf (flow)

    # TODO(synk): for production batches (B >= 128) switch to a batch-on-lanes
    # layout (activations (feature, B), pre-transposed weights) and consider
    # explicit MXU staging (pltpu.matmul_push_rhs) since weights are reused T times.
    states_t, logpf_t, logpb_t, logf_t = pl.pallas_call(
        gfn_traj_kernel,
        out_shape=(jax.ShapeDtypeStruct((traj_len, b_pad, dim), jnp.float32),
                   jax.ShapeDtypeStruct((traj_len, b_pad, 1), jnp.float32),
                   jax.ShapeDtypeStruct((traj_len, b_pad, 1), jnp.float32),
                   jax.ShapeDtypeStruct((traj_len, b_pad, 1), jnp.float32)),
        grid_spec=pltpu.PrefetchScalarGridSpec(
            num_scalar_prefetch=0,
            grid=(b_pad // BB,),                 # batch blocks; megacore-parallel on v7x
            in_specs=in_specs,
            out_specs=out_specs,
            scratch_shapes=[pltpu.VMEM((traj_len, BB, S_EMB_DIM), jnp.float32),
                            pltpu.VMEM((traj_len, BB, dim), jnp.float32)]),
        compiler_params=pltpu.CompilerParams(dimension_semantics=("parallel",)),
    )(s0_p, cond_contrib, tj, noise_p, coefs, *kernel_weights)

    # reassemble into the PyTorch output layout (drop batch padding).
    # NOTE: torch leaves states[:, 0] at its zero init even though integration
    # starts from the passed s0 -- reproduced here on purpose.
    states_t = states_t[:, :bsz]
    states = jnp.concatenate(
        [jnp.zeros((bsz, 1, dim), jnp.float32),
         jnp.transpose(states_t, (1, 0, 2))], axis=1)                   # (B, T+1, DIM)
    logpf = jnp.transpose(logpf_t[:, :bsz, 0])                          # (B, T)
    logpb = jnp.transpose(logpb_t[:, :bsz, 0])                          # (B, T)
    logf = jnp.concatenate([jnp.transpose(logf_t[:, :bsz, 0]),
                            jnp.zeros((bsz, 1), jnp.float32)], axis=1)  # (B, T+1)
    return states, logpf, logpb, logf


if __name__ == "__main__":
    key = jax.random.PRNGKey(0)
    k_p, k_s, k_c, k_n = jax.random.split(key, 4)

    params = init_params(k_p)
    s0 = jax.random.normal(k_s, (BATCH, DIM), jnp.float32)
    condition = jax.random.normal(k_c, (BATCH, COND_DIM), jnp.float32)
    # torch.randn_like noise, precomputed deterministically (T, B, DIM)
    noise = jax.random.normal(k_n, (TRAJ_LEN, BATCH, DIM), jnp.float32)
    # uniform discretizer: ts[b, j] = j / T  -> shape (B, T+1), strictly increasing
    ts = jnp.tile(jnp.linspace(0.0, 1.0, TRAJ_LEN + 1, dtype=jnp.float32)[None, :],
                  (BATCH, 1))

    outs = jax.block_until_ready(
        gfn_trajectory_fwd(s0, condition, ts, noise, params))
    states, logpf, logpb, logf = outs

    assert states.shape == (BATCH, TRAJ_LEN + 1, DIM)
    assert logpf.shape == (BATCH, TRAJ_LEN)
    assert logpb.shape == (BATCH, TRAJ_LEN)
    assert logf.shape == (BATCH, TRAJ_LEN + 1)
    assert bool(jnp.all(logpb[:, 0] == 0.0))            # i==0 backward term skipped
    assert bool(jnp.all(states[:, 0] == 0.0))           # torch leaves states[:, 0] zero
    ok = all(bool(jnp.all(jnp.isfinite(o))) for o in (states, logpf, logpb, logf))
    # TODO(synk): langevin (autograd grad of log_r), learn_pb back_model, and
    # partial_energy log_r terms are dead branches under the default flags and
    # are not implemented in the kernel.
    if ok:
        print("KERNEL_OK")
</pallas_src>

<mosaic_0001>
module attributes {stable_mosaic.version = 11 : i64} {
  func.func @gfn_traj_kernel(%arg0: i32, %arg1: memref<8x8xf32, #tpu.memory_space<vmem>>, %arg2: memref<8x32xf32, #tpu.memory_space<vmem>>, %arg3: memref<8x8x32xf32, #tpu.memory_space<vmem>>, %arg4: memref<8x8x8xf32, #tpu.memory_space<vmem>>, %arg5: memref<8x8x8xf32, #tpu.memory_space<vmem>>, %arg6: memref<8x32xbf16, #tpu.memory_space<vmem>>, %arg7: memref<32x32xbf16, #tpu.memory_space<vmem>>, %arg8: memref<1x32xf32, #tpu.memory_space<vmem>>, %arg9: memref<32x32xbf16, #tpu.memory_space<vmem>>, %arg10: memref<1x32xf32, #tpu.memory_space<vmem>>, %arg11: memref<32x32xbf16, #tpu.memory_space<vmem>>, %arg12: memref<32x32xbf16, #tpu.memory_space<vmem>>, %arg13: memref<1x32xf32, #tpu.memory_space<vmem>>, %arg14: memref<32x16xbf16, #tpu.memory_space<vmem>>, %arg15: memref<1x16xf32, #tpu.memory_space<vmem>>, %arg16: memref<32x32xbf16, #tpu.memory_space<vmem>>, %arg17: memref<1x32xf32, #tpu.memory_space<vmem>>, %arg18: memref<32x32xbf16, #tpu.memory_space<vmem>>, %arg19: memref<1x32xf32, #tpu.memory_space<vmem>>, %arg20: memref<32x1xbf16, #tpu.memory_space<vmem>>, %arg21: memref<1x1xf32, #tpu.memory_space<vmem>>, %arg22: memref<8x8x8xf32, #tpu.memory_space<vmem>>, %arg23: memref<8x8x1xf32, #tpu.memory_space<vmem>>, %arg24: memref<8x8x1xf32, #tpu.memory_space<vmem>>, %arg25: memref<8x8x1xf32, #tpu.memory_space<vmem>>, %arg26: memref<8x8x32xf32, #tpu.memory_space<vmem>>, %arg27: memref<8x8x8xf32, #tpu.memory_space<vmem>>) attributes {dimension_semantics = [#tpu.dimension_semantics<parallel>], iteration_bounds = array<i64: 1>, scalar_prefetch = 0 : i64, scratch_operands = 2 : i64, tpu.core_type = #tpu.core_type<tc>, window_params = [{transform_indices = @transform_0, window_bounds = array<i64: 8, 8>}, {transform_indices = @transform_1, window_bounds = array<i64: 8, 32>}, {transform_indices = @transform_2, window_bounds = array<i64: 8, 8, 32>}, {transform_indices = @transform_3, window_bounds = array<i64: 8, 8, 8>}, {transform_indices = @transform_4, window_bounds = array<i64: 8, 8, 8>}, {pipeline_mode = #tpu.pipeline_mode<synchronous>, transform_indices = @transform_5, window_bounds = array<i64: 8, 32>}, {pipeline_mode = #tpu.pipeline_mode<synchronous>, transform_indices = @transform_6, window_bounds = array<i64: 32, 32>}, {pipeline_mode = #tpu.pipeline_mode<synchronous>, transform_indices = @transform_7, window_bounds = array<i64: 1, 32>}, {pipeline_mode = #tpu.pipeline_mode<synchronous>, transform_indices = @transform_8, window_bounds = array<i64: 32, 32>}, {pipeline_mode = #tpu.pipeline_mode<synchronous>, transform_indices = @transform_9, window_bounds = array<i64: 1, 32>}, {pipeline_mode = #tpu.pipeline_mode<synchronous>, transform_indices = @transform_10, window_bounds = array<i64: 32, 32>}, {pipeline_mode = #tpu.pipeline_mode<synchronous>, transform_indices = @transform_11, window_bounds = array<i64: 32, 32>}, {pipeline_mode = #tpu.pipeline_mode<synchronous>, transform_indices = @transform_12, window_bounds = array<i64: 1, 32>}, {pipeline_mode = #tpu.pipeline_mode<synchronous>, transform_indices = @transform_13, window_bounds = array<i64: 32, 16>}, {pipeline_mode = #tpu.pipeline_mode<synchronous>, transform_indices = @transform_14, window_bounds = array<i64: 1, 16>}, {pipeline_mode = #tpu.pipeline_mode<synchronous>, transform_indices = @transform_15, window_bounds = array<i64: 32, 32>}, {pipeline_mode = #tpu.pipeline_mode<synchronous>, transform_indices = @transform_16, window_bounds = array<i64: 1, 32>}, {pipeline_mode = #tpu.pipeline_mode<synchronous>, transform_indices = @transform_17, window_bounds = array<i64: 32, 32>}, {pipeline_mode = #tpu.pipeline_mode<synchronous>, transform_indices = @transform_18, window_bounds = array<i64: 1, 32>}, {pipeline_mode = #tpu.pipeline_mode<synchronous>, transform_indices = @transform_19, window_bounds = array<i64: 32, 1>}, {pipeline_mode = #tpu.pipeline_mode<synchronous>, transform_indices = @transform_20, window_bounds = array<i64: 1, 1>}, {transform_indices = @transform_21, window_bounds = array<i64: 8, 8, 8>}, {transform_indices = @transform_22, window_bounds = array<i64: 8, 8, 1>}, {transform_indices = @transform_23, window_bounds = array<i64: 8, 8, 1>}, {transform_indices = @transform_24, window_bounds = array<i64: 8, 8, 1>}]} {
    %c0 = arith.constant 0 : index
    %c0_0 = arith.constant 0 : index
    %0 = vector.load %arg2[%c0, %c0_0] : memref<8x32xf32, #tpu.memory_space<vmem>>, vector<8x32xf32>
    %c0_1 = arith.constant 0 : index
    %c0_2 = arith.constant 0 : index
    %1 = vector.load %arg1[%c0_1, %c0_2] : memref<8x8xf32, #tpu.memory_space<vmem>>, vector<8x8xf32>
    %c0_3 = arith.constant 0 : index
    %c0_4 = arith.constant 0 : index
    %c0_5 = arith.constant 0 : index
    %2 = vector.load %arg5[%c0_3, %c0_4, %c0_5] : memref<8x8x8xf32, #tpu.memory_space<vmem>>, vector<1x8x8xf32>
    %3 = vector.shape_cast %2 : vector<1x8x8xf32> to vector<8x8xf32>
    %4 = vector.extract_strided_slice %3 {offsets = [0, 0], sizes = [8, 1], strides = [1, 1]} : vector<8x8xf32> to vector<8x1xf32>
    %5 = vector.extract_strided_slice %3 {offsets = [0, 1], sizes = [8, 1], strides = [1, 1]} : vector<8x8xf32> to vector<8x1xf32>
    %c0_6 = arith.constant 0 : index
    %c0_7 = arith.constant 0 : index
    %c0_8 = arith.constant 0 : index
    %6 = vector.load %arg4[%c0_6, %c0_7, %c0_8] : memref<8x8x8xf32, #tpu.memory_space<vmem>>, vector<1x8x8xf32>
    %7 = vector.shape_cast %6 : vector<1x8x8xf32> to vector<8x8xf32>
    %c0_9 = arith.constant 0 : index
    %c0_10 = arith.constant 0 : index
    %c0_11 = arith.constant 0 : index
    %8 = vector.load %arg3[%c0_9, %c0_10, %c0_11] : memref<8x8x32xf32, #tpu.memory_space<vmem>>, vector<1x8x32xf32>
    %9 = vector.shape_cast %8 : vector<1x8x32xf32> to vector<8x32xf32>
    %10 = arith.truncf %1 : vector<8x8xf32> to vector<8x8xbf16>
    %c0_12 = arith.constant 0 : index
    %c0_13 = arith.constant 0 : index
    %11 = vector.load %arg6[%c0_12, %c0_13] : memref<8x32xbf16, #tpu.memory_space<vmem>>, vector<8x32xbf16>
    %cst = arith.constant dense<0.000000e+00> : vector<8x32xf32>
    %12 = tpu.matmul %10, %11, %cst {dimension_numbers = #tpu.dot_dimension_numbers<[1], [0], [0], [1], [0, 0, 1, 1], [], []>} : vector<8x8xbf16>, vector<8x32xbf16>, vector<8x32xf32> -> vector<8x32xf32>
    %13 = arith.addf %12, %0 : vector<8x32xf32>
    %14 = arith.mulf %13, %13 : vector<8x32xf32>
    %15 = arith.mulf %13, %14 : vector<8x32xf32>
    %cst_14 = arith.constant 4.471500e-02 : f32
    %16 = vector.broadcast %cst_14 : f32 to vector<8x32xf32>
    %17 = arith.mulf %16, %15 : vector<8x32xf32>
    %18 = arith.addf %13, %17 : vector<8x32xf32>
    %cst_15 = arith.constant 0.797884583 : f32
    %19 = vector.broadcast %cst_15 : f32 to vector<8x32xf32>
    %20 = arith.mulf %19, %18 : vector<8x32xf32>
    %21 = math.tanh %20 : vector<8x32xf32>
    %cst_16 = arith.constant 1.000000e+00 : f32
    %22 = vector.broadcast %cst_16 : f32 to vector<8x32xf32>
    %23 = arith.addf %22, %21 : vector<8x32xf32>
    %cst_17 = arith.constant 5.000000e-01 : f32
    %24 = vector.broadcast %cst_17 : f32 to vector<8x32xf32>
    %25 = arith.mulf %24, %23 : vector<8x32xf32>
    %26 = arith.mulf %13, %25 : vector<8x32xf32>
    %27 = arith.truncf %26 : vector<8x32xf32> to vector<8x32xbf16>
    %c0_18 = arith.constant 0 : index
    %c0_19 = arith.constant 0 : index
    %28 = vector.load %arg7[%c0_18, %c0_19] : memref<32x32xbf16, #tpu.memory_space<vmem>>, vector<32x32xbf16>
    %cst_20 = arith.constant dense<0.000000e+00> : vector<8x32xf32>
    %29 = tpu.matmul %27, %28, %cst_20 {dimension_numbers = #tpu.dot_dimension_numbers<[1], [0], [0], [1], [0, 0, 1, 1], [], []>} : vector<8x32xbf16>, vector<32x32xbf16>, vector<8x32xf32> -> vector<8x32xf32>
    %c0_21 = arith.constant 0 : index
    %c0_22 = arith.constant 0 : index
    %30 = vector.load %arg8[%c0_21, %c0_22] : memref<1x32xf32, #tpu.memory_space<vmem>>, vector<1x32xf32>
    %31 = vector.broadcast %30 : vector<1x32xf32> to vector<8x32xf32>
    %32 = arith.addf %29, %31 : vector<8x32xf32>
    %33 = arith.mulf %32, %32 : vector<8x32xf32>
    %34 = arith.mulf %32, %33 : vector<8x32xf32>
    %cst_23 = arith.constant 4.471500e-02 : f32
    %35 = vector.broadcast %cst_23 : f32 to vector<8x32xf32>
    %36 = arith.mulf %35, %34 : vector<8x32xf32>
    %37 = arith.addf %32, %36 : vector<8x32xf32>
    %cst_24 = arith.constant 0.797884583 : f32
    %38 = vector.broadcast %cst_24 : f32 to vector<8x32xf32>
    %39 = arith.mulf %38, %37 : vector<8x32xf32>
    %40 = math.tanh %39 : vector<8x32xf32>
    %cst_25 = arith.constant 1.000000e+00 : f32
    %41 = vector.broadcast %cst_25 : f32 to vector<8x32xf32>
    %42 = arith.addf %41, %40 : vector<8x32xf32>
    %cst_26 = arith.constant 5.000000e-01 : f32
    %43 = vector.broadcast %cst_26 : f32 to vector<8x32xf32>
    %44 = arith.mulf %43, %42 : vector<8x32xf32>
    %45 = arith.mulf %32, %44 : vector<8x32xf32>
    %46 = arith.truncf %45 : vector<8x32xf32> to vector<8x32xbf16>
    %c0_27 = arith.constant 0 : index
    %c0_28 = arith.constant 0 : index
    %47 = vector.load %arg9[%c0_27, %c0_28] : memref<32x32xbf16, #tpu.memory_space<vmem>>, vector<32x32xbf16>
    %cst_29 = arith.constant dense<0.000000e+00> : vector<8x32xf32>
    %48 = tpu.matmul %46, %47, %cst_29 {dimension_numbers = #tpu.dot_dimension_numbers<[1], [0], [0], [1], [0, 0, 1, 1], [], []>} : vector<8x32xbf16>, vector<32x32xbf16>, vector<8x32xf32> -> vector<8x32xf32>
    %c0_30 = arith.constant 0 : index
    %c0_31 = arith.constant 0 : index
    %49 = vector.load %arg10[%c0_30, %c0_31] : memref<1x32xf32, #tpu.memory_space<vmem>>, vector<1x32xf32>
    %50 = vector.broadcast %49 : vector<1x32xf32> to vector<8x32xf32>
    %51 = arith.addf %48, %50 : vector<8x32xf32>
    %52 = arith.mulf %51, %51 : vector<8x32xf32>
    %53 = arith.mulf %51, %52 : vector<8x32xf32>
    %cst_32 = arith.constant 4.471500e-02 : f32
    %54 = vector.broadcast %cst_32 : f32 to vector<8x32xf32>
    %55 = arith.mulf %54, %53 : vector<8x32xf32>
    %56 = arith.addf %51, %55 : vector<8x32xf32>
    %cst_33 = arith.constant 0.797884583 : f32
    %57 = vector.broadcast %cst_33 : f32 to vector<8x32xf32>
    %58 = arith.mulf %57, %56 : vector<8x32xf32>
    %59 = math.tanh %58 : vector<8x32xf32>
    %cst_34 = arith.constant 1.000000e+00 : f32
    %60 = vector.broadcast %cst_34 : f32 to vector<8x32xf32>
    %61 = arith.addf %60, %59 : vector<8x32xf32>
    %cst_35 = arith.constant 5.000000e-01 : f32
    %62 = vector.broadcast %cst_35 : f32 to vector<8x32xf32>
    %63 = arith.mulf %62, %61 : vector<8x32xf32>
    %64 = arith.mulf %51, %63 : vector<8x32xf32>
    %65 = arith.truncf %64 : vector<8x32xf32> to vector<8x32xbf16>
    %c0_36 = arith.constant 0 : index
    %c0_37 = arith.constant 0 : index
    %66 = vector.load %arg11[%c0_36, %c0_37] : memref<32x32xbf16, #tpu.memory_space<vmem>>, vector<32x32xbf16>
    %cst_38 = arith.constant dense<0.000000e+00> : vector<8x32xf32>
    %67 = tpu.matmul %65, %66, %cst_38 {dimension_numbers = #tpu.dot_dimension_numbers<[1], [0], [0], [1], [0, 0, 1, 1], [], []>} : vector<8x32xbf16>, vector<32x32xbf16>, vector<8x32xf32> -> vector<8x32xf32>
    %68 = arith.addf %67, %9 : vector<8x32xf32>
    %69 = arith.mulf %68, %68 : vector<8x32xf32>
    %70 = arith.mulf %68, %69 : vector<8x32xf32>
    %cst_39 = arith.constant 4.471500e-02 : f32
    %71 = vector.broadcast %cst_39 : f32 to vector<8x32xf32>
    %72 = arith.mulf %71, %70 : vector<8x32xf32>
    %73 = arith.addf %68, %72 : vector<8x32xf32>
    %cst_40 = arith.constant 0.797884583 : f32
    %74 = vector.broadcast %cst_40 : f32 to vector<8x32xf32>
    %75 = arith.mulf %74, %73 : vector<8x32xf32>
    %76 = math.tanh %75 : vector<8x32xf32>
    %cst_41 = arith.constant 1.000000e+00 : f32
    %77 = vector.broadcast %cst_41 : f32 to vector<8x32xf32>
    %78 = arith.addf %77, %76 : vector<8x32xf32>
    %cst_42 = arith.constant 5.000000e-01 : f32
    %79 = vector.broadcast %cst_42 : f32 to vector<8x32xf32>
    %80 = arith.mulf %79, %78 : vector<8x32xf32>
    %81 = arith.mulf %68, %80 : vector<8x32xf32>
    %82 = arith.truncf %81 : vector<8x32xf32> to vector<8x32xbf16>
    %c0_43 = arith.constant 0 : index
    %c0_44 = arith.constant 0 : index
    %83 = vector.load %arg12[%c0_43, %c0_44] : memref<32x32xbf16, #tpu.memory_space<vmem>>, vector<32x32xbf16>
    %cst_45 = arith.constant dense<0.000000e+00> : vector<8x32xf32>
    %84 = tpu.matmul %82, %83, %cst_45 {dimension_numbers = #tpu.dot_dimension_numbers<[1], [0], [0], [1], [0, 0, 1, 1], [], []>} : vector<8x32xbf16>, vector<32x32xbf16>, vector<8x32xf32> -> vector<8x32xf32>
    %c0_46 = arith.constant 0 : index
    %c0_47 = arith.constant 0 : index
    %85 = vector.load %arg13[%c0_46, %c0_47] : memref<1x32xf32, #tpu.memory_space<vmem>>, vector<1x32xf32>
    %86 = vector.broadcast %85 : vector<1x32xf32> to vector<8x32xf32>
    %87 = arith.addf %84, %86 : vector<8x32xf32>
    %88 = arith.mulf %87, %87 : vector<8x32xf32>
    %89 = arith.mulf %87, %88 : vector<8x32xf32>
    %cst_48 = arith.constant 4.471500e-02 : f32
    %90 = vector.broadcast %cst_48 : f32 to vector<8x32xf32>
    %91 = arith.mulf %90, %89 : vector<8x32xf32>
    %92 = arith.addf %87, %91 : vector<8x32xf32>
    %cst_49 = arith.constant 0.797884583 : f32
    %93 = vector.broadcast %cst_49 : f32 to vector<8x32xf32>
    %94 = arith.mulf %93, %92 : vector<8x32xf32>
    %95 = math.tanh %94 : vector<8x32xf32>
    %cst_50 = arith.constant 1.000000e+00 : f32
    %96 = vector.broadcast %cst_50 : f32 to vector<8x32xf32>
    %97 = arith.addf %96, %95 : vector<8x32xf32>
    %cst_51 = arith.constant 5.000000e-01 : f32
    %98 = vector.broadcast %cst_51 : f32 to vector<8x32xf32>
    %99 = arith.mulf %98, %97 : vector<8x32xf32>
    %100 = arith.mulf %87, %99 : vector<8x32xf32>
    %101 = arith.truncf %100 : vector<8x32xf32> to vector<8x32xbf16>
    %c0_52 = arith.constant 0 : index
    %c0_53 = arith.constant 0 : index
    %102 = vector.load %arg14[%c0_52, %c0_53] : memref<32x16xbf16, #tpu.memory_space<vmem>>, vector<32x16xbf16>
    %cst_54 = arith.constant dense<0.000000e+00> : vector<8x16xf32>
    %103 = tpu.matmul %101, %102, %cst_54 {dimension_numbers = #tpu.dot_dimension_numbers<[1], [0], [0], [1], [0, 0, 1, 1], [], []>} : vector<8x32xbf16>, vector<32x16xbf16>, vector<8x16xf32> -> vector<8x16xf32>
    %c0_55 = arith.constant 0 : index
    %c0_56 = arith.constant 0 : index
    %104 = vector.load %arg15[%c0_55, %c0_56] : memref<1x16xf32, #tpu.memory_space<vmem>>, vector<1x16xf32>
    %105 = vector.broadcast %104 : vector<1x16xf32> to vector<8x16xf32>
    %106 = arith.addf %103, %105 : vector<8x16xf32>
    %107 = vector.extract_strided_slice %106 {offsets = [0, 0], sizes = [8, 8], strides = [1, 1]} : vector<8x16xf32> to vector<8x8xf32>
    %108 = vector.extract_strided_slice %106 {offsets = [0, 8], sizes = [8, 8], strides = [1, 1]} : vector<8x16xf32> to vector<8x8xf32>
    %109 = math.tanh %108 : vector<8x8xf32>
    %cst_57 = arith.constant 4.000000e+00 : f32
    %110 = vector.broadcast %cst_57 : f32 to vector<8x8xf32>
    %111 = arith.mulf %109, %110 : vector<8x8xf32>
    %cst_58 = arith.constant 0.000000e+00 : f32
    %112 = vector.broadcast %cst_58 : f32 to vector<8x8xf32>
    %113 = arith.addf %111, %112 : vector<8x8xf32>
    %114 = vector.broadcast %4 : vector<8x1xf32> to vector<8x8xf32>
    %115 = arith.mulf %114, %107 : vector<8x8xf32>
    %116 = arith.addf %1, %115 : vector<8x8xf32>
    %cst_59 = arith.constant 5.000000e-01 : f32
    %117 = vector.broadcast %cst_59 : f32 to vector<8x8xf32>
    %118 = arith.mulf %117, %113 : vector<8x8xf32>
    %119 = math.exp %118 : vector<8x8xf32>
    %120 = vector.broadcast %5 : vector<8x1xf32> to vector<8x8xf32>
    %121 = arith.mulf %120, %119 : vector<8x8xf32>
    %122 = arith.mulf %121, %7 : vector<8x8xf32>
    %123 = arith.addf %116, %122 : vector<8x8xf32>
    %c0_60 = arith.constant 0 : index
    %c0_61 = arith.constant 0 : index
    %c0_62 = arith.constant 0 : index
    %124 = vector.load %arg22[%c0_60, %c0_61, %c0_62] : memref<8x8x8xf32, #tpu.memory_space<vmem>>, vector<1x8x8xf32>
    %125 = vector.shape_cast %124 : vector<1x8x8xf32> to vector<8x8xf32>
    %126 = vector.shape_cast %123 : vector<8x8xf32> to vector<1x8x8xf32>
    tpu.vector_store %arg22[%c0_60, %c0_61, %c0_62], %126 {strides = array<i32>} : memref<8x8x8xf32, #tpu.memory_space<vmem>>, vector<1x8x8xf32>,
    %c0_63 = arith.constant 0 : index
    %c0_64 = arith.constant 0 : index
    %c0_65 = arith.constant 0 : index
    %127 = vector.load %arg26[%c0_63, %c0_64, %c0_65] : memref<8x8x32xf32, #tpu.memory_space<vmem>>, vector<1x8x32xf32>
    %128 = vector.shape_cast %127 : vector<1x8x32xf32> to vector<8x32xf32>
    %129 = vector.shape_cast %64 : vector<8x32xf32> to vector<1x8x32xf32>
    tpu.vector_store %arg26[%c0_63, %c0_64, %c0_65], %129 {strides = array<i32>} : memref<8x8x32xf32, #tpu.memory_space<vmem>>, vector<1x8x32xf32>,
    %c0_66 = arith.constant 0 : index
    %c0_67 = arith.constant 0 : index
    %c0_68 = arith.constant 0 : index
    %130 = vector.load %arg27[%c0_66, %c0_67, %c0_68] : memref<8x8x8xf32, #tpu.memory_space<vmem>>, vector<1x8x8xf32>
    %131 = vector.shape_cast %130 : vector<1x8x8xf32> to vector<8x8xf32>
    %132 = vector.shape_cast %113 : vector<8x8xf32> to vector<1x8x8xf32>
    tpu.vector_store %arg27[%c0_66, %c0_67, %c0_68], %132 {strides = array<i32>} : memref<8x8x8xf32, #tpu.memory_space<vmem>>, vector<1x8x8xf32>,
    %c1 = arith.constant 1 : index
    %c0_69 = arith.constant 0 : index
    %c0_70 = arith.constant 0 : index
    %133 = vector.load %arg5[%c1, %c0_69, %c0_70] : memref<8x8x8xf32, #tpu.memory_space<vmem>>, vector<1x8x8xf32>
    %134 = vector.shape_cast %133 : vector<1x8x8xf32> to vector<8x8xf32>
    %135 = vector.extract_strided_slice %134 {offsets = [0, 0], sizes = [8, 1], strides = [1, 1]} : vector<8x8xf32> to vector<8x1xf32>
    %136 = vector.extract_strided_slice %134 {offsets = [0, 1], sizes = [8, 1], strides = [1, 1]} : vector<8x8xf32> to vector<8x1xf32>
    %c1_71 = arith.constant 1 : index
    %c0_72 = arith.constant 0 : index
    %c0_73 = arith.constant 0 : index
    %137 = vector.load %arg4[%c1_71, %c0_72, %c0_73] : memref<8x8x8xf32, #tpu.memory_space<vmem>>, vector<1x8x8xf32>
    %138 = vector.shape_cast %137 : vector<1x8x8xf32> to vector<8x8xf32>
    %c1_74 = arith.constant 1 : index
    %c0_75 = arith.constant 0 : index
    %c0_76 = arith.constant 0 : index
    %139 = vector.load %arg3[%c1_74, %c0_75, %c0_76] : memref<8x8x32xf32, #tpu.memory_space<vmem>>, vector<1x8x32xf32>
    %140 = vector.shape_cast %139 : vector<1x8x32xf32> to vector<8x32xf32>
    %141 = arith.truncf %123 : vector<8x8xf32> to vector<8x8xbf16>
    %c0_77 = arith.constant 0 : index
    %c0_78 = arith.constant 0 : index
    %142 = vector.load %arg6[%c0_77, %c0_78] : memref<8x32xbf16, #tpu.memory_space<vmem>>, vector<8x32xbf16>
    %cst_79 = arith.constant dense<0.000000e+00> : vector<8x32xf32>
    %143 = tpu.matmul %141, %142, %cst_79 {dimension_numbers = #tpu.dot_dimension_numbers<[1], [0], [0], [1], [0, 0, 1, 1], [], []>} : vector<8x8xbf16>, vector<8x32xbf16>, vector<8x32xf32> -> vector<8x32xf32>
    %144 = arith.addf %143, %0 : vector<8x32xf32>
    %145 = arith.mulf %144, %144 : vector<8x32xf32>
    %146 = arith.mulf %144, %145 : vector<8x32xf32>
    %cst_80 = arith.constant 4.471500e-02 : f32
    %147 = vector.broadcast %cst_80 : f32 to vector<8x32xf32>
    %148 = arith.mulf %147, %146 : vector<8x32xf32>
    %149 = arith.addf %144, %148 : vector<8x32xf32>
    %cst_81 = arith.constant 0.797884583 : f32
    %150 = vector.broadcast %cst_81 : f32 to vector<8x32xf32>
    %151 = arith.mulf %150, %149 : vector<8x32xf32>
    %152 = math.tanh %151 : vector<8x32xf32>
    %cst_82 = arith.constant 1.000000e+00 : f32
    %153 = vector.broadcast %cst_82 : f32 to vector<8x32xf32>
    %154 = arith.addf %153, %152 : vector<8x32xf32>
    %cst_83 = arith.constant 5.000000e-01 : f32
    %155 = vector.broadcast %cst_83 : f32 to vector<8x32xf32>
    %156 = arith.mulf %155, %154 : vector<8x32xf32>
    %157 = arith.mulf %144, %156 : vector<8x32xf32>
    %158 = arith.truncf %157 : vector<8x32xf32> to vector<8x32xbf16>
    %c0_84 = arith.constant 0 : index
    %c0_85 = arith.constant 0 : index
    %159 = vector.load %arg7[%c0_84, %c0_85] : memref<32x32xbf16, #tpu.memory_space<vmem>>, vector<32x32xbf16>
    %cst_86 = arith.constant dense<0.000000e+00> : vector<8x32xf32>
    %160 = tpu.matmul %158, %159, %cst_86 {dimension_numbers = #tpu.dot_dimension_numbers<[1], [0], [0], [1], [0, 0, 1, 1], [], []>} : vector<8x32xbf16>, vector<32x32xbf16>, vector<8x32xf32> -> vector<8x32xf32>
    %c0_87 = arith.constant 0 : index
    %c0_88 = arith.constant 0 : index
    %161 = vector.load %arg8[%c0_87, %c0_88] : memref<1x32xf32, #tpu.memory_space<vmem>>, vector<1x32xf32>
    %162 = vector.broadcast %161 : vector<1x32xf32> to vector<8x32xf32>
    %163 = arith.addf %160, %162 : vector<8x32xf32>
    %164 = arith.mulf %163, %163 : vector<8x32xf32>
    %165 = arith.mulf %163, %164 : vector<8x32xf32>
    %cst_89 = arith.constant 4.471500e-02 : f32
    %166 = vector.broadcast %cst_89 : f32 to vector<8x32xf32>
    %167 = arith.mulf %166, %165 : vector<8x32xf32>
    %168 = arith.addf %163, %167 : vector<8x32xf32>
    %cst_90 = arith.constant 0.797884583 : f32
    %169 = vector.broadcast %cst_90 : f32 to vector<8x32xf32>
    %170 = arith.mulf %169, %168 : vector<8x32xf32>
    %171 = math.tanh %170 : vector<8x32xf32>
    %cst_91 = arith.constant 1.000000e+00 : f32
    %172 = vector.broadcast %cst_91 : f32 to vector<8x32xf32>
    %173 = arith.addf %172, %171 : vector<8x32xf32>
    %cst_92 = arith.constant 5.000000e-01 : f32
    %174 = vector.broadcast %cst_92 : f32 to vector<8x32xf32>
    %175 = arith.mulf %174, %173 : vector<8x32xf32>
    %176 = arith.mulf %163, %175 : vector<8x32xf32>
    %177 = arith.truncf %176 : vector<8x32xf32> to vector<8x32xbf16>
    %c0_93 = arith.constant 0 : index
    %c0_94 = arith.constant 0 : index
    %178 = vector.load %arg9[%c0_93, %c0_94] : memref<32x32xbf16, #tpu.memory_space<vmem>>, vector<32x32xbf16>
    %cst_95 = arith.constant dense<0.000000e+00> : vector<8x32xf32>
    %179 = tpu.matmul %177, %178, %cst_95 {dimension_numbers = #tpu.dot_dimension_numbers<[1], [0], [0], [1], [0, 0, 1, 1], [], []>} : vector<8x32xbf16>, vector<32x32xbf16>, vector<8x32xf32> -> vector<8x32xf32>
    %c0_96 = arith.constant 0 : index
    %c0_97 = arith.constant 0 : index
    %180 = vector.load %arg10[%c0_96, %c0_97] : memref<1x32xf32, #tpu.memory_space<vmem>>, vector<1x32xf32>
    %181 = vector.broadcast %180 : vector<1x32xf32> to vector<8x32xf32>
    %182 = arith.addf %179, %181 : vector<8x32xf32>
    %183 = arith.mulf %182, %182 : vector<8x32xf32>
    %184 = arith.mulf %182, %183 : vector<8x32xf32>
    %cst_98 = arith.constant 4.471500e-02 : f32
    %185 = vector.broadcast %cst_98 : f32 to vector<8x32xf32>
    %186 = arith.mulf %185, %184 : vector<8x32xf32>
    %187 = arith.addf %182, %186 : vector<8x32xf32>
    %cst_99 = arith.constant 0.797884583 : f32
    %188 = vector.broadcast %cst_99 : f32 to vector<8x32xf32>
    %189 = arith.mulf %188, %187 : vector<8x32xf32>
    %190 = math.tanh %189 : vector<8x32xf32>
    %cst_100 = arith.constant 1.000000e+00 : f32
    %191 = vector.broadcast %cst_100 : f32 to vector<8x32xf32>
    %192 = arith.addf %191, %190 : vector<8x32xf32>
    %cst_101 = arith.constant 5.000000e-01 : f32
    %193 = vector.broadcast %cst_101 : f32 to vector<8x32xf32>
    %194 = arith.mulf %193, %192 : vector<8x32xf32>
    %195 = arith.mulf %182, %194 : vector<8x32xf32>
    %196 = arith.truncf %195 : vector<8x32xf32> to vector<8x32xbf16>
    %c0_102 = arith.constant 0 : index
    %c0_103 = arith.constant 0 : index
    %197 = vector.load %arg11[%c0_102, %c0_103] : memref<32x32xbf16, #tpu.memory_space<vmem>>, vector<32x32xbf16>
    %cst_104 = arith.constant dense<0.000000e+00> : vector<8x32xf32>
    %198 = tpu.matmul %196, %197, %cst_104 {dimension_numbers = #tpu.dot_dimension_numbers<[1], [0], [0], [1], [0, 0, 1, 1], [], []>} : vector<8x32xbf16>, vector<32x32xbf16>, vector<8x32xf32> -> vector<8x32xf32>
    %199 = arith.addf %198, %140 : vector<8x32xf32>
    %200 = arith.mulf %199, %199 : vector<8x32xf32>
    %201 = arith.mulf %199, %200 : vector<8x32xf32>
    %cst_105 = arith.constant 4.471500e-02 : f32
    %202 = vector.broadcast %cst_105 : f32 to vector<8x32xf32>
    %203 = arith.mulf %202, %201 : vector<8x32xf32>
    %204 = arith.addf %199, %203 : vector<8x32xf32>
    %cst_106 = arith.constant 0.797884583 : f32
    %205 = vector.broadcast %cst_106 : f32 to vector<8x32xf32>
    %206 = arith.mulf %205, %204 : vector<8x32xf32>
    %207 = math.tanh %206 : vector<8x32xf32>
    %cst_107 = arith.constant 1.000000e+00 : f32
    %208 = vector.broadcast %cst_107 : f32 to vector<8x32xf32>
    %209 = arith.addf %208, %207 : vector<8x32xf32>
    %cst_108 = arith.constant 5.000000e-01 : f32
    %210 = vector.broadcast %cst_108 : f32 to vector<8x32xf32>
    %211 = arith.mulf %210, %209 : vector<8x32xf32>
    %212 = arith.mulf %199, %211 : vector<8x32xf32>
    %213 = arith.truncf %212 : vector<8x32xf32> to vector<8x32xbf16>
    %c0_109 = arith.constant 0 : index
    %c0_110 = arith.constant 0 : index
    %214 = vector.load %arg12[%c0_109, %c0_110] : memref<32x32xbf16, #tpu.memory_space<vmem>>, vector<32x32xbf16>
    %cst_111 = arith.constant dense<0.000000e+00> : vector<8x32xf32>
    %215 = tpu.matmul %213, %214, %cst_111 {dimension_numbers = #tpu.dot_dimension_numbers<[1], [0], [0], [1], [0, 0, 1, 1], [], []>} : vector<8x32xbf16>, vector<32x32xbf16>, vector<8x32xf32> -> vector<8x32xf32>
    %c0_112 = arith.constant 0 : index
    %c0_113 = arith.constant 0 : index
    %216 = vector.load %arg13[%c0_112, %c0_113] : memref<1x32xf32, #tpu.memory_space<vmem>>, vector<1x32xf32>
    %217 = vector.broadcast %216 : vector<1x32xf32> to vector<8x32xf32>
    %218 = arith.addf %215, %217 : vector<8x32xf32>
    %219 = arith.mulf %218, %218 : vector<8x32xf32>
    %220 = arith.mulf %218, %219 : vector<8x32xf32>
    %cst_114 = arith.constant 4.471500e-02 : f32
    %221 = vector.broadcast %cst_114 : f32 to vector<8x32xf32>
    %222 = arith.mulf %221, %220 : vector<8x32xf32>
    %223 = arith.addf %218, %222 : vector<8x32xf32>
    %cst_115 = arith.constant 0.797884583 : f32
    %224 = vector.broadcast %cst_115 : f32 to vector<8x32xf32>
    %225 = arith.mulf %224, %223 : vector<8x32xf32>
    %226 = math.tanh %225 : vector<8x32xf32>
    %cst_116 = arith.constant 1.000000e+00 : f32
    %227 = vector.broadcast %cst_116 : f32 to vector<8x32xf32>
    %228 = arith.addf %227, %226 : vector<8x32xf32>
    %cst_117 = arith.constant 5.000000e-01 : f32
    %229 = vector.broadcast %cst_117 : f32 to vector<8x32xf32>
    %230 = arith.mulf %229, %228 : vector<8x32xf32>
    %231 = arith.mulf %218, %230 : vector<8x32xf32>
    %232 = arith.truncf %231 : vector<8x32xf32> to vector<8x32xbf16>
    %c0_118 = arith.constant 0 : index
    %c0_119 = arith.constant 0 : index
    %233 = vector.load %arg14[%c0_118, %c0_119] : memref<32x16xbf16, #tpu.memory_space<vmem>>, vector<32x16xbf16>
    %cst_120 = arith.constant dense<0.000000e+00> : vector<8x16xf32>
    %234 = tpu.matmul %232, %233, %cst_120 {dimension_numbers = #tpu.dot_dimension_numbers<[1], [0], [0], [1], [0, 0, 1, 1], [], []>} : vector<8x32xbf16>, vector<32x16xbf16>, vector<8x16xf32> -> vector<8x16xf32>
    %c0_121 = arith.constant 0 : index
    %c0_122 = arith.constant 0 : index
    %235 = vector.load %arg15[%c0_121, %c0_122] : memref<1x16xf32, #tpu.memory_space<vmem>>, vector<1x16xf32>
    %236 = vector.broadcast %235 : vector<1x16xf32> to vector<8x16xf32>
    %237 = arith.addf %234, %236 : vector<8x16xf32>
    %238 = vector.extract_strided_slice %237 {offsets = [0, 0], sizes = [8, 8], strides = [1, 1]} : vector<8x16xf32> to vector<8x8xf32>
    %239 = vector.extract_strided_slice %237 {offsets = [0, 8], sizes = [8, 8], strides = [1, 1]} : vector<8x16xf32> to vector<8x8xf32>
    %240 = math.tanh %239 : vector<8x8xf32>
    %cst_123 = arith.constant 4.000000e+00 : f32
    %241 = vector.broadcast %cst_123 : f32 to vector<8x8xf32>
    %242 = arith.mulf %240, %241 : vector<8x8xf32>
    %cst_124 = arith.constant 0.000000e+00 : f32
    %243 = vector.broadcast %cst_124 : f32 to vector<8x8xf32>
    %244 = arith.addf %242, %243 : vector<8x8xf32>
    %245 = vector.broadcast %135 : vector<8x1xf32> to vector<8x8xf32>
    %246 = arith.mulf %245, %238 : vector<8x8xf32>
    %247 = arith.addf %123, %246 : vector<8x8xf32>
    %cst_125 = arith.constant 5.000000e-01 : f32
    %248 = vector.broadcast %cst_125 : f32 to vector<8x8xf32>
    %249 = arith.mulf %248, %244 : vector<8x8xf32>
    %250 = math.exp %249 : vector<8x8xf32>
    %251 = vector.broadcast %136 : vector<8x1xf32> to vector<8x8xf32>
    %252 = arith.mulf %251, %250 : vector<8x8xf32>
    %253 = arith.mulf %252, %138 : vector<8x8xf32>
    %254 = arith.addf %247, %253 : vector<8x8xf32>
    %c1_126 = arith.constant 1 : index
    %c0_127 = arith.constant 0 : index
    %c0_128 = arith.constant 0 : index
    %255 = vector.load %arg22[%c1_126, %c0_127, %c0_128] : memref<8x8x8xf32, #tpu.memory_space<vmem>>, vector<1x8x8xf32>
    %256 = vector.shape_cast %255 : vector<1x8x8xf32> to vector<8x8xf32>
    %257 = vector.shape_cast %254 : vector<8x8xf32> to vector<1x8x8xf32>
    tpu.vector_store %arg22[%c1_126, %c0_127, %c0_128], %257 {strides = array<i32>} : memref<8x8x8xf32, #tpu.memory_space<vmem>>, vector<1x8x8xf32>,
    %c1_129 = arith.constant 1 : index
    %c0_130 = arith.constant 0 : index
    %c0_131 = arith.constant 0 : index
    %258 = vector.load %arg26[%c1_129, %c0_130, %c0_131] : memref<8x8x32xf32, #tpu.memory_space<vmem>>, vector<1x8x32xf32>
    %259 = vector.shape_cast %258 : vector<1x8x32xf32> to vector<8x32xf32>
    %260 = vector.shape_cast %195 : vector<8x32xf32> to vector<1x8x32xf32>
    tpu.vector_store %arg26[%c1_129, %c0_130, %c0_131], %260 {strides = array<i32>} : memref<8x8x32xf32, #tpu.memory_space<vmem>>, vector<1x8x32xf32>,
    %c1_132 = arith.constant 1 : index
    %c0_133 = arith.constant 0 : index
    %c0_134 = arith.constant 0 : index
    %261 = vector.load %arg27[%c1_132, %c0_133, %c0_134] : memref<8x8x8xf32, #tpu.memory_space<vmem>>, vector<1x8x8xf32>
    %262 = vector.shape_cast %261 : vector<1x8x8xf32> to vector<8x8xf32>
    %263 = vector.shape_cast %244 : vector<8x8xf32> to vector<1x8x8xf32>
    tpu.vector_store %arg27[%c1_132, %c0_133, %c0_134], %263 {strides = array<i32>} : memref<8x8x8xf32, #tpu.memory_space<vmem>>, vector<1x8x8xf32>,
    %c2 = arith.constant 2 : index
    %c0_135 = arith.constant 0 : index
    %c0_136 = arith.constant 0 : index
    %264 = vector.load %arg5[%c2, %c0_135, %c0_136] : memref<8x8x8xf32, #tpu.memory_space<vmem>>, vector<1x8x8xf32>
    %265 = vector.shape_cast %264 : vector<1x8x8xf32> to vector<8x8xf32>
    %266 = vector.extract_strided_slice %265 {offsets = [0, 0], sizes = [8, 1], strides = [1, 1]} : vector<8x8xf32> to vector<8x1xf32>
    %267 = vector.extract_strided_slice %265 {offsets = [0, 1], sizes = [8, 1], strides = [1, 1]} : vector<8x8xf32> to vector<8x1xf32>
    %c2_137 = arith.constant 2 : index
    %c0_138 = arith.constant 0 : index
    %c0_139 = arith.constant 0 : index
    %268 = vector.load %arg4[%c2_137, %c0_138, %c0_139] : memref<8x8x8xf32, #tpu.memory_space<vmem>>, vector<1x8x8xf32>
    %269 = vector.shape_cast %268 : vector<1x8x8xf32> to vector<8x8xf32>
    %c2_140 = arith.constant 2 : index
    %c0_141 = arith.constant 0 : index
    %c0_142 = arith.constant 0 : index
    %270 = vector.load %arg3[%c2_140, %c0_141, %c0_142] : memref<8x8x32xf32, #tpu.memory_space<vmem>>, vector<1x8x32xf32>
    %271 = vector.shape_cast %270 : vector<1x8x32xf32> to vector<8x32xf32>
    %272 = arith.truncf %254 : vector<8x8xf32> to vector<8x8xbf16>
    %c0_143 = arith.constant 0 : index
    %c0_144 = arith.constant 0 : index
    %273 = vector.load %arg6[%c0_143, %c0_144] : memref<8x32xbf16, #tpu.memory_space<vmem>>, vector<8x32xbf16>
    %cst_145 = arith.constant dense<0.000000e+00> : vector<8x32xf32>
    %274 = tpu.matmul %272, %273, %cst_145 {dimension_numbers = #tpu.dot_dimension_numbers<[1], [0], [0], [1], [0, 0, 1, 1], [], []>} : vector<8x8xbf16>, vector<8x32xbf16>, vector<8x32xf32> -> vector<8x32xf32>
    %275 = arith.addf %274, %0 : vector<8x32xf32>
    %276 = arith.mulf %275, %275 : vector<8x32xf32>
    %277 = arith.mulf %275, %276 : vector<8x32xf32>
    %cst_146 = arith.constant 4.471500e-02 : f32
    %278 = vector.broadcast %cst_146 : f32 to vector<8x32xf32>
    %279 = arith.mulf %278, %277 : vector<8x32xf32>
    %280 = arith.addf %275, %279 : vector<8x32xf32>
    %cst_147 = arith.constant 0.797884583 : f32
    %281 = vector.broadcast %cst_147 : f32 to vector<8x32xf32>
    %282 = arith.mulf %281, %280 : vector<8x32xf32>
    %283 = math.tanh %282 : vector<8x32xf32>
    %cst_148 = arith.constant 1.000000e+00 : f32
    %284 = vector.broadcast %cst_148 : f32 to vector<8x32xf32>
    %285 = arith.addf %284, %283 : vector<8x32xf32>
    %cst_149 = arith.constant 5.000000e-01 : f32
    %286 = vector.broadcast %cst_149 : f32 to vector<8x32xf32>
    %287 = arith.mulf %286, %285 : vector<8x32xf32>
    %288 = arith.mulf %275, %287 : vector<8x32xf32>
    %289 = arith.truncf %288 : vector<8x32xf32> to vector<8x32xbf16>
    %c0_150 = arith.constant 0 : index
    %c0_151 = arith.constant 0 : index
    %290 = vector.load %arg7[%c0_150, %c0_151] : memref<32x32xbf16, #tpu.memory_space<vmem>>, vector<32x32xbf16>
    %cst_152 = arith.constant dense<0.000000e+00> : vector<8x32xf32>
    %291 = tpu.matmul %289, %290, %cst_152 {dimension_numbers = #tpu.dot_dimension_numbers<[1], [0], [0], [1], [0, 0, 1, 1], [], []>} : vector<8x32xbf16>, vector<32x32xbf16>, vector<8x32xf32> -> vector<8x32xf32>
    %c0_153 = arith.constant 0 : index
    %c0_154 = arith.constant 0 : index
    %292 = vector.load %arg8[%c0_153, %c0_154] : memref<1x32xf32, #tpu.memory_space<vmem>>, vector<1x32xf32>
    %293 = vector.broadcast %292 : vector<1x32xf32> to vector<8x32xf32>
    %294 = arith.addf %291, %293 : vector<8x32xf32>
    %295 = arith.mulf %294, %294 : vector<8x32xf32>
    %296 = arith.mulf %294, %295 : vector<8x32xf32>
    %cst_155 = arith.constant 4.471500e-02 : f32
    %297 = vector.broadcast %cst_155 : f32 to vector<8x32xf32>
    %298 = arith.mulf %297, %296 : vector<8x32xf32>
    %299 = arith.addf %294, %298 : vector<8x32xf32>
    %cst_156 = arith.constant 0.797884583 : f32
    %300 = vector.broadcast %cst_156 : f32 to vector<8x32xf32>
    %301 = arith.mulf %300, %299 : vector<8x32xf32>
    %302 = math.tanh %301 : vector<8x32xf32>
    %cst_157 = arith.constant 1.000000e+00 : f32
    %303 = vector.broadcast %cst_157 : f32 to vector<8x32xf32>
    %304 = arith.addf %303, %302 : vector<8x32xf32>
    %cst_158 = arith.constant 5.000000e-01 : f32
    %305 = vector.broadcast %cst_158 : f32 to vector<8x32xf32>
    %306 = arith.mulf %305, %304 : vector<8x32xf32>
    %307 = arith.mulf %294, %306 : vector<8x32xf32>
    %308 = arith.truncf %307 : vector<8x32xf32> to vector<8x32xbf16>
    %c0_159 = arith.constant 0 : index
    %c0_160 = arith.constant 0 : index
    %309 = vector.load %arg9[%c0_159, %c0_160] : memref<32x32xbf16, #tpu.memory_space<vmem>>, vector<32x32xbf16>
    %cst_161 = arith.constant dense<0.000000e+00> : vector<8x32xf32>
    %310 = tpu.matmul %308, %309, %cst_161 {dimension_numbers = #tpu.dot_dimension_numbers<[1], [0], [0], [1], [0, 0, 1, 1], [], []>} : vector<8x32xbf16>, vector<32x32xbf16>, vector<8x32xf32> -> vector<8x32xf32>
    %c0_162 = arith.constant 0 : index
    %c0_163 = arith.constant 0 : index
    %311 = vector.load %arg10[%c0_162, %c0_163] : memref<1x32xf32, #tpu.memory_space<vmem>>, vector<1x32xf32>
    %312 = vector.broadcast %311 : vector<1x32xf32> to vector<8x32xf32>
    %313 = arith.addf %310, %312 : vector<8x32xf32>
    %314 = arith.mulf %313, %313 : vector<8x32xf32>
    %315 = arith.mulf %313, %314 : vector<8x32xf32>
    %cst_164 = arith.constant 4.471500e-02 : f32
    %316 = vector.broadcast %cst_164 : f32 to vector<8x32xf32>
    %317 = arith.mulf %316, %315 : vector<8x32xf32>
    %318 = arith.addf %313, %317 : vector<8x32xf32>
    %cst_165 = arith.constant 0.797884583 : f32
    %319 = vector.broadcast %cst_165 : f32 to vector<8x32xf32>
    %320 = arith.mulf %319, %318 : vector<8x32xf32>
    %321 = math.tanh %320 : vector<8x32xf32>
    %cst_166 = arith.constant 1.000000e+00 : f32
    %322 = vector.broadcast %cst_166 : f32 to vector<8x32xf32>
    %323 = arith.addf %322, %321 : vector<8x32xf32>
    %cst_167 = arith.constant 5.000000e-01 : f32
    %324 = vector.broadcast %cst_167 : f32 to vector<8x32xf32>
    %325 = arith.mulf %324, %323 : vector<8x32xf32>
    %326 = arith.mulf %313, %325 : vector<8x32xf32>
    %327 = arith.truncf %326 : vector<8x32xf32> to vector<8x32xbf16>
    %c0_168 = arith.constant 0 : index
    %c0_169 = arith.constant 0 : index
    %328 = vector.load %arg11[%c0_168, %c0_169] : memref<32x32xbf16, #tpu.memory_space<vmem>>, vector<32x32xbf16>
    %cst_170 = arith.constant dense<0.000000e+00> : vector<8x32xf32>
    %329 = tpu.matmul %327, %328, %cst_170 {dimension_numbers = #tpu.dot_dimension_numbers<[1], [0], [0], [1], [0, 0, 1, 1], [], []>} : vector<8x32xbf16>, vector<32x32xbf16>, vector<8x32xf32> -> vector<8x32xf32>
    %330 = arith.addf %329, %271 : vector<8x32xf32>
    %331 = arith.mulf %330, %330 : vector<8x32xf32>
    %332 = arith.mulf %330, %331 : vector<8x32xf32>
    %cst_171 = arith.constant 4.471500e-02 : f32
    %333 = vector.broadcast %cst_171 : f32 to vector<8x32xf32>
    %334 = arith.mulf %333, %332 : vector<8x32xf32>
    %335 = arith.addf %330, %334 : vector<8x32xf32>
    %cst_172 = arith.constant 0.797884583 : f32
    %336 = vector.broadcast %cst_172 : f32 to vector<8x32xf32>
    %337 = arith.mulf %336, %335 : vector<8x32xf32>
    %338 = math.tanh %337 : vector<8x32xf32>
    %cst_173 = arith.constant 1.000000e+00 : f32
    %339 = vector.broadcast %cst_173 : f32 to vector<8x32xf32>
    %340 = arith.addf %339, %338 : vector<8x32xf32>
    %cst_174 = arith.constant 5.000000e-01 : f32
    %341 = vector.broadcast %cst_174 : f32 to vector<8x32xf32>
    %342 = arith.mulf %341, %340 : vector<8x32xf32>
    %343 = arith.mulf %330, %342 : vector<8x32xf32>
    %344 = arith.truncf %343 : vector<8x32xf32> to vector<8x32xbf16>
    %c0_175 = arith.constant 0 : index
    %c0_176 = arith.constant 0 : index
    %345 = vector.load %arg12[%c0_175, %c0_176] : memref<32x32xbf16, #tpu.memory_space<vmem>>, vector<32x32xbf16>
    %cst_177 = arith.constant dense<0.000000e+00> : vector<8x32xf32>
    %346 = tpu.matmul %344, %345, %cst_177 {dimension_numbers = #tpu.dot_dimension_numbers<[1], [0], [0], [1], [0, 0, 1, 1], [], []>} : vector<8x32xbf16>, vector<32x32xbf16>, vector<8x32xf32> -> vector<8x32xf32>
    %c0_178 = arith.constant 0 : index
    %c0_179 = arith.constant 0 : index
    %347 = vector.load %arg13[%c0_178, %c0_179] : memref<1x32xf32, #tpu.memory_space<vmem>>, vector<1x32xf32>
    %348 = vector.broadcast %347 : vector<1x32xf32> to vector<8x32xf32>
    %349 = arith.addf %346, %348 : vector<8x32xf32>
    %350 = arith.mulf %349, %349 : vector<8x32xf32>
    %351 = arith.mulf %349, %350 : vector<8x32xf32>
    %cst_180 = arith.constant 4.471500e-02 : f32
    %352 = vector.broadcast %cst_180 : f32 to vector<8x32xf32>
    %353 = arith.mulf %352, %351 : vector<8x32xf32>
    %354 = arith.addf %349, %353 : vector<8x32xf32>
    %cst_181 = arith.constant 0.797884583 : f32
    %355 = vector.broadcast %cst_181 : f32 to vector<8x32xf32>
    %356 = arith.mulf %355, %354 : vector<8x32xf32>
    %357 = math.tanh %356 : vector<8x32xf32>
    %cst_182 = arith.constant 1.000000e+00 : f32
    %358 = vector.broadcast %cst_182 : f32 to vector<8x32xf32>
    %359 = arith.addf %358, %357 : vector<8x32xf32>
    %cst_183 = arith.constant 5.000000e-01 : f32
    %360 = vector.broadcast %cst_183 : f32 to vector<8x32xf32>
    %361 = arith.mulf %360, %359 : vector<8x32xf32>
    %362 = arith.mulf %349, %361 : vector<8x32xf32>
    %363 = arith.truncf %362 : vector<8x32xf32> to vector<8x32xbf16>
    %c0_184 = arith.constant 0 : index
    %c0_185 = arith.constant 0 : index
    %364 = vector.load %arg14[%c0_184, %c0_185] : memref<32x16xbf16, #tpu.memory_space<vmem>>, vector<32x16xbf16>
    %cst_186 = arith.constant dense<0.000000e+00> : vector<8x16xf32>
    %365 = tpu.matmul %363, %364, %cst_186 {dimension_numbers = #tpu.dot_dimension_numbers<[1], [0], [0], [1], [0, 0, 1, 1], [], []>} : vector<8x32xbf16>, vector<32x16xbf16>, vector<8x16xf32> -> vector<8x16xf32>
    %c0_187 = arith.constant 0 : index
    %c0_188 = arith.constant 0 : index
    %366 = vector.load %arg15[%c0_187, %c0_188] : memref<1x16xf32, #tpu.memory_space<vmem>>, vector<1x16xf32>
    %367 = vector.broadcast %366 : vector<1x16xf32> to vector<8x16xf32>
    %368 = arith.addf %365, %367 : vector<8x16xf32>
    %369 = vector.extract_strided_slice %368 {offsets = [0, 0], sizes = [8, 8], strides = [1, 1]} : vector<8x16xf32> to vector<8x8xf32>
    %370 = vector.extract_strided_slice %368 {offsets = [0, 8], sizes = [8, 8], strides = [1, 1]} : vector<8x16xf32> to vector<8x8xf32>
    %371 = math.tanh %370 : vector<8x8xf32>
    %cst_189 = arith.constant 4.000000e+00 : f32
    %372 = vector.broadcast %cst_189 : f32 to vector<8x8xf32>
    %373 = arith.mulf %371, %372 : vector<8x8xf32>
    %cst_190 = arith.constant 0.000000e+00 : f32
    %374 = vector.broadcast %cst_190 : f32 to vector<8x8xf32>
    %375 = arith.addf %373, %374 : vector<8x8xf32>
    %376 = vector.broadcast %266 : vector<8x1xf32> to vector<8x8xf32>
    %377 = arith.mulf %376, %369 : vector<8x8xf32>
    %378 = arith.addf %254, %377 : vector<8x8xf32>
    %cst_191 = arith.constant 5.000000e-01 : f32
    %379 = vector.broadcast %cst_191 : f32 to vector<8x8xf32>
    %380 = arith.mulf %379, %375 : vector<8x8xf32>
    %381 = math.exp %380 : vector<8x8xf32>
    %382 = vector.broadcast %267 : vector<8x1xf32> to vector<8x8xf32>
    %383 = arith.mulf %382, %381 : vector<8x8xf32>
    %384 = arith.mulf %383, %269 : vector<8x8xf32>
    %385 = arith.addf %378, %384 : vector<8x8xf32>
    %c2_192 = arith.constant 2 : index
    %c0_193 = arith.constant 0 : index
    %c0_194 = arith.constant 0 : index
    %386 = vector.load %arg22[%c2_192, %c0_193, %c0_194] : memref<8x8x8xf32, #tpu.memory_space<vmem>>, vector<1x8x8xf32>
    %387 = vector.shape_cast %386 : vector<1x8x8xf32> to vector<8x8xf32>
    %388 = vector.shape_cast %385 : vector<8x8xf32> to vector<1x8x8xf32>
    tpu.vector_store %arg22[%c2_192, %c0_193, %c0_194], %388 {strides = array<i32>} : memref<8x8x8xf32, #tpu.memory_space<vmem>>, vector<1x8x8xf32>,
    %c2_195 = arith.constant 2 : index
    %c0_196 = arith.constant 0 : index
    %c0_197 = arith.constant 0 : index
    %389 = vector.load %arg26[%c2_195, %c0_196, %c0_197] : memref<8x8x32xf32, #tpu.memory_space<vmem>>, vector<1x8x32xf32>
    %390 = vector.shape_cast %389 : vector<1x8x32xf32> to vector<8x32xf32>
    %391 = vector.shape_cast %326 : vector<8x32xf32> to vector<1x8x32xf32>
    tpu.vector_store %arg26[%c2_195, %c0_196, %c0_197], %391 {strides = array<i32>} : memref<8x8x32xf32, #tpu.memory_space<vmem>>, vector<1x8x32xf32>,
    %c2_198 = arith.constant 2 : index
    %c0_199 = arith.constant 0 : index
    %c0_200 = arith.constant 0 : index
    %392 = vector.load %arg27[%c2_198, %c0_199, %c0_200] : memref<8x8x8xf32, #tpu.memory_space<vmem>>, vector<1x8x8xf32>
    %393 = vector.shape_cast %392 : vector<1x8x8xf32> to vector<8x8xf32>
    %394 = vector.shape_cast %375 : vector<8x8xf32> to vector<1x8x8xf32>
    tpu.vector_store %arg27[%c2_198, %c0_199, %c0_200], %394 {strides = array<i32>} : memref<8x8x8xf32, #tpu.memory_space<vmem>>, vector<1x8x8xf32>,
    %c3 = arith.constant 3 : index
    %c0_201 = arith.constant 0 : index
    %c0_202 = arith.constant 0 : index
    %395 = vector.load %arg5[%c3, %c0_201, %c0_202] : memref<8x8x8xf32, #tpu.memory_space<vmem>>, vector<1x8x8xf32>
    %396 = vector.shape_cast %395 : vector<1x8x8xf32> to vector<8x8xf32>
    %397 = vector.extract_strided_slice %396 {offsets = [0, 0], sizes = [8, 1], strides = [1, 1]} : vector<8x8xf32> to vector<8x1xf32>
    %398 = vector.extract_strided_slice %396 {offsets = [0, 1], sizes = [8, 1], strides = [1, 1]} : vector<8x8xf32> to vector<8x1xf32>
    %c3_203 = arith.constant 3 : index
    %c0_204 = arith.constant 0 : index
    %c0_205 = arith.constant 0 : index
    %399 = vector.load %arg4[%c3_203, %c0_204, %c0_205] : memref<8x8x8xf32, #tpu.memory_space<vmem>>, vector<1x8x8xf32>
    %400 = vector.shape_cast %399 : vector<1x8x8xf32> to vector<8x8xf32>
    %c3_206 = arith.constant 3 : index
    %c0_207 = arith.constant 0 : index
    %c0_208 = arith.constant 0 : index
    %401 = vector.load %arg3[%c3_206, %c0_207, %c0_208] : memref<8x8x32xf32, #tpu.memory_space<vmem>>, vector<1x8x32xf32>
    %402 = vector.shape_cast %401 : vector<1x8x32xf32> to vector<8x32xf32>
    %403 = arith.truncf %385 : vector<8x8xf32> to vector<8x8xbf16>
    %c0_209 = arith.constant 0 : index
    %c0_210 = arith.constant 0 : index
    %404 = vector.load %arg6[%c0_209, %c0_210] : memref<8x32xbf16, #tpu.memory_space<vmem>>, vector<8x32xbf16>
    %cst_211 = arith.constant dense<0.000000e+00> : vector<8x32xf32>
    %405 = tpu.matmul %403, %404, %cst_211 {dimension_numbers = #tpu.dot_dimension_numbers<[1], [0], [0], [1], [0, 0, 1, 1], [], []>} : vector<8x8xbf16>, vector<8x32xbf16>, vector<8x32xf32> -> vector<8x32xf32>
    %406 = arith.addf %405, %0 : vector<8x32xf32>
    %407 = arith.mulf %406, %406 : vector<8x32xf32>
    %408 = arith.mulf %406, %407 : vector<8x32xf32>
    %cst_212 = arith.constant 4.471500e-02 : f32
    %409 = vector.broadcast %cst_212 : f32 to vector<8x32xf32>
    %410 = arith.mulf %409, %408 : vector<8x32xf32>
    %411 = arith.addf %406, %410 : vector<8x32xf32>
    %cst_213 = arith.constant 0.797884583 : f32
    %412 = vector.broadcast %cst_213 : f32 to vector<8x32xf32>
    %413 = arith.mulf %412, %411 : vector<8x32xf32>
    %414 = math.tanh %413 : vector<8x32xf32>
    %cst_214 = arith.constant 1.000000e+00 : f32
    %415 = vector.broadcast %cst_214 : f32 to vector<8x32xf32>
    %416 = arith.addf %415, %414 : vector<8x32xf32>
    %cst_215 = arith.constant 5.000000e-01 : f32
    %417 = vector.broadcast %cst_215 : f32 to vector<8x32xf32>
    %418 = arith.mulf %417, %416 : vector<8x32xf32>
    %419 = arith.mulf %406, %418 : vector<8x32xf32>
    %420 = arith.truncf %419 : vector<8x32xf32> to vector<8x32xbf16>
    %c0_216 = arith.constant 0 : index
    %c0_217 = arith.constant 0 : index
    %421 = vector.load %arg7[%c0_216, %c0_217] : memref<32x32xbf16, #tpu.memory_space<vmem>>, vector<32x32xbf16>
    %cst_218 = arith.constant dense<0.000000e+00> : vector<8x32xf32>
    %422 = tpu.matmul %420, %421, %cst_218 {dimension_numbers = #tpu.dot_dimension_numbers<[1], [0], [0], [1], [0, 0, 1, 1], [], []>} : vector<8x32xbf16>, vector<32x32xbf16>, vector<8x32xf32> -> vector<8x32xf32>
    %c0_219 = arith.constant 0 : index
    %c0_220 = arith.constant 0 : index
    %423 = vector.load %arg8[%c0_219, %c0_220] : memref<1x32xf32, #tpu.memory_space<vmem>>, vector<1x32xf32>
    %424 = vector.broadcast %423 : vector<1x32xf32> to vector<8x32xf32>
    %425 = arith.addf %422, %424 : vector<8x32xf32>
    %426 = arith.mulf %425, %425 : vector<8x32xf32>
    %427 = arith.mulf %425, %426 : vector<8x32xf32>
    %cst_221 = arith.constant 4.471500e-02 : f32
    %428 = vector.broadcast %cst_221 : f32 to vector<8x32xf32>
    %429 = arith.mulf %428, %427 : vector<8x32xf32>
    %430 = arith.addf %425, %429 : vector<8x32xf32>
    %cst_222 = arith.constant 0.797884583 : f32
    %431 = vector.broadcast %cst_222 : f32 to vector<8x32xf32>
    %432 = arith.mulf %431, %430 : vector<8x32xf32>
    %433 = math.tanh %432 : vector<8x32xf32>
    %cst_223 = arith.constant 1.000000e+00 : f32
    %434 = vector.broadcast %cst_223 : f32 to vector<8x32xf32>
    %435 = arith.addf %434, %433 : vector<8x32xf32>
    %cst_224 = arith.constant 5.000000e-01 : f32
    %436 = vector.broadcast %cst_224 : f32 to vector<8x32xf32>
    %437 = arith.mulf %436, %435 : vector<8x32xf32>
    %438 = arith.mulf %425, %437 : vector<8x32xf32>
    %439 = arith.truncf %438 : vector<8x32xf32> to vector<8x32xbf16>
    %c0_225 = arith.constant 0 : index
    %c0_226 = arith.constant 0 : index
    %440 = vector.load %arg9[%c0_225, %c0_226] : memref<32x32xbf16, #tpu.memory_space<vmem>>, vector<32x32xbf16>
    %cst_227 = arith.constant dense<0.000000e+00> : vector<8x32xf32>
    %441 = tpu.matmul %439, %440, %cst_227 {dimension_numbers = #tpu.dot_dimension_numbers<[1], [0], [0], [1], [0, 0, 1, 1], [], []>} : vector<8x32xbf16>, vector<32x32xbf16>, vector<8x32xf32> -> vector<8x32xf32>
    %c0_228 = arith.constant 0 : index
    %c0_229 = arith.constant 0 : index
    %442 = vector.load %arg10[%c0_228, %c0_229] : memref<1x32xf32, #tpu.memory_space<vmem>>, vector<1x32xf32>
    %443 = vector.broadcast %442 : vector<1x32xf32> to vector<8x32xf32>
    %444 = arith.addf %441, %443 : vector<8x32xf32>
    %445 = arith.mulf %444, %444 : vector<8x32xf32>
    %446 = arith.mulf %444, %445 : vector<8x32xf32>
    %cst_230 = arith.constant 4.471500e-02 : f32
    %447 = vector.broadcast %cst_230 : f32 to vector<8x32xf32>
    %448 = arith.mulf %447, %446 : vector<8x32xf32>
    %449 = arith.addf %444, %448 : vector<8x32xf32>
    %cst_231 = arith.constant 0.797884583 : f32
    %450 = vector.broadcast %cst_231 : f32 to vector<8x32xf32>
    %451 = arith.mulf %450, %449 : vector<8x32xf32>
    %452 = math.tanh %451 : vector<8x32xf32>
    %cst_232 = arith.constant 1.000000e+00 : f32
    %453 = vector.broadcast %cst_232 : f32 to vector<8x32xf32>
    %454 = arith.addf %453, %452 : vector<8x32xf32>
    %cst_233 = arith.constant 5.000000e-01 : f32
    %455 = vector.broadcast %cst_233 : f32 to vector<8x32xf32>
    %456 = arith.mulf %455, %454 : vector<8x32xf32>
    %457 = arith.mulf %444, %456 : vector<8x32xf32>
    %458 = arith.truncf %457 : vector<8x32xf32> to vector<8x32xbf16>
    %c0_234 = arith.constant 0 : index
    %c0_235 = arith.constant 0 : index
    %459 = vector.load %arg11[%c0_234, %c0_235] : memref<32x32xbf16, #tpu.memory_space<vmem>>, vector<32x32xbf16>
    %cst_236 = arith.constant dense<0.000000e+00> : vector<8x32xf32>
    %460 = tpu.matmul %458, %459, %cst_236 {dimension_numbers = #tpu.dot_dimension_numbers<[1], [0], [0], [1], [0, 0, 1, 1], [], []>} : vector<8x32xbf16>, vector<32x32xbf16>, vector<8x32xf32> -> vector<8x32xf32>
    %461 = arith.addf %460, %402 : vector<8x32xf32>
    %462 = arith.mulf %461, %461 : vector<8x32xf32>
    %463 = arith.mulf %461, %462 : vector<8x32xf32>
    %cst_237 = arith.constant 4.471500e-02 : f32
    %464 = vector.broadcast %cst_237 : f32 to vector<8x32xf32>
    %465 = arith.mulf %464, %463 : vector<8x32xf32>
    %466 = arith.addf %461, %465 : vector<8x32xf32>
    %cst_238 = arith.constant 0.797884583 : f32
    %467 = vector.broadcast %cst_238 : f32 to vector<8x32xf32>
    %468 = arith.mulf %467, %466 : vector<8x32xf32>
    %469 = math.tanh %468 : vector<8x32xf32>
    %cst_239 = arith.constant 1.000000e+00 : f32
    %470 = vector.broadcast %cst_239 : f32 to vector<8x32xf32>
    %471 = arith.addf %470, %469 : vector<8x32xf32>
    %cst_240 = arith.constant 5.000000e-01 : f32
    %472 = vector.broadcast %cst_240 : f32 to vector<8x32xf32>
    %473 = arith.mulf %472, %471 : vector<8x32xf32>
    %474 = arith.mulf %461, %473 : vector<8x32xf32>
    %475 = arith.truncf %474 : vector<8x32xf32> to vector<8x32xbf16>
    %c0_241 = arith.constant 0 : index
    %c0_242 = arith.constant 0 : index
    %476 = vector.load %arg12[%c0_241, %c0_242] : memref<32x32xbf16, #tpu.memory_space<vmem>>, vector<32x32xbf16>
    %cst_243 = arith.constant dense<0.000000e+00> : vector<8x32xf32>
    %477 = tpu.matmul %475, %476, %cst_243 {dimension_numbers = #tpu.dot_dimension_numbers<[1], [0], [0], [1], [0, 0, 1, 1], [], []>} : vector<8x32xbf16>, vector<32x32xbf16>, vector<8x32xf32> -> vector<8x32xf32>
    %c0_244 = arith.constant 0 : index
    %c0_245 = arith.constant 0 : index
    %478 = vector.load %arg13[%c0_244, %c0_245] : memref<1x32xf32, #tpu.memory_space<vmem>>, vector<1x32xf32>
    %479 = vector.broadcast %478 : vector<1x32xf32> to vector<8x32xf32>
    %480 = arith.addf %477, %479 : vector<8x32xf32>
    %481 = arith.mulf %480, %480 : vector<8x32xf32>
    %482 = arith.mulf %480, %481 : vector<8x32xf32>
    %cst_246 = arith.constant 4.471500e-02 : f32
    %483 = vector.broadcast %cst_246 : f32 to vector<8x32xf32>
    %484 = arith.mulf %483, %482 : vector<8x32xf32>
    %485 = arith.addf %480, %484 : vector<8x32xf32>
    %cst_247 = arith.constant 0.797884583 : f32
    %486 = vector.broadcast %cst_247 : f32 to vector<8x32xf32>
    %487 = arith.mulf %486, %485 : vector<8x32xf32>
    %488 = math.tanh %487 : vector<8x32xf32>
    %cst_248 = arith.constant 1.000000e+00 : f32
    %489 = vector.broadcast %cst_248 : f32 to vector<8x32xf32>
    %490 = arith.addf %489, %488 : vector<8x32xf32>
    %cst_249 = arith.constant 5.000000e-01 : f32
    %491 = vector.broadcast %cst_249 : f32 to vector<8x32xf32>
    %492 = arith.mulf %491, %490 : vector<8x32xf32>
    %493 = arith.mulf %480, %492 : vector<8x32xf32>
    %494 = arith.truncf %493 : vector<8x32xf32> to vector<8x32xbf16>
    %c0_250 = arith.constant 0 : index
    %c0_251 = arith.constant 0 : index
    %495 = vector.load %arg14[%c0_250, %c0_251] : memref<32x16xbf16, #tpu.memory_space<vmem>>, vector<32x16xbf16>
    %cst_252 = arith.constant dense<0.000000e+00> : vector<8x16xf32>
    %496 = tpu.matmul %494, %495, %cst_252 {dimension_numbers = #tpu.dot_dimension_numbers<[1], [0], [0], [1], [0, 0, 1, 1], [], []>} : vector<8x32xbf16>, vector<32x16xbf16>, vector<8x16xf32> -> vector<8x16xf32>
    %c0_253 = arith.constant 0 : index
    %c0_254 = arith.constant 0 : index
    %497 = vector.load %arg15[%c0_253, %c0_254] : memref<1x16xf32, #tpu.memory_space<vmem>>, vector<1x16xf32>
    %498 = vector.broadcast %497 : vector<1x16xf32> to vector<8x16xf32>
    %499 = arith.addf %496, %498 : vector<8x16xf32>
    %500 = vector.extract_strided_slice %499 {offsets = [0, 0], sizes = [8, 8], strides = [1, 1]} : vector<8x16xf32> to vector<8x8xf32>
    %501 = vector.extract_strided_slice %499 {offsets = [0, 8], sizes = [8, 8], strides = [1, 1]} : vector<8x16xf32> to vector<8x8xf32>
    %502 = math.tanh %501 : vector<8x8xf32>
    %cst_255 = arith.constant 4.000000e+00 : f32
    %503 = vector.broadcast %cst_255 : f32 to vector<8x8xf32>
    %504 = arith.mulf %502, %503 : vector<8x8xf32>
    %cst_256 = arith.constant 0.000000e+00 : f32
    %505 = vector.broadcast %cst_256 : f32 to vector<8x8xf32>
    %506 = arith.addf %504, %505 : vector<8x8xf32>
    %507 = vector.broadcast %397 : vector<8x1xf32> to vector<8x8xf32>
    %508 = arith.mulf %507, %500 : vector<8x8xf32>
    %509 = arith.addf %385, %508 : vector<8x8xf32>
    %cst_257 = arith.constant 5.000000e-01 : f32
    %510 = vector.broadcast %cst_257 : f32 to vector<8x8xf32>
    %511 = arith.mulf %510, %506 : vector<8x8xf32>
    %512 = math.exp %511 : vector<8x8xf32>
    %513 = vector.broadcast %398 : vector<8x1xf32> to vector<8x8xf32>
    %514 = arith.mulf %513, %512 : vector<8x8xf32>
    %515 = arith.mulf %514, %400 : vector<8x8xf32>
    %516 = arith.addf %509, %515 : vector<8x8xf32>
    %c3_258 = arith.constant 3 : index
    %c0_259 = arith.constant 0 : index
    %c0_260 = arith.constant 0 : index
    %517 = vector.load %arg22[%c3_258, %c0_259, %c0_260] : memref<8x8x8xf32, #tpu.memory_space<vmem>>, vector<1x8x8xf32>
    %518 = vector.shape_cast %517 : vector<1x8x8xf32> to vector<8x8xf32>
    %519 = vector.shape_cast %516 : vector<8x8xf32> to vector<1x8x8xf32>
    tpu.vector_store %arg22[%c3_258, %c0_259, %c0_260], %519 {strides = array<i32>} : memref<8x8x8xf32, #tpu.memory_space<vmem>>, vector<1x8x8xf32>,
    %c3_261 = arith.constant 3 : index
    %c0_262 = arith.constant 0 : index
    %c0_263 = arith.constant 0 : index
    %520 = vector.load %arg26[%c3_261, %c0_262, %c0_263] : memref<8x8x32xf32, #tpu.memory_space<vmem>>, vector<1x8x32xf32>
    %521 = vector.shape_cast %520 : vector<1x8x32xf32> to vector<8x32xf32>
    %522 = vector.shape_cast %457 : vector<8x32xf32> to vector<1x8x32xf32>
    tpu.vector_store %arg26[%c3_261, %c0_262, %c0_263], %522 {strides = array<i32>} : memref<8x8x32xf32, #tpu.memory_space<vmem>>, vector<1x8x32xf32>,
    %c3_264 = arith.constant 3 : index
    %c0_265 = arith.constant 0 : index
    %c0_266 = arith.constant 0 : index
    %523 = vector.load %arg27[%c3_264, %c0_265, %c0_266] : memref<8x8x8xf32, #tpu.memory_space<vmem>>, vector<1x8x8xf32>
    %524 = vector.shape_cast %523 : vector<1x8x8xf32> to vector<8x8xf32>
    %525 = vector.shape_cast %506 : vector<8x8xf32> to vector<1x8x8xf32>
    tpu.vector_store %arg27[%c3_264, %c0_265, %c0_266], %525 {strides = array<i32>} : memref<8x8x8xf32, #tpu.memory_space<vmem>>, vector<1x8x8xf32>,
    %c4 = arith.constant 4 : index
    %c0_267 = arith.constant 0 : index
    %c0_268 = arith.constant 0 : index
    %526 = vector.load %arg5[%c4, %c0_267, %c0_268] : memref<8x8x8xf32, #tpu.memory_space<vmem>>, vector<1x8x8xf32>
    %527 = vector.shape_cast %526 : vector<1x8x8xf32> to vector<8x8xf32>
    %528 = vector.extract_strided_slice %527 {offsets = [0, 0], sizes = [8, 1], strides = [1, 1]} : vector<8x8xf32> to vector<8x1xf32>
    %529 = vector.extract_strided_slice %527 {offsets = [0, 1], sizes = [8, 1], strides = [1, 1]} : vector<8x8xf32> to vector<8x1xf32>
    %c4_269 = arith.constant 4 : index
    %c0_270 = arith.constant 0 : index
    %c0_271 = arith.constant 0 : index
    %530 = vector.load %arg4[%c4_269, %c0_270, %c0_271] : memref<8x8x8xf32, #tpu.memory_space<vmem>>, vector<1x8x8xf32>
    %531 = vector.shape_cast %530 : vector<1x8x8xf32> to vector<8x8xf32>
    %c4_272 = arith.constant 4 : index
    %c0_273 = arith.constant 0 : index
    %c0_274 = arith.constant 0 : index
    %532 = vector.load %arg3[%c4_272, %c0_273, %c0_274] : memref<8x8x32xf32, #tpu.memory_space<vmem>>, vector<1x8x32xf32>
    %533 = vector.shape_cast %532 : vector<1x8x32xf32> to vector<8x32xf32>
    %534 = arith.truncf %516 : vector<8x8xf32> to vector<8x8xbf16>
    %c0_275 = arith.constant 0 : index
    %c0_276 = arith.constant 0 : index
    %535 = vector.load %arg6[%c0_275, %c0_276] : memref<8x32xbf16, #tpu.memory_space<vmem>>, vector<8x32xbf16>
    %cst_277 = arith.constant dense<0.000000e+00> : vector<8x32xf32>
    %536 = tpu.matmul %534, %535, %cst_277 {dimension_numbers = #tpu.dot_dimension_numbers<[1], [0], [0], [1], [0, 0, 1, 1], [], []>} : vector<8x8xbf16>, vector<8x32xbf16>, vector<8x32xf32> -> vector<8x32xf32>
    %537 = arith.addf %536, %0 : vector<8x32xf32>
    %538 = arith.mulf %537, %537 : vector<8x32xf32>
    %539 = arith.mulf %537, %538 : vector<8x32xf32>
    %cst_278 = arith.constant 4.471500e-02 : f32
    %540 = vector.broadcast %cst_278 : f32 to vector<8x32xf32>
    %541 = arith.mulf %540, %539 : vector<8x32xf32>
    %542 = arith.addf %537, %541 : vector<8x32xf32>
    %cst_279 = arith.constant 0.797884583 : f32
    %543 = vector.broadcast %cst_279 : f32 to vector<8x32xf32>
    %544 = arith.mulf %543, %542 : vector<8x32xf32>
    %545 = math.tanh %544 : vector<8x32xf32>
    %cst_280 = arith.constant 1.000000e+00 : f32
    %546 = vector.broadcast %cst_280 : f32 to vector<8x32xf32>
    %547 = arith.addf %546, %545 : vector<8x32xf32>
    %cst_281 = arith.constant 5.000000e-01 : f32
    %548 = vector.broadcast %cst_281 : f32 to vector<8x32xf32>
    %549 = arith.mulf %548, %547 : vector<8x32xf32>
    %550 = arith.mulf %537, %549 : vector<8x32xf32>
    %551 = arith.truncf %550 : vector<8x32xf32> to vector<8x32xbf16>
    %c0_282 = arith.constant 0 : index
    %c0_283 = arith.constant 0 : index
    %552 = vector.load %arg7[%c0_282, %c0_283] : memref<32x32xbf16, #tpu.memory_space<vmem>>, vector<32x32xbf16>
    %cst_284 = arith.constant dense<0.000000e+00> : vector<8x32xf32>
    %553 = tpu.matmul %551, %552, %cst_284 {dimension_numbers = #tpu.dot_dimension_numbers<[1], [0], [0], [1], [0, 0, 1, 1], [], []>} : vector<8x32xbf16>, vector<32x32xbf16>, vector<8x32xf32> -> vector<8x32xf32>
    %c0_285 = arith.constant 0 : index
    %c0_286 = arith.constant 0 : index
    %554 = vector.load %arg8[%c0_285, %c0_286] : memref<1x32xf32, #tpu.memory_space<vmem>>, vector<1x32xf32>
    %555 = vector.broadcast %554 : vector<1x32xf32> to vector<8x32xf32>
    %556 = arith.addf %553, %555 : vector<8x32xf32>
    %557 = arith.mulf %556, %556 : vector<8x32xf32>
    %558 = arith.mulf %556, %557 : vector<8x32xf32>
    %cst_287 = arith.constant 4.471500e-02 : f32
    %559 = vector.broadcast %cst_287 : f32 to vector<8x32xf32>
    %560 = arith.mulf %559, %558 : vector<8x32xf32>
    %561 = arith.addf %556, %560 : vector<8x32xf32>
    %cst_288 = arith.constant 0.797884583 : f32
    %562 = vector.broadcast %cst_288 : f32 to vector<8x32xf32>
    %563 = arith.mulf %562, %561 : vector<8x32xf32>
    %564 = math.tanh %563 : vector<8x32xf32>
    %cst_289 = arith.constant 1.000000e+00 : f32
    %565 = vector.broadcast %cst_289 : f32 to vector<8x32xf32>
    %566 = arith.addf %565, %564 : vector<8x32xf32>
    %cst_290 = arith.constant 5.000000e-01 : f32
    %567 = vector.broadcast %cst_290 : f32 to vector<8x32xf32>
    %568 = arith.mulf %567, %566 : vector<8x32xf32>
    %569 = arith.mulf %556, %568 : vector<8x32xf32>
    %570 = arith.truncf %569 : vector<8x32xf32> to vector<8x32xbf16>
    %c0_291 = arith.constant 0 : index
    %c0_292 = arith.constant 0 : index
    %571 = vector.load %arg9[%c0_291, %c0_292] : memref<32x32xbf16, #tpu.memory_space<vmem>>, vector<32x32xbf16>
    %cst_293 = arith.constant dense<0.000000e+00> : vector<8x32xf32>
    %572 = tpu.matmul %570, %571, %cst_293 {dimension_numbers = #tpu.dot_dimension_numbers<[1], [0], [0], [1], [0, 0, 1, 1], [], []>} : vector<8x32xbf16>, vector<32x32xbf16>, vector<8x32xf32> -> vector<8x32xf32>
    %c0_294 = arith.constant 0 : index
    %c0_295 = arith.constant 0 : index
    %573 = vector.load %arg10[%c0_294, %c0_295] : memref<1x32xf32, #tpu.memory_space<vmem>>, vector<1x32xf32>
    %574 = vector.broadcast %573 : vector<1x32xf32> to vector<8x32xf32>
    %575 = arith.addf %572, %574 : vector<8x32xf32>
    %576 = arith.mulf %575, %575 : vector<8x32xf32>
    %577 = arith.mulf %575, %576 : vector<8x32xf32>
    %cst_296 = arith.constant 4.471500e-02 : f32
    %578 = vector.broadcast %cst_296 : f32 to vector<8x32xf32>
    %579 = arith.mulf %578, %577 : vector<8x32xf32>
    %580 = arith.addf %575, %579 : vector<8x32xf32>
    %cst_297 = arith.constant 0.797884583 : f32
    %581 = vector.broadcast %cst_297 : f32 to vector<8x32xf32>
    %582 = arith.mulf %581, %580 : vector<8x32xf32>
    %583 = math.tanh %582 : vector<8x32xf32>
    %cst_298 = arith.constant 1.000000e+00 : f32
    %584 = vector.broadcast %cst_298 : f32 to vector<8x32xf32>
    %585 = arith.addf %584, %583 : vector<8x32xf32>
    %cst_299 = arith.constant 5.000000e-01 : f32
    %586 = vector.broadcast %cst_299 : f32 to vector<8x32xf32>
    %587 = arith.mulf %586, %585 : vector<8x32xf32>
    %588 = arith.mulf %575, %587 : vector<8x32xf32>
    %589 = arith.truncf %588 : vector<8x32xf32> to vector<8x32xbf16>
    %c0_300 = arith.constant 0 : index
    %c0_301 = arith.constant 0 : index
    %590 = vector.load %arg11[%c0_300, %c0_301] : memref<32x32xbf16, #tpu.memory_space<vmem>>, vector<32x32xbf16>
    %cst_302 = arith.constant dense<0.000000e+00> : vector<8x32xf32>
    %591 = tpu.matmul %589, %590, %cst_302 {dimension_numbers = #tpu.dot_dimension_numbers<[1], [0], [0], [1], [0, 0, 1, 1], [], []>} : vector<8x32xbf16>, vector<32x32xbf16>, vector<8x32xf32> -> vector<8x32xf32>
    %592 = arith.addf %591, %533 : vector<8x32xf32>
    %593 = arith.mulf %592, %592 : vector<8x32xf32>
    %594 = arith.mulf %592, %593 : vector<8x32xf32>
    %cst_303 = arith.constant 4.471500e-02 : f32
    %595 = vector.broadcast %cst_303 : f32 to vector<8x32xf32>
    %596 = arith.mulf %595, %594 : vector<8x32xf32>
    %597 = arith.addf %592, %596 : vector<8x32xf32>
    %cst_304 = arith.constant 0.797884583 : f32
    %598 = vector.broadcast %cst_304 : f32 to vector<8x32xf32>
    %599 = arith.mulf %598, %597 : vector<8x32xf32>
    %600 = math.tanh %599 : vector<8x32xf32>
    %cst_305 = arith.constant 1.000000e+00 : f32
    %601 = vector.broadcast %cst_305 : f32 to vector<8x32xf32>
    %602 = arith.addf %601, %600 : vector<8x32xf32>
    %cst_306 = arith.constant 5.000000e-01 : f32
    %603 = vector.broadcast %cst_306 : f32 to vector<8x32xf32>
    %604 = arith.mulf %603, %602 : vector<8x32xf32>
    %605 = arith.mulf %592, %604 : vector<8x32xf32>
    %606 = arith.truncf %605 : vector<8x32xf32> to vector<8x32xbf16>
    %c0_307 = arith.constant 0 : index
    %c0_308 = arith.constant 0 : index
    %607 = vector.load %arg12[%c0_307, %c0_308] : memref<32x32xbf16, #tpu.memory_space<vmem>>, vector<32x32xbf16>
    %cst_309 = arith.constant dense<0.000000e+00> : vector<8x32xf32>
    %608 = tpu.matmul %606, %607, %cst_309 {dimension_numbers = #tpu.dot_dimension_numbers<[1], [0], [0], [1], [0, 0, 1, 1], [], []>} : vector<8x32xbf16>, vector<32x32xbf16>, vector<8x32xf32> -> vector<8x32xf32>
    %c0_310 = arith.constant 0 : index
    %c0_311 = arith.constant 0 : index
    %609 = vector.load %arg13[%c0_310, %c0_311] : memref<1x32xf32, #tpu.memory_space<vmem>>, vector<1x32xf32>
    %610 = vector.broadcast %609 : vector<1x32xf32> to vector<8x32xf32>
    %611 = arith.addf %608, %610 : vector<8x32xf32>
    %612 = arith.mulf %611, %611 : vector<8x32xf32>
    %613 = arith.mulf %611, %612 : vector<8x32xf32>
    %cst_312 = arith.constant 4.471500e-02 : f32
    %614 = vector.broadcast %cst_312 : f32 to vector<8x32xf32>
    %615 = arith.mulf %614, %613 : vector<8x32xf32>
    %616 = arith.addf %611, %615 : vector<8x32xf32>
    %cst_313 = arith.constant 0.797884583 : f32
    %617 = vector.broadcast %cst_313 : f32 to vector<8x32xf32>
    %618 = arith.mulf %617, %616 : vector<8x32xf32>
    %619 = math.tanh %618 : vector<8x32xf32>
    %cst_314 = arith.constant 1.000000e+00 : f32
    %620 = vector.broadcast %cst_314 : f32 to vector<8x32xf32>
    %621 = arith.addf %620, %619 : vector<8x32xf32>
    %cst_315 = arith.constant 5.000000e-01 : f32
    %622 = vector.broadcast %cst_315 : f32 to vector<8x32xf32>
    %623 = arith.mulf %622, %621 : vector<8x32xf32>
    %624 = arith.mulf %611, %623 : vector<8x32xf32>
    %625 = arith.truncf %624 : vector<8x32xf32> to vector<8x32xbf16>
    %c0_316 = arith.constant 0 : index
    %c0_317 = arith.constant 0 : index
    %626 = vector.load %arg14[%c0_316, %c0_317] : memref<32x16xbf16, #tpu.memory_space<vmem>>, vector<32x16xbf16>
    %cst_318 = arith.constant dense<0.000000e+00> : vector<8x16xf32>
    %627 = tpu.matmul %625, %626, %cst_318 {dimension_numbers = #tpu.dot_dimension_numbers<[1], [0], [0], [1], [0, 0, 1, 1], [], []>} : vector<8x32xbf16>, vector<32x16xbf16>, vector<8x16xf32> -> vector<8x16xf32>
    %c0_319 = arith.constant 0 : index
    %c0_320 = arith.constant 0 : index
    %628 = vector.load %arg15[%c0_319, %c0_320] : memref<1x16xf32, #tpu.memory_space<vmem>>, vector<1x16xf32>
    %629 = vector.broadcast %628 : vector<1x16xf32> to vector<8x16xf32>
    %630 = arith.addf %627, %629 : vector<8x16xf32>
    %631 = vector.extract_strided_slice %630 {offsets = [0, 0], sizes = [8, 8], strides = [1, 1]} : vector<8x16xf32> to vector<8x8xf32>
    %632 = vector.extract_strided_slice %630 {offsets = [0, 8], sizes = [8, 8], strides = [1, 1]} : vector<8x16xf32> to vector<8x8xf32>
    %633 = math.tanh %632 : vector<8x8xf32>
    %cst_321 = arith.constant 4.000000e+00 : f32
    %634 = vector.broadcast %cst_321 : f32 to vector<8x8xf32>
    %635 = arith.mulf %633, %634 : vector<8x8xf32>
    %cst_322 = arith.constant 0.000000e+00 : f32
    %636 = vector.broadcast %cst_322 : f32 to vector<8x8xf32>
    %637 = arith.addf %635, %636 : vector<8x8xf32>
    %638 = vector.broadcast %528 : vector<8x1xf32> to vector<8x8xf32>
    %639 = arith.mulf %638, %631 : vector<8x8xf32>
    %640 = arith.addf %516, %639 : vector<8x8xf32>
    %cst_323 = arith.constant 5.000000e-01 : f32
    %641 = vector.broadcast %cst_323 : f32 to vector<8x8xf32>
    %642 = arith.mulf %641, %637 : vector<8x8xf32>
    %643 = math.exp %642 : vector<8x8xf32>
    %644 = vector.broadcast %529 : vector<8x1xf32> to vector<8x8xf32>
    %645 = arith.mulf %644, %643 : vector<8x8xf32>
    %646 = arith.mulf %645, %531 : vector<8x8xf32>
    %647 = arith.addf %640, %646 : vector<8x8xf32>
    %c4_324 = arith.constant 4 : index
    %c0_325 = arith.constant 0 : index
    %c0_326 = arith.constant 0 : index
    %648 = vector.load %arg22[%c4_324, %c0_325, %c0_326] : memref<8x8x8xf32, #tpu.memory_space<vmem>>, vector<1x8x8xf32>
    %649 = vector.shape_cast %648 : vector<1x8x8xf32> to vector<8x8xf32>
    %650 = vector.shape_cast %647 : vector<8x8xf32> to vector<1x8x8xf32>
    tpu.vector_store %arg22[%c4_324, %c0_325, %c0_326], %650 {strides = array<i32>} : memref<8x8x8xf32, #tpu.memory_space<vmem>>, vector<1x8x8xf32>,
    %c4_327 = arith.constant 4 : index
    %c0_328 = arith.constant 0 : index
    %c0_329 = arith.constant 0 : index
    %651 = vector.load %arg26[%c4_327, %c0_328, %c0_329] : memref<8x8x32xf32, #tpu.memory_space<vmem>>, vector<1x8x32xf32>
    %652 = vector.shape_cast %651 : vector<1x8x32xf32> to vector<8x32xf32>
    %653 = vector.shape_cast %588 : vector<8x32xf32> to vector<1x8x32xf32>
    tpu.vector_store %arg26[%c4_327, %c0_328, %c0_329], %653 {strides = array<i32>} : memref<8x8x32xf32, #tpu.memory_space<vmem>>, vector<1x8x32xf32>,
    %c4_330 = arith.constant 4 : index
    %c0_331 = arith.constant 0 : index
    %c0_332 = arith.constant 0 : index
    %654 = vector.load %arg27[%c4_330, %c0_331, %c0_332] : memref<8x8x8xf32, #tpu.memory_space<vmem>>, vector<1x8x8xf32>
    %655 = vector.shape_cast %654 : vector<1x8x8xf32> to vector<8x8xf32>
    %656 = vector.shape_cast %637 : vector<8x8xf32> to vector<1x8x8xf32>
    tpu.vector_store %arg27[%c4_330, %c0_331, %c0_332], %656 {strides = array<i32>} : memref<8x8x8xf32, #tpu.memory_space<vmem>>, vector<1x8x8xf32>,
    %c5 = arith.constant 5 : index
    %c0_333 = arith.constant 0 : index
    %c0_334 = arith.constant 0 : index
    %657 = vector.load %arg5[%c5, %c0_333, %c0_334] : memref<8x8x8xf32, #tpu.memory_space<vmem>>, vector<1x8x8xf32>
    %658 = vector.shape_cast %657 : vector<1x8x8xf32> to vector<8x8xf32>
    %659 = vector.extract_strided_slice %658 {offsets = [0, 0], sizes = [8, 1], strides = [1, 1]} : vector<8x8xf32> to vector<8x1xf32>
    %660 = vector.extract_strided_slice %658 {offsets = [0, 1], sizes = [8, 1], strides = [1, 1]} : vector<8x8xf32> to vector<8x1xf32>
    %c5_335 = arith.constant 5 : index
    %c0_336 = arith.constant 0 : index
    %c0_337 = arith.constant 0 : index
    %661 = vector.load %arg4[%c5_335, %c0_336, %c0_337] : memref<8x8x8xf32, #tpu.memory_space<vmem>>, vector<1x8x8xf32>
    %662 = vector.shape_cast %661 : vector<1x8x8xf32> to vector<8x8xf32>
    %c5_338 = arith.constant 5 : index
    %c0_339 = arith.constant 0 : index
    %c0_340 = arith.constant 0 : index
    %663 = vector.load %arg3[%c5_338, %c0_339, %c0_340] : memref<8x8x32xf32, #tpu.memory_space<vmem>>, vector<1x8x32xf32>
    %664 = vector.shape_cast %663 : vector<1x8x32xf32> to vector<8x32xf32>
    %665 = arith.truncf %647 : vector<8x8xf32> to vector<8x8xbf16>
    %c0_341 = arith.constant 0 : index
    %c0_342 = arith.constant 0 : index
    %666 = vector.load %arg6[%c0_341, %c0_342] : memref<8x32xbf16, #tpu.memory_space<vmem>>, vector<8x32xbf16>
    %cst_343 = arith.constant dense<0.000000e+00> : vector<8x32xf32>
    %667 = tpu.matmul %665, %666, %cst_343 {dimension_numbers = #tpu.dot_dimension_numbers<[1], [0], [0], [1], [0, 0, 1, 1], [], []>} : vector<8x8xbf16>, vector<8x32xbf16>, vector<8x32xf32> -> vector<8x32xf32>
    %668 = arith.addf %667, %0 : vector<8x32xf32>
    %669 = arith.mulf %668, %668 : vector<8x32xf32>
    %670 = arith.mulf %668, %669 : vector<8x32xf32>
    %cst_344 = arith.constant 4.471500e-02 : f32
    %671 = vector.broadcast %cst_344 : f32 to vector<8x32xf32>
    %672 = arith.mulf %671, %670 : vector<8x32xf32>
    %673 = arith.addf %668, %672 : vector<8x32xf32>
    %cst_345 = arith.constant 0.797884583 : f32
    %674 = vector.broadcast %cst_345 : f32 to vector<8x32xf32>
    %675 = arith.mulf %674, %673 : vector<8x32xf32>
    %676 = math.tanh %675 : vector<8x32xf32>
    %cst_346 = arith.constant 1.000000e+00 : f32
    %677 = vector.broadcast %cst_346 : f32 to vector<8x32xf32>
    %678 = arith.addf %677, %676 : vector<8x32xf32>
    %cst_347 = arith.constant 5.000000e-01 : f32
    %679 = vector.broadcast %cst_347 : f32 to vector<8x32xf32>
    %680 = arith.mulf %679, %678 : vector<8x32xf32>
    %681 = arith.mulf %668, %680 : vector<8x32xf32>
    %682 = arith.truncf %681 : vector<8x32xf32> to vector<8x32xbf16>
    %c0_348 = arith.constant 0 : index
    %c0_349 = arith.constant 0 : index
    %683 = vector.load %arg7[%c0_348, %c0_349] : memref<32x32xbf16, #tpu.memory_space<vmem>>, vector<32x32xbf16>
    %cst_350 = arith.constant dense<0.000000e+00> : vector<8x32xf32>
    %684 = tpu.matmul %682, %683, %cst_350 {dimension_numbers = #tpu.dot_dimension_numbers<[1], [0], [0], [1], [0, 0, 1, 1], [], []>} : vector<8x32xbf16>, vector<32x32xbf16>, vector<8x32xf32> -> vector<8x32xf32>
    %c0_351 = arith.constant 0 : index
    %c0_352 = arith.constant 0 : index
    %685 = vector.load %arg8[%c0_351, %c0_352] : memref<1x32xf32, #tpu.memory_space<vmem>>, vector<1x32xf32>
    %686 = vector.broadcast %685 : vector<1x32xf32> to vector<8x32xf32>
    %687 = arith.addf %684, %686 : vector<8x32xf32>
    %688 = arith.mulf %687, %687 : vector<8x32xf32>
    %689 = arith.mulf %687, %688 : vector<8x32xf32>
    %cst_353 = arith.constant 4.471500e-02 : f32
    %690 = vector.broadcast %cst_353 : f32 to vector<8x32xf32>
    %691 = arith.mulf %690, %689 : vector<8x32xf32>
    %692 = arith.addf %687, %691 : vector<8x32xf32>
    %cst_354 = arith.constant 0.797884583 : f32
    %693 = vector.broadcast %cst_354 : f32 to vector<8x32xf32>
    %694 = arith.mulf %693, %692 : vector<8x32xf32>
    %695 = math.tanh %694 : vector<8x32xf32>
    %cst_355 = arith.constant 1.000000e+00 : f32
    %696 = vector.broadcast %cst_355 : f32 to vector<8x32xf32>
    %697 = arith.addf %696, %695 : vector<8x32xf32>
    %cst_356 = arith.constant 5.000000e-01 : f32
    %698 = vector.broadcast %cst_356 : f32 to vector<8x32xf32>
    %699 = arith.mulf %698, %697 : vector<8x32xf32>
    %700 = arith.mulf %687, %699 : vector<8x32xf32>
    %701 = arith.truncf %700 : vector<8x32xf32> to vector<8x32xbf16>
    %c0_357 = arith.constant 0 : index
    %c0_358 = arith.constant 0 : index
    %702 = vector.load %arg9[%c0_357, %c0_358] : memref<32x32xbf16, #tpu.memory_space<vmem>>, vector<32x32xbf16>
    %cst_359 = arith.constant dense<0.000000e+00> : vector<8x32xf32>
    %703 = tpu.matmul %701, %702, %cst_359 {dimension_numbers = #tpu.dot_dimension_numbers<[1], [0], [0], [1], [0, 0, 1, 1], [], []>} : vector<8x32xbf16>, vector<32x32xbf16>, vector<8x32xf32> -> vector<8x32xf32>
    %c0_360 = arith.constant 0 : index
    %c0_361 = arith.constant 0 : index
    %704 = vector.load %arg10[%c0_360, %c0_361] : memref<1x32xf32, #tpu.memory_space<vmem>>, vector<1x32xf32>
    %705 = vector.broadcast %704 : vector<1x32xf32> to vector<8x32xf32>
    %706 = arith.addf %703, %705 : vector<8x32xf32>
    %707 = arith.mulf %706, %706 : vector<8x32xf32>
    %708 = arith.mulf %706, %707 : vector<8x32xf32>
    %cst_362 = arith.constant 4.471500e-02 : f32
    %709 = vector.broadcast %cst_362 : f32 to vector<8x32xf32>
    %710 = arith.mulf %709, %708 : vector<8x32xf32>
    %711 = arith.addf %706, %710 : vector<8x32xf32>
    %cst_363 = arith.constant 0.797884583 : f32
    %712 = vector.broadcast %cst_363 : f32 to vector<8x32xf32>
    %713 = arith.mulf %712, %711 : vector<8x32xf32>
    %714 = math.tanh %713 : vector<8x32xf32>
    %cst_364 = arith.constant 1.000000e+00 : f32
    %715 = vector.broadcast %cst_364 : f32 to vector<8x32xf32>
    %716 = arith.addf %715, %714 : vector<8x32xf32>
    %cst_365 = arith.constant 5.000000e-01 : f32
    %717 = vector.broadcast %cst_365 : f32 to vector<8x32xf32>
    %718 = arith.mulf %717, %716 : vector<8x32xf32>
    %719 = arith.mulf %706, %718 : vector<8x32xf32>
    %720 = arith.truncf %719 : vector<8x32xf32> to vector<8x32xbf16>
    %c0_366 = arith.constant 0 : index
    %c0_367 = arith.constant 0 : index
    %721 = vector.load %arg11[%c0_366, %c0_367] : memref<32x32xbf16, #tpu.memory_space<vmem>>, vector<32x32xbf16>
    %cst_368 = arith.constant dense<0.000000e+00> : vector<8x32xf32>
    %722 = tpu.matmul %720, %721, %cst_368 {dimension_numbers = #tpu.dot_dimension_numbers<[1], [0], [0], [1], [0, 0, 1, 1], [], []>} : vector<8x32xbf16>, vector<32x32xbf16>, vector<8x32xf32> -> vector<8x32xf32>
    %723 = arith.addf %722, %664 : vector<8x32xf32>
    %724 = arith.mulf %723, %723 : vector<8x32xf32>
    %725 = arith.mulf %723, %724 : vector<8x32xf32>
    %cst_369 = arith.constant 4.471500e-02 : f32
    %726 = vector.broadcast %cst_369 : f32 to vector<8x32xf32>
    %727 = arith.mulf %726, %725 : vector<8x32xf32>
    %728 = arith.addf %723, %727 : vector<8x32xf32>
    %cst_370 = arith.constant 0.797884583 : f32
    %729 = vector.broadcast %cst_370 : f32 to vector<8x32xf32>
    %730 = arith.mulf %729, %728 : vector<8x32xf32>
    %731 = math.tanh %730 : vector<8x32xf32>
    %cst_371 = arith.constant 1.000000e+00 : f32
    %732 = vector.broadcast %cst_371 : f32 to vector<8x32xf32>
    %733 = arith.addf %732, %731 : vector<8x32xf32>
    %cst_372 = arith.constant 5.000000e-01 : f32
    %734 = vector.broadcast %cst_372 : f32 to vector<8x32xf32>
    %735 = arith.mulf %734, %733 : vector<8x32xf32>
    %736 = arith.mulf %723, %735 : vector<8x32xf32>
    %737 = arith.truncf %736 : vector<8x32xf32> to vector<8x32xbf16>
    %c0_373 = arith.constant 0 : index
    %c0_374 = arith.constant 0 : index
    %738 = vector.load %arg12[%c0_373, %c0_374] : memref<32x32xbf16, #tpu.memory_space<vmem>>, vector<32x32xbf16>
    %cst_375 = arith.constant dense<0.000000e+00> : vector<8x32xf32>
    %739 = tpu.matmul %737, %738, %cst_375 {dimension_numbers = #tpu.dot_dimension_numbers<[1], [0], [0], [1], [0, 0, 1, 1], [], []>} : vector<8x32xbf16>, vector<32x32xbf16>, vector<8x32xf32> -> vector<8x32xf32>
    %c0_376 = arith.constant 0 : index
    %c0_377 = arith.constant 0 : index
    %740 = vector.load %arg13[%c0_376, %c0_377] : memref<1x32xf32, #tpu.memory_space<vmem>>, vector<1x32xf32>
    %741 = vector.broadcast %740 : vector<1x32xf32> to vector<8x32xf32>
    %742 = arith.addf %739, %741 : vector<8x32xf32>
    %743 = arith.mulf %742, %742 : vector<8x32xf32>
    %744 = arith.mulf %742, %743 : vector<8x32xf32>
    %cst_378 = arith.constant 4.471500e-02 : f32
    %745 = vector.broadcast %cst_378 : f32 to vector<8x32xf32>
    %746 = arith.mulf %745, %744 : vector<8x32xf32>
    %747 = arith.addf %742, %746 : vector<8x32xf32>
    %cst_379 = arith.constant 0.797884583 : f32
    %748 = vector.broadcast %cst_379 : f32 to vector<8x32xf32>
    %749 = arith.mulf %748, %747 : vector<8x32xf32>
    %750 = math.tanh %749 : vector<8x32xf32>
    %cst_380 = arith.constant 1.000000e+00 : f32
    %751 = vector.broadcast %cst_380 : f32 to vector<8x32xf32>
    %752 = arith.addf %751, %750 : vector<8x32xf32>
    %cst_381 = arith.constant 5.000000e-01 : f32
    %753 = vector.broadcast %cst_381 : f32 to vector<8x32xf32>
    %754 = arith.mulf %753, %752 : vector<8x32xf32>
    %755 = arith.mulf %742, %754 : vector<8x32xf32>
    %756 = arith.truncf %755 : vector<8x32xf32> to vector<8x32xbf16>
    %c0_382 = arith.constant 0 : index
    %c0_383 = arith.constant 0 : index
    %757 = vector.load %arg14[%c0_382, %c0_383] : memref<32x16xbf16, #tpu.memory_space<vmem>>, vector<32x16xbf16>
    %cst_384 = arith.constant dense<0.000000e+00> : vector<8x16xf32>
    %758 = tpu.matmul %756, %757, %cst_384 {dimension_numbers = #tpu.dot_dimension_numbers<[1], [0], [0], [1], [0, 0, 1, 1], [], []>} : vector<8x32xbf16>, vector<32x16xbf16>, vector<8x16xf32> -> vector<8x16xf32>
    %c0_385 = arith.constant 0 : index
    %c0_386 = arith.constant 0 : index
    %759 = vector.load %arg15[%c0_385, %c0_386] : memref<1x16xf32, #tpu.memory_space<vmem>>, vector<1x16xf32>
    %760 = vector.broadcast %759 : vector<1x16xf32> to vector<8x16xf32>
    %761 = arith.addf %758, %760 : vector<8x16xf32>
    %762 = vector.extract_strided_slice %761 {offsets = [0, 0], sizes = [8, 8], strides = [1, 1]} : vector<8x16xf32> to vector<8x8xf32>
    %763 = vector.extract_strided_slice %761 {offsets = [0, 8], sizes = [8, 8], strides = [1, 1]} : vector<8x16xf32> to vector<8x8xf32>
    %764 = math.tanh %763 : vector<8x8xf32>
    %cst_387 = arith.constant 4.000000e+00 : f32
    %765 = vector.broadcast %cst_387 : f32 to vector<8x8xf32>
    %766 = arith.mulf %764, %765 : vector<8x8xf32>
    %cst_388 = arith.constant 0.000000e+00 : f32
    %767 = vector.broadcast %cst_388 : f32 to vector<8x8xf32>
    %768 = arith.addf %766, %767 : vector<8x8xf32>
    %769 = vector.broadcast %659 : vector<8x1xf32> to vector<8x8xf32>
    %770 = arith.mulf %769, %762 : vector<8x8xf32>
    %771 = arith.addf %647, %770 : vector<8x8xf32>
    %cst_389 = arith.constant 5.000000e-01 : f32
    %772 = vector.broadcast %cst_389 : f32 to vector<8x8xf32>
    %773 = arith.mulf %772, %768 : vector<8x8xf32>
    %774 = math.exp %773 : vector<8x8xf32>
    %775 = vector.broadcast %660 : vector<8x1xf32> to vector<8x8xf32>
    %776 = arith.mulf %775, %774 : vector<8x8xf32>
    %777 = arith.mulf %776, %662 : vector<8x8xf32>
    %778 = arith.addf %771, %777 : vector<8x8xf32>
    %c5_390 = arith.constant 5 : index
    %c0_391 = arith.constant 0 : index
    %c0_392 = arith.constant 0 : index
    %779 = vector.load %arg22[%c5_390, %c0_391, %c0_392] : memref<8x8x8xf32, #tpu.memory_space<vmem>>, vector<1x8x8xf32>
    %780 = vector.shape_cast %779 : vector<1x8x8xf32> to vector<8x8xf32>
    %781 = vector.shape_cast %778 : vector<8x8xf32> to vector<1x8x8xf32>
    tpu.vector_store %arg22[%c5_390, %c0_391, %c0_392], %781 {strides = array<i32>} : memref<8x8x8xf32, #tpu.memory_space<vmem>>, vector<1x8x8xf32>,
    %c5_393 = arith.constant 5 : index
    %c0_394 = arith.constant 0 : index
    %c0_395 = arith.constant 0 : index
    %782 = vector.load %arg26[%c5_393, %c0_394, %c0_395] : memref<8x8x32xf32, #tpu.memory_space<vmem>>, vector<1x8x32xf32>
    %783 = vector.shape_cast %782 : vector<1x8x32xf32> to vector<8x32xf32>
    %784 = vector.shape_cast %719 : vector<8x32xf32> to vector<1x8x32xf32>
    tpu.vector_store %arg26[%c5_393, %c0_394, %c0_395], %784 {strides = array<i32>} : memref<8x8x32xf32, #tpu.memory_space<vmem>>, vector<1x8x32xf32>,
    %c5_396 = arith.constant 5 : index
    %c0_397 = arith.constant 0 : index
    %c0_398 = arith.constant 0 : index
    %785 = vector.load %arg27[%c5_396, %c0_397, %c0_398] : memref<8x8x8xf32, #tpu.memory_space<vmem>>, vector<1x8x8xf32>
    %786 = vector.shape_cast %785 : vector<1x8x8xf32> to vector<8x8xf32>
    %787 = vector.shape_cast %768 : vector<8x8xf32> to vector<1x8x8xf32>
    tpu.vector_store %arg27[%c5_396, %c0_397, %c0_398], %787 {strides = array<i32>} : memref<8x8x8xf32, #tpu.memory_space<vmem>>, vector<1x8x8xf32>,
    %c6 = arith.constant 6 : index
    %c0_399 = arith.constant 0 : index
    %c0_400 = arith.constant 0 : index
    %788 = vector.load %arg5[%c6, %c0_399, %c0_400] : memref<8x8x8xf32, #tpu.memory_space<vmem>>, vector<1x8x8xf32>
    %789 = vector.shape_cast %788 : vector<1x8x8xf32> to vector<8x8xf32>
    %790 = vector.extract_strided_slice %789 {offsets = [0, 0], sizes = [8, 1], strides = [1, 1]} : vector<8x8xf32> to vector<8x1xf32>
    %791 = vector.extract_strided_slice %789 {offsets = [0, 1], sizes = [8, 1], strides = [1, 1]} : vector<8x8xf32> to vector<8x1xf32>
    %c6_401 = arith.constant 6 : index
    %c0_402 = arith.constant 0 : index
    %c0_403 = arith.constant 0 : index
    %792 = vector.load %arg4[%c6_401, %c0_402, %c0_403] : memref<8x8x8xf32, #tpu.memory_space<vmem>>, vector<1x8x8xf32>
    %793 = vector.shape_cast %792 : vector<1x8x8xf32> to vector<8x8xf32>
    %c6_404 = arith.constant 6 : index
    %c0_405 = arith.constant 0 : index
    %c0_406 = arith.constant 0 : index
    %794 = vector.load %arg3[%c6_404, %c0_405, %c0_406] : memref<8x8x32xf32, #tpu.memory_space<vmem>>, vector<1x8x32xf32>
    %795 = vector.shape_cast %794 : vector<1x8x32xf32> to vector<8x32xf32>
    %796 = arith.truncf %778 : vector<8x8xf32> to vector<8x8xbf16>
    %c0_407 = arith.constant 0 : index
    %c0_408 = arith.constant 0 : index
    %797 = vector.load %arg6[%c0_407, %c0_408] : memref<8x32xbf16, #tpu.memory_space<vmem>>, vector<8x32xbf16>
    %cst_409 = arith.constant dense<0.000000e+00> : vector<8x32xf32>
    %798 = tpu.matmul %796, %797, %cst_409 {dimension_numbers = #tpu.dot_dimension_numbers<[1], [0], [0], [1], [0, 0, 1, 1], [], []>} : vector<8x8xbf16>, vector<8x32xbf16>, vector<8x32xf32> -> vector<8x32xf32>
    %799 = arith.addf %798, %0 : vector<8x32xf32>
    %800 = arith.mulf %799, %799 : vector<8x32xf32>
    %801 = arith.mulf %799, %800 : vector<8x32xf32>
    %cst_410 = arith.constant 4.471500e-02 : f32
    %802 = vector.broadcast %cst_410 : f32 to vector<8x32xf32>
    %803 = arith.mulf %802, %801 : vector<8x32xf32>
    %804 = arith.addf %799, %803 : vector<8x32xf32>
    %cst_411 = arith.constant 0.797884583 : f32
    %805 = vector.broadcast %cst_411 : f32 to vector<8x32xf32>
    %806 = arith.mulf %805, %804 : vector<8x32xf32>
    %807 = math.tanh %806 : vector<8x32xf32>
    %cst_412 = arith.constant 1.000000e+00 : f32
    %808 = vector.broadcast %cst_412 : f32 to vector<8x32xf32>
    %809 = arith.addf %808, %807 : vector<8x32xf32>
    %cst_413 = arith.constant 5.000000e-01 : f32
    %810 = vector.broadcast %cst_413 : f32 to vector<8x32xf32>
    %811 = arith.mulf %810, %809 : vector<8x32xf32>
    %812 = arith.mulf %799, %811 : vector<8x32xf32>
    %813 = arith.truncf %812 : vector<8x32xf32> to vector<8x32xbf16>
    %c0_414 = arith.constant 0 : index
    %c0_415 = arith.constant 0 : index
    %814 = vector.load %arg7[%c0_414, %c0_415] : memref<32x32xbf16, #tpu.memory_space<vmem>>, vector<32x32xbf16>
    %cst_416 = arith.constant dense<0.000000e+00> : vector<8x32xf32>
    %815 = tpu.matmul %813, %814, %cst_416 {dimension_numbers = #tpu.dot_dimension_numbers<[1], [0], [0], [1], [0, 0, 1, 1], [], []>} : vector<8x32xbf16>, vector<32x32xbf16>, vector<8x32xf32> -> vector<8x32xf32>
    %c0_417 = arith.constant 0 : index
    %c0_418 = arith.constant 0 : index
    %816 = vector.load %arg8[%c0_417, %c0_418] : memref<1x32xf32, #tpu.memory_space<vmem>>, vector<1x32xf32>
    %817 = vector.broadcast %816 : vector<1x32xf32> to vector<8x32xf32>
    %818 = arith.addf %815, %817 : vector<8x32xf32>
    %819 = arith.mulf %818, %818 : vector<8x32xf32>
    %820 = arith.mulf %818, %819 : vector<8x32xf32>
    %cst_419 = arith.constant 4.471500e-02 : f32
    %821 = vector.broadcast %cst_419 : f32 to vector<8x32xf32>
    %822 = arith.mulf %821, %820 : vector<8x32xf32>
    %823 = arith.addf %818, %822 : vector<8x32xf32>
    %cst_420 = arith.constant 0.797884583 : f32
    %824 = vector.broadcast %cst_420 : f32 to vector<8x32xf32>
    %825 = arith.mulf %824, %823 : vector<8x32xf32>
    %826 = math.tanh %825 : vector<8x32xf32>
    %cst_421 = arith.constant 1.000000e+00 : f32
    %827 = vector.broadcast %cst_421 : f32 to vector<8x32xf32>
    %828 = arith.addf %827, %826 : vector<8x32xf32>
    %cst_422 = arith.constant 5.000000e-01 : f32
    %829 = vector.broadcast %cst_422 : f32 to vector<8x32xf32>
    %830 = arith.mulf %829, %828 : vector<8x32xf32>
    %831 = arith.mulf %818, %830 : vector<8x32xf32>
    %832 = arith.truncf %831 : vector<8x32xf32> to vector<8x32xbf16>
    %c0_423 = arith.constant 0 : index
    %c0_424 = arith.constant 0 : index
    %833 = vector.load %arg9[%c0_423, %c0_424] : memref<32x32xbf16, #tpu.memory_space<vmem>>, vector<32x32xbf16>
    %cst_425 = arith.constant dense<0.000000e+00> : vector<8x32xf32>
    %834 = tpu.matmul %832, %833, %cst_425 {dimension_numbers = #tpu.dot_dimension_numbers<[1], [0], [0], [1], [0, 0, 1, 1], [], []>} : vector<8x32xbf16>, vector<32x32xbf16>, vector<8x32xf32> -> vector<8x32xf32>
    %c0_426 = arith.constant 0 : index
    %c0_427 = arith.constant 0 : index
    %835 = vector.load %arg10[%c0_426, %c0_427] : memref<1x32xf32, #tpu.memory_space<vmem>>, vector<1x32xf32>
    %836 = vector.broadcast %835 : vector<1x32xf32> to vector<8x32xf32>
    %837 = arith.addf %834, %836 : vector<8x32xf32>
    %838 = arith.mulf %837, %837 : vector<8x32xf32>
    %839 = arith.mulf %837, %838 : vector<8x32xf32>
    %cst_428 = arith.constant 4.471500e-02 : f32
    %840 = vector.broadcast %cst_428 : f32 to vector<8x32xf32>
    %841 = arith.mulf %840, %839 : vector<8x32xf32>
    %842 = arith.addf %837, %841 : vector<8x32xf32>
    %cst_429 = arith.constant 0.797884583 : f32
    %843 = vector.broadcast %cst_429 : f32 to vector<8x32xf32>
    %844 = arith.mulf %843, %842 : vector<8x32xf32>
    %845 = math.tanh %844 : vector<8x32xf32>
    %cst_430 = arith.constant 1.000000e+00 : f32
    %846 = vector.broadcast %cst_430 : f32 to vector<8x32xf32>
    %847 = arith.addf %846, %845 : vector<8x32xf32>
    %cst_431 = arith.constant 5.000000e-01 : f32
    %848 = vector.broadcast %cst_431 : f32 to vector<8x32xf32>
    %849 = arith.mulf %848, %847 : vector<8x32xf32>
    %850 = arith.mulf %837, %849 : vector<8x32xf32>
    %851 = arith.truncf %850 : vector<8x32xf32> to vector<8x32xbf16>
    %c0_432 = arith.constant 0 : index
    %c0_433 = arith.constant 0 : index
    %852 = vector.load %arg11[%c0_432, %c0_433] : memref<32x32xbf16, #tpu.memory_space<vmem>>, vector<32x32xbf16>
    %cst_434 = arith.constant dense<0.000000e+00> : vector<8x32xf32>
    %853 = tpu.matmul %851, %852, %cst_434 {dimension_numbers = #tpu.dot_dimension_numbers<[1], [0], [0], [1], [0, 0, 1, 1], [], []>} : vector<8x32xbf16>, vector<32x32xbf16>, vector<8x32xf32> -> vector<8x32xf32>
    %854 = arith.addf %853, %795 : vector<8x32xf32>
    %855 = arith.mulf %854, %854 : vector<8x32xf32>
    %856 = arith.mulf %854, %855 : vector<8x32xf32>
    %cst_435 = arith.constant 4.471500e-02 : f32
    %857 = vector.broadcast %cst_435 : f32 to vector<8x32xf32>
    %858 = arith.mulf %857, %856 : vector<8x32xf32>
    %859 = arith.addf %854, %858 : vector<8x32xf32>
    %cst_436 = arith.constant 0.797884583 : f32
    %860 = vector.broadcast %cst_436 : f32 to vector<8x32xf32>
    %861 = arith.mulf %860, %859 : vector<8x32xf32>
    %862 = math.tanh %861 : vector<8x32xf32>
    %cst_437 = arith.constant 1.000000e+00 : f32
    %863 = vector.broadcast %cst_437 : f32 to vector<8x32xf32>
    %864 = arith.addf %863, %862 : vector<8x32xf32>
    %cst_438 = arith.constant 5.000000e-01 : f32
    %865 = vector.broadcast %cst_438 : f32 to vector<8x32xf32>
    %866 = arith.mulf %865, %864 : vector<8x32xf32>
    %867 = arith.mulf %854, %866 : vector<8x32xf32>
    %868 = arith.truncf %867 : vector<8x32xf32> to vector<8x32xbf16>
    %c0_439 = arith.constant 0 : index
    %c0_440 = arith.constant 0 : index
    %869 = vector.load %arg12[%c0_439, %c0_440] : memref<32x32xbf16, #tpu.memory_space<vmem>>, vector<32x32xbf16>
    %cst_441 = arith.constant dense<0.000000e+00> : vector<8x32xf32>
    %870 = tpu.matmul %868, %869, %cst_441 {dimension_numbers = #tpu.dot_dimension_numbers<[1], [0], [0], [1], [0, 0, 1, 1], [], []>} : vector<8x32xbf16>, vector<32x32xbf16>, vector<8x32xf32> -> vector<8x32xf32>
    %c0_442 = arith.constant 0 : index
    %c0_443 = arith.constant 0 : index
    %871 = vector.load %arg13[%c0_442, %c0_443] : memref<1x32xf32, #tpu.memory_space<vmem>>, vector<1x32xf32>
    %872 = vector.broadcast %871 : vector<1x32xf32> to vector<8x32xf32>
    %873 = arith.addf %870, %872 : vector<8x32xf32>
    %874 = arith.mulf %873, %873 : vector<8x32xf32>
    %875 = arith.mulf %873, %874 : vector<8x32xf32>
    %cst_444 = arith.constant 4.471500e-02 : f32
    %876 = vector.broadcast %cst_444 : f32 to vector<8x32xf32>
    %877 = arith.mulf %876, %875 : vector<8x32xf32>
    %878 = arith.addf %873, %877 : vector<8x32xf32>
    %cst_445 = arith.constant 0.797884583 : f32
    %879 = vector.broadcast %cst_445 : f32 to vector<8x32xf32>
    %880 = arith.mulf %879, %878 : vector<8x32xf32>
    %881 = math.tanh %880 : vector<8x32xf32>
    %cst_446 = arith.constant 1.000000e+00 : f32
    %882 = vector.broadcast %cst_446 : f32 to vector<8x32xf32>
    %883 = arith.addf %882, %881 : vector<8x32xf32>
    %cst_447 = arith.constant 5.000000e-01 : f32
    %884 = vector.broadcast %cst_447 : f32 to vector<8x32xf32>
    %885 = arith.mulf %884, %883 : vector<8x32xf32>
    %886 = arith.mulf %873, %885 : vector<8x32xf32>
    %887 = arith.truncf %886 : vector<8x32xf32> to vector<8x32xbf16>
    %c0_448 = arith.constant 0 : index
    %c0_449 = arith.constant 0 : index
    %888 = vector.load %arg14[%c0_448, %c0_449] : memref<32x16xbf16, #tpu.memory_space<vmem>>, vector<32x16xbf16>
    %cst_450 = arith.constant dense<0.000000e+00> : vector<8x16xf32>
    %889 = tpu.matmul %887, %888, %cst_450 {dimension_numbers = #tpu.dot_dimension_numbers<[1], [0], [0], [1], [0, 0, 1, 1], [], []>} : vector<8x32xbf16>, vector<32x16xbf16>, vector<8x16xf32> -> vector<8x16xf32>
    %c0_451 = arith.constant 0 : index
    %c0_452 = arith.constant 0 : index
    %890 = vector.load %arg15[%c0_451, %c0_452] : memref<1x16xf32, #tpu.memory_space<vmem>>, vector<1x16xf32>
    %891 = vector.broadcast %890 : vector<1x16xf32> to vector<8x16xf32>
    %892 = arith.addf %889, %891 : vector<8x16xf32>
    %893 = vector.extract_strided_slice %892 {offsets = [0, 0], sizes = [8, 8], strides = [1, 1]} : vector<8x16xf32> to vector<8x8xf32>
    %894 = vector.extract_strided_slice %892 {offsets = [0, 8], sizes = [8, 8], strides = [1, 1]} : vector<8x16xf32> to vector<8x8xf32>
    %895 = math.tanh %894 : vector<8x8xf32>
    %cst_453 = arith.constant 4.000000e+00 : f32
    %896 = vector.broadcast %cst_453 : f32 to vector<8x8xf32>
    %897 = arith.mulf %895, %896 : vector<8x8xf32>
    %cst_454 = arith.constant 0.000000e+00 : f32
    %898 = vector.broadcast %cst_454 : f32 to vector<8x8xf32>
    %899 = arith.addf %897, %898 : vector<8x8xf32>
    %900 = vector.broadcast %790 : vector<8x1xf32> to vector<8x8xf32>
    %901 = arith.mulf %900, %893 : vector<8x8xf32>
    %902 = arith.addf %778, %901 : vector<8x8xf32>
    %cst_455 = arith.constant 5.000000e-01 : f32
    %903 = vector.broadcast %cst_455 : f32 to vector<8x8xf32>
    %904 = arith.mulf %903, %899 : vector<8x8xf32>
    %905 = math.exp %904 : vector<8x8xf32>
    %906 = vector.broadcast %791 : vector<8x1xf32> to vector<8x8xf32>
    %907 = arith.mulf %906, %905 : vector<8x8xf32>
    %908 = arith.mulf %907, %793 : vector<8x8xf32>
    %909 = arith.addf %902, %908 : vector<8x8xf32>
    %c6_456 = arith.constant 6 : index
    %c0_457 = arith.constant 0 : index
    %c0_458 = arith.constant 0 : index
    %910 = vector.load %arg22[%c6_456, %c0_457, %c0_458] : memref<8x8x8xf32, #tpu.memory_space<vmem>>, vector<1x8x8xf32>
    %911 = vector.shape_cast %910 : vector<1x8x8xf32> to vector<8x8xf32>
    %912 = vector.shape_cast %909 : vector<8x8xf32> to vector<1x8x8xf32>
    tpu.vector_store %arg22[%c6_456, %c0_457, %c0_458], %912 {strides = array<i32>} : memref<8x8x8xf32, #tpu.memory_space<vmem>>, vector<1x8x8xf32>,
    %c6_459 = arith.constant 6 : index
    %c0_460 = arith.constant 0 : index
    %c0_461 = arith.constant 0 : index
    %913 = vector.load %arg26[%c6_459, %c0_460, %c0_461] : memref<8x8x32xf32, #tpu.memory_space<vmem>>, vector<1x8x32xf32>
    %914 = vector.shape_cast %913 : vector<1x8x32xf32> to vector<8x32xf32>
    %915 = vector.shape_cast %850 : vector<8x32xf32> to vector<1x8x32xf32>
    tpu.vector_store %arg26[%c6_459, %c0_460, %c0_461], %915 {strides = array<i32>} : memref<8x8x32xf32, #tpu.memory_space<vmem>>, vector<1x8x32xf32>,
    %c6_462 = arith.constant 6 : index
    %c0_463 = arith.constant 0 : index
    %c0_464 = arith.constant 0 : index
    %916 = vector.load %arg27[%c6_462, %c0_463, %c0_464] : memref<8x8x8xf32, #tpu.memory_space<vmem>>, vector<1x8x8xf32>
    %917 = vector.shape_cast %916 : vector<1x8x8xf32> to vector<8x8xf32>
    %918 = vector.shape_cast %899 : vector<8x8xf32> to vector<1x8x8xf32>
    tpu.vector_store %arg27[%c6_462, %c0_463, %c0_464], %918 {strides = array<i32>} : memref<8x8x8xf32, #tpu.memory_space<vmem>>, vector<1x8x8xf32>,
    %c7 = arith.constant 7 : index
    %c0_465 = arith.constant 0 : index
    %c0_466 = arith.constant 0 : index
    %919 = vector.load %arg5[%c7, %c0_465, %c0_466] : memref<8x8x8xf32, #tpu.memory_space<vmem>>, vector<1x8x8xf32>
    %920 = vector.shape_cast %919 : vector<1x8x8xf32> to vector<8x8xf32>
    %921 = vector.extract_strided_slice %920 {offsets = [0, 0], sizes = [8, 1], strides = [1, 1]} : vector<8x8xf32> to vector<8x1xf32>
    %922 = vector.extract_strided_slice %920 {offsets = [0, 1], sizes = [8, 1], strides = [1, 1]} : vector<8x8xf32> to vector<8x1xf32>
    %c7_467 = arith.constant 7 : index
    %c0_468 = arith.constant 0 : index
    %c0_469 = arith.constant 0 : index
    %923 = vector.load %arg4[%c7_467, %c0_468, %c0_469] : memref<8x8x8xf32, #tpu.memory_space<vmem>>, vector<1x8x8xf32>
    %924 = vector.shape_cast %923 : vector<1x8x8xf32> to vector<8x8xf32>
    %c7_470 = arith.constant 7 : index
    %c0_471 = arith.constant 0 : index
    %c0_472 = arith.constant 0 : index
    %925 = vector.load %arg3[%c7_470, %c0_471, %c0_472] : memref<8x8x32xf32, #tpu.memory_space<vmem>>, vector<1x8x32xf32>
    %926 = vector.shape_cast %925 : vector<1x8x32xf32> to vector<8x32xf32>
    %927 = arith.truncf %909 : vector<8x8xf32> to vector<8x8xbf16>
    %c0_473 = arith.constant 0 : index
    %c0_474 = arith.constant 0 : index
    %928 = vector.load %arg6[%c0_473, %c0_474] : memref<8x32xbf16, #tpu.memory_space<vmem>>, vector<8x32xbf16>
    %cst_475 = arith.constant dense<0.000000e+00> : vector<8x32xf32>
    %929 = tpu.matmul %927, %928, %cst_475 {dimension_numbers = #tpu.dot_dimension_numbers<[1], [0], [0], [1], [0, 0, 1, 1], [], []>} : vector<8x8xbf16>, vector<8x32xbf16>, vector<8x32xf32> -> vector<8x32xf32>
    %930 = arith.addf %929, %0 : vector<8x32xf32>
    %931 = arith.mulf %930, %930 : vector<8x32xf32>
    %932 = arith.mulf %930, %931 : vector<8x32xf32>
    %cst_476 = arith.constant 4.471500e-02 : f32
    %933 = vector.broadcast %cst_476 : f32 to vector<8x32xf32>
    %934 = arith.mulf %933, %932 : vector<8x32xf32>
    %935 = arith.addf %930, %934 : vector<8x32xf32>
    %cst_477 = arith.constant 0.797884583 : f32
    %936 = vector.broadcast %cst_477 : f32 to vector<8x32xf32>
    %937 = arith.mulf %936, %935 : vector<8x32xf32>
    %938 = math.tanh %937 : vector<8x32xf32>
    %cst_478 = arith.constant 1.000000e+00 : f32
    %939 = vector.broadcast %cst_478 : f32 to vector<8x32xf32>
    %940 = arith.addf %939, %938 : vector<8x32xf32>
    %cst_479 = arith.constant 5.000000e-01 : f32
    %941 = vector.broadcast %cst_479 : f32 to vector<8x32xf32>
    %942 = arith.mulf %941, %940 : vector<8x32xf32>
    %943 = arith.mulf %930, %942 : vector<8x32xf32>
    %944 = arith.truncf %943 : vector<8x32xf32> to vector<8x32xbf16>
    %c0_480 = arith.constant 0 : index
    %c0_481 = arith.constant 0 : index
    %945 = vector.load %arg7[%c0_480, %c0_481] : memref<32x32xbf16, #tpu.memory_space<vmem>>, vector<32x32xbf16>
    %cst_482 = arith.constant dense<0.000000e+00> : vector<8x32xf32>
    %946 = tpu.matmul %944, %945, %cst_482 {dimension_numbers = #tpu.dot_dimension_numbers<[1], [0], [0], [1], [0, 0, 1, 1], [], []>} : vector<8x32xbf16>, vector<32x32xbf16>, vector<8x32xf32> -> vector<8x32xf32>
    %c0_483 = arith.constant 0 : index
    %c0_484 = arith.constant 0 : index
    %947 = vector.load %arg8[%c0_483, %c0_484] : memref<1x32xf32, #tpu.memory_space<vmem>>, vector<1x32xf32>
    %948 = vector.broadcast %947 : vector<1x32xf32> to vector<8x32xf32>
    %949 = arith.addf %946, %948 : vector<8x32xf32>
    %950 = arith.mulf %949, %949 : vector<8x32xf32>
    %951 = arith.mulf %949, %950 : vector<8x32xf32>
    %cst_485 = arith.constant 4.471500e-02 : f32
    %952 = vector.broadcast %cst_485 : f32 to vector<8x32xf32>
    %953 = arith.mulf %952, %951 : vector<8x32xf32>
    %954 = arith.addf %949, %953 : vector<8x32xf32>
    %cst_486 = arith.constant 0.797884583 : f32
    %955 = vector.broadcast %cst_486 : f32 to vector<8x32xf32>
    %956 = arith.mulf %955, %954 : vector<8x32xf32>
    %957 = math.tanh %956 : vector<8x32xf32>
    %cst_487 = arith.constant 1.000000e+00 : f32
    %958 = vector.broadcast %cst_487 : f32 to vector<8x32xf32>
    %959 = arith.addf %958, %957 : vector<8x32xf32>
    %cst_488 = arith.constant 5.000000e-01 : f32
    %960 = vector.broadcast %cst_488 : f32 to vector<8x32xf32>
    %961 = arith.mulf %960, %959 : vector<8x32xf32>
    %962 = arith.mulf %949, %961 : vector<8x32xf32>
    %963 = arith.truncf %962 : vector<8x32xf32> to vector<8x32xbf16>
    %c0_489 = arith.constant 0 : index
    %c0_490 = arith.constant 0 : index
    %964 = vector.load %arg9[%c0_489, %c0_490] : memref<32x32xbf16, #tpu.memory_space<vmem>>, vector<32x32xbf16>
    %cst_491 = arith.constant dense<0.000000e+00> : vector<8x32xf32>
    %965 = tpu.matmul %963, %964, %cst_491 {dimension_numbers = #tpu.dot_dimension_numbers<[1], [0], [0], [1], [0, 0, 1, 1], [], []>} : vector<8x32xbf16>, vector<32x32xbf16>, vector<8x32xf32> -> vector<8x32xf32>
    %c0_492 = arith.constant 0 : index
    %c0_493 = arith.constant 0 : index
    %966 = vector.load %arg10[%c0_492, %c0_493] : memref<1x32xf32, #tpu.memory_space<vmem>>, vector<1x32xf32>
    %967 = vector.broadcast %966 : vector<1x32xf32> to vector<8x32xf32>
    %968 = arith.addf %965, %967 : vector<8x32xf32>
    %969 = arith.mulf %968, %968 : vector<8x32xf32>
    %970 = arith.mulf %968, %969 : vector<8x32xf32>
    %cst_494 = arith.constant 4.471500e-02 : f32
    %971 = vector.broadcast %cst_494 : f32 to vector<8x32xf32>
    %972 = arith.mulf %971, %970 : vector<8x32xf32>
    %973 = arith.addf %968, %972 : vector<8x32xf32>
    %cst_495 = arith.constant 0.797884583 : f32
    %974 = vector.broadcast %cst_495 : f32 to vector<8x32xf32>
    %975 = arith.mulf %974, %973 : vector<8x32xf32>
    %976 = math.tanh %975 : vector<8x32xf32>
    %cst_496 = arith.constant 1.000000e+00 : f32
    %977 = vector.broadcast %cst_496 : f32 to vector<8x32xf32>
    %978 = arith.addf %977, %976 : vector<8x32xf32>
    %cst_497 = arith.constant 5.000000e-01 : f32
    %979 = vector.broadcast %cst_497 : f32 to vector<8x32xf32>
    %980 = arith.mulf %979, %978 : vector<8x32xf32>
    %981 = arith.mulf %968, %980 : vector<8x32xf32>
    %982 = arith.truncf %981 : vector<8x32xf32> to vector<8x32xbf16>
    %c0_498 = arith.constant 0 : index
    %c0_499 = arith.constant 0 : index
    %983 = vector.load %arg11[%c0_498, %c0_499] : memref<32x32xbf16, #tpu.memory_space<vmem>>, vector<32x32xbf16>
    %cst_500 = arith.constant dense<0.000000e+00> : vector<8x32xf32>
    %984 = tpu.matmul %982, %983, %cst_500 {dimension_numbers = #tpu.dot_dimension_numbers<[1], [0], [0], [1], [0, 0, 1, 1], [], []>} : vector<8x32xbf16>, vector<32x32xbf16>, vector<8x32xf32> -> vector<8x32xf32>
    %985 = arith.addf %984, %926 : vector<8x32xf32>
    %986 = arith.mulf %985, %985 : vector<8x32xf32>
    %987 = arith.mulf %985, %986 : vector<8x32xf32>
    %cst_501 = arith.constant 4.471500e-02 : f32
    %988 = vector.broadcast %cst_501 : f32 to vector<8x32xf32>
    %989 = arith.mulf %988, %987 : vector<8x32xf32>
    %990 = arith.addf %985, %989 : vector<8x32xf32>
    %cst_502 = arith.constant 0.797884583 : f32
    %991 = vector.broadcast %cst_502 : f32 to vector<8x32xf32>
    %992 = arith.mulf %991, %990 : vector<8x32xf32>
    %993 = math.tanh %992 : vector<8x32xf32>
    %cst_503 = arith.constant 1.000000e+00 : f32
    %994 = vector.broadcast %cst_503 : f32 to vector<8x32xf32>
    %995 = arith.addf %994, %993 : vector<8x32xf32>
    %cst_504 = arith.constant 5.000000e-01 : f32
    %996 = vector.broadcast %cst_504 : f32 to vector<8x32xf32>
    %997 = arith.mulf %996, %995 : vector<8x32xf32>
    %998 = arith.mulf %985, %997 : vector<8x32xf32>
    %999 = arith.truncf %998 : vector<8x32xf32> to vector<8x32xbf16>
    %c0_505 = arith.constant 0 : index
    %c0_506 = arith.constant 0 : index
    %1000 = vector.load %arg12[%c0_505, %c0_506] : memref<32x32xbf16, #tpu.memory_space<vmem>>, vector<32x32xbf16>
    %cst_507 = arith.constant dense<0.000000e+00> : vector<8x32xf32>
    %1001 = tpu.matmul %999, %1000, %cst_507 {dimension_numbers = #tpu.dot_dimension_numbers<[1], [0], [0], [1], [0, 0, 1, 1], [], []>} : vector<8x32xbf16>, vector<32x32xbf16>, vector<8x32xf32> -> vector<8x32xf32>
    %c0_508 = arith.constant 0 : index
    %c0_509 = arith.constant 0 : index
    %1002 = vector.load %arg13[%c0_508, %c0_509] : memref<1x32xf32, #tpu.memory_space<vmem>>, vector<1x32xf32>
    %1003 = vector.broadcast %1002 : vector<1x32xf32> to vector<8x32xf32>
    %1004 = arith.addf %1001, %1003 : vector<8x32xf32>
    %1005 = arith.mulf %1004, %1004 : vector<8x32xf32>
    %1006 = arith.mulf %1004, %1005 : vector<8x32xf32>
    %cst_510 = arith.constant 4.471500e-02 : f32
    %1007 = vector.broadcast %cst_510 : f32 to vector<8x32xf32>
    %1008 = arith.mulf %1007, %1006 : vector<8x32xf32>
    %1009 = arith.addf %1004, %1008 : vector<8x32xf32>
    %cst_511 = arith.constant 0.797884583 : f32
    %1010 = vector.broadcast %cst_511 : f32 to vector<8x32xf32>
    %1011 = arith.mulf %1010, %1009 : vector<8x32xf32>
    %1012 = math.tanh %1011 : vector<8x32xf32>
    %cst_512 = arith.constant 1.000000e+00 : f32
    %1013 = vector.broadcast %cst_512 : f32 to vector<8x32xf32>
    %1014 = arith.addf %1013, %1012 : vector<8x32xf32>
    %cst_513 = arith.constant 5.000000e-01 : f32
    %1015 = vector.broadcast %cst_513 : f32 to vector<8x32xf32>
    %1016 = arith.mulf %1015, %1014 : vector<8x32xf32>
    %1017 = arith.mulf %1004, %1016 : vector<8x32xf32>
    %1018 = arith.truncf %1017 : vector<8x32xf32> to vector<8x32xbf16>
    %c0_514 = arith.constant 0 : index
    %c0_515 = arith.constant 0 : index
    %1019 = vector.load %arg14[%c0_514, %c0_515] : memref<32x16xbf16, #tpu.memory_space<vmem>>, vector<32x16xbf16>
    %cst_516 = arith.constant dense<0.000000e+00> : vector<8x16xf32>
    %1020 = tpu.matmul %1018, %1019, %cst_516 {dimension_numbers = #tpu.dot_dimension_numbers<[1], [0], [0], [1], [0, 0, 1, 1], [], []>} : vector<8x32xbf16>, vector<32x16xbf16>, vector<8x16xf32> -> vector<8x16xf32>
    %c0_517 = arith.constant 0 : index
    %c0_518 = arith.constant 0 : index
    %1021 = vector.load %arg15[%c0_517, %c0_518] : memref<1x16xf32, #tpu.memory_space<vmem>>, vector<1x16xf32>
    %1022 = vector.broadcast %1021 : vector<1x16xf32> to vector<8x16xf32>
    %1023 = arith.addf %1020, %1022 : vector<8x16xf32>
    %1024 = vector.extract_strided_slice %1023 {offsets = [0, 0], sizes = [8, 8], strides = [1, 1]} : vector<8x16xf32> to vector<8x8xf32>
    %1025 = vector.extract_strided_slice %1023 {offsets = [0, 8], sizes = [8, 8], strides = [1, 1]} : vector<8x16xf32> to vector<8x8xf32>
    %1026 = math.tanh %1025 : vector<8x8xf32>
    %cst_519 = arith.constant 4.000000e+00 : f32
    %1027 = vector.broadcast %cst_519 : f32 to vector<8x8xf32>
    %1028 = arith.mulf %1026, %1027 : vector<8x8xf32>
    %cst_520 = arith.constant 0.000000e+00 : f32
    %1029 = vector.broadcast %cst_520 : f32 to vector<8x8xf32>
    %1030 = arith.addf %1028, %1029 : vector<8x8xf32>
    %1031 = vector.broadcast %921 : vector<8x1xf32> to vector<8x8xf32>
    %1032 = arith.mulf %1031, %1024 : vector<8x8xf32>
    %1033 = arith.addf %909, %1032 : vector<8x8xf32>
    %cst_521 = arith.constant 5.000000e-01 : f32
    %1034 = vector.broadcast %cst_521 : f32 to vector<8x8xf32>
    %1035 = arith.mulf %1034, %1030 : vector<8x8xf32>
    %1036 = math.exp %1035 : vector<8x8xf32>
    %1037 = vector.broadcast %922 : vector<8x1xf32> to vector<8x8xf32>
    %1038 = arith.mulf %1037, %1036 : vector<8x8xf32>
    %1039 = arith.mulf %1038, %924 : vector<8x8xf32>
    %1040 = arith.addf %1033, %1039 : vector<8x8xf32>
    %c7_522 = arith.constant 7 : index
    %c0_523 = arith.constant 0 : index
    %c0_524 = arith.constant 0 : index
    %1041 = vector.load %arg22[%c7_522, %c0_523, %c0_524] : memref<8x8x8xf32, #tpu.memory_space<vmem>>, vector<1x8x8xf32>
    %1042 = vector.shape_cast %1041 : vector<1x8x8xf32> to vector<8x8xf32>
    %1043 = vector.shape_cast %1040 : vector<8x8xf32> to vector<1x8x8xf32>
    tpu.vector_store %arg22[%c7_522, %c0_523, %c0_524], %1043 {strides = array<i32>} : memref<8x8x8xf32, #tpu.memory_space<vmem>>, vector<1x8x8xf32>,
    %c7_525 = arith.constant 7 : index
    %c0_526 = arith.constant 0 : index
    %c0_527 = arith.constant 0 : index
    %1044 = vector.load %arg26[%c7_525, %c0_526, %c0_527] : memref<8x8x32xf32, #tpu.memory_space<vmem>>, vector<1x8x32xf32>
    %1045 = vector.shape_cast %1044 : vector<1x8x32xf32> to vector<8x32xf32>
    %1046 = vector.shape_cast %981 : vector<8x32xf32> to vector<1x8x32xf32>
    tpu.vector_store %arg26[%c7_525, %c0_526, %c0_527], %1046 {strides = array<i32>} : memref<8x8x32xf32, #tpu.memory_space<vmem>>, vector<1x8x32xf32>,
    %c7_528 = arith.constant 7 : index
    %c0_529 = arith.constant 0 : index
    %c0_530 = arith.constant 0 : index
    %1047 = vector.load %arg27[%c7_528, %c0_529, %c0_530] : memref<8x8x8xf32, #tpu.memory_space<vmem>>, vector<1x8x8xf32>
    %1048 = vector.shape_cast %1047 : vector<1x8x8xf32> to vector<8x8xf32>
    %1049 = vector.shape_cast %1030 : vector<8x8xf32> to vector<1x8x8xf32>
    tpu.vector_store %arg27[%c7_528, %c0_529, %c0_530], %1049 {strides = array<i32>} : memref<8x8x8xf32, #tpu.memory_space<vmem>>, vector<1x8x8xf32>,
    %c0_531 = arith.constant 0 : index
    %c0_532 = arith.constant 0 : index
    %c0_533 = arith.constant 0 : index
    %1050 = vector.load %arg5[%c0_531, %c0_532, %c0_533] : memref<8x8x8xf32, #tpu.memory_space<vmem>>, vector<8x8x8xf32>
    %c0_534 = arith.constant 0 : index
    %c0_535 = arith.constant 0 : index
    %c0_536 = arith.constant 0 : index
    %1051 = vector.load %arg27[%c0_534, %c0_535, %c0_536] : memref<8x8x8xf32, #tpu.memory_space<vmem>>, vector<8x8x8xf32>
    %c0_537 = arith.constant 0 : index
    %c0_538 = arith.constant 0 : index
    %c0_539 = arith.constant 0 : index
    %1052 = vector.load %arg4[%c0_537, %c0_538, %c0_539] : memref<8x8x8xf32, #tpu.memory_space<vmem>>, vector<8x8x8xf32>
    %1053 = arith.mulf %1052, %1052 : vector<8x8x8xf32>
    %cst_540 = arith.constant 1.83787704 : f32
    %1054 = vector.broadcast %cst_540 : f32 to vector<8x8x8xf32>
    %1055 = arith.addf %1053, %1054 : vector<8x8x8xf32>
    %1056 = vector.extract_strided_slice %1050 {offsets = [0, 0, 2], sizes = [8, 8, 1], strides = [1, 1, 1]} : vector<8x8x8xf32> to vector<8x8x1xf32>
    %1057 = vector.broadcast %1056 : vector<8x8x1xf32> to vector<8x8x8xf32>
    %1058 = arith.addf %1055, %1057 : vector<8x8x8xf32>
    %1059 = arith.addf %1058, %1051 : vector<8x8x8xf32>
    %cst_541 = arith.constant dense<0.000000e+00> : vector<8x8xf32>
    %1060 = vector.multi_reduction <add>, %1059, %cst_541 [2] : vector<8x8x8xf32> to vector<8x8xf32>
    %1061 = vector.shape_cast %1060 : vector<8x8xf32> to vector<8x8x1xf32>
    %cst_542 = arith.constant -5.000000e-01 : f32
    %1062 = vector.broadcast %cst_542 : f32 to vector<8x8x1xf32>
    %1063 = arith.mulf %1062, %1061 : vector<8x8x1xf32>
    %c0_543 = arith.constant 0 : index
    %c0_544 = arith.constant 0 : index
    %c0_545 = arith.constant 0 : index
    %1064 = vector.load %arg23[%c0_543, %c0_544, %c0_545] : memref<8x8x1xf32, #tpu.memory_space<vmem>>, vector<8x8x1xf32>
    tpu.vector_store %arg23[%c0_543, %c0_544, %c0_545], %1063 {strides = array<i32>} : memref<8x8x1xf32, #tpu.memory_space<vmem>>, vector<8x8x1xf32>,
    %cst_546 = arith.constant 0.000000e+00 : f32
    %1065 = vector.broadcast %cst_546 : f32 to vector<8x1xf32>
    %c0_547 = arith.constant 0 : index
    %c0_548 = arith.constant 0 : index
    %c0_549 = arith.constant 0 : index
    %1066 = vector.load %arg24[%c0_547, %c0_548, %c0_549] : memref<8x8x1xf32, #tpu.memory_space<vmem>>, vector<1x8x1xf32>
    %1067 = vector.shape_cast %1066 : vector<1x8x1xf32> to vector<8x1xf32>
    %1068 = vector.shape_cast %1065 : vector<8x1xf32> to vector<1x8x1xf32>
    tpu.vector_store %arg24[%c0_547, %c0_548, %c0_549], %1068 {strides = array<i32>} : memref<8x8x1xf32, #tpu.memory_space<vmem>>, vector<1x8x1xf32>,
    %c0_550 = arith.constant 0 : index
    %c0_551 = arith.constant 0 : index
    %c0_552 = arith.constant 0 : index
    %1069 = vector.load %arg22[%c0_550, %c0_551, %c0_552] : memref<8x8x8xf32, #tpu.memory_space<vmem>>, vector<8x8x8xf32>
    %1070 = vector.extract_strided_slice %1069 {offsets = [1, 0, 0], sizes = [7, 8, 8], strides = [1, 1, 1]} : vector<8x8x8xf32> to vector<7x8x8xf32>
    %1071 = vector.extract_strided_slice %1069 {offsets = [0, 0, 0], sizes = [7, 8, 8], strides = [1, 1, 1]} : vector<8x8x8xf32> to vector<7x8x8xf32>
    %1072 = vector.extract_strided_slice %1050 {offsets = [1, 0, 0], sizes = [7, 8, 8], strides = [1, 1, 1]} : vector<8x8x8xf32> to vector<7x8x8xf32>
    %1073 = vector.extract_strided_slice %1072 {offsets = [0, 0, 3], sizes = [7, 8, 1], strides = [1, 1, 1]} : vector<7x8x8xf32> to vector<7x8x1xf32>
    %1074 = vector.broadcast %1073 : vector<7x8x1xf32> to vector<7x8x8xf32>
    %1075 = arith.mulf %1070, %1074 : vector<7x8x8xf32>
    %1076 = arith.subf %1070, %1075 : vector<7x8x8xf32>
    %1077 = arith.subf %1071, %1076 : vector<7x8x8xf32>
    %1078 = vector.extract_strided_slice %1072 {offsets = [0, 0, 4], sizes = [7, 8, 1], strides = [1, 1, 1]} : vector<7x8x8xf32> to vector<7x8x1xf32>
    %1079 = vector.broadcast %1078 : vector<7x8x1xf32> to vector<7x8x8xf32>
    %1080 = arith.mulf %1077, %1079 : vector<7x8x8xf32>
    %1081 = arith.mulf %1080, %1080 : vector<7x8x8xf32>
    %cst_553 = arith.constant 1.83787704 : f32
    %1082 = vector.broadcast %cst_553 : f32 to vector<7x8x8xf32>
    %1083 = arith.addf %1081, %1082 : vector<7x8x8xf32>
    %1084 = vector.extract_strided_slice %1072 {offsets = [0, 0, 5], sizes = [7, 8, 1], strides = [1, 1, 1]} : vector<7x8x8xf32> to vector<7x8x1xf32>
    %1085 = vector.broadcast %1084 : vector<7x8x1xf32> to vector<7x8x8xf32>
    %1086 = arith.addf %1083, %1085 : vector<7x8x8xf32>
    %cst_554 = arith.constant dense<0.000000e+00> : vector<7x8xf32>
    %1087 = vector.multi_reduction <add>, %1086, %cst_554 [2] : vector<7x8x8xf32> to vector<7x8xf32>
    %1088 = vector.shape_cast %1087 : vector<7x8xf32> to vector<7x8x1xf32>
    %cst_555 = arith.constant -5.000000e-01 : f32
    %1089 = vector.broadcast %cst_555 : f32 to vector<7x8x1xf32>
    %1090 = arith.mulf %1089, %1088 : vector<7x8x1xf32>
    %c1_556 = arith.constant 1 : index
    %c0_557 = arith.constant 0 : index
    %c0_558 = arith.constant 0 : index
    %1091 = vector.load %arg24[%c1_556, %c0_557, %c0_558] : memref<8x8x1xf32, #tpu.memory_space<vmem>>, vector<7x8x1xf32>
    tpu.vector_store %arg24[%c1_556, %c0_557, %c0_558], %1090 {strides = array<i32>} : memref<8x8x1xf32, #tpu.memory_space<vmem>>, vector<7x8x1xf32>,
    %c0_559 = arith.constant 0 : index
    %c0_560 = arith.constant 0 : index
    %c0_561 = arith.constant 0 : index
    %1092 = vector.load %arg26[%c0_559, %c0_560, %c0_561] : memref<8x8x32xf32, #tpu.memory_space<vmem>>, vector<8x8x32xf32>
    %1093 = vector.shape_cast %1092 : vector<8x8x32xf32> to vector<64x32xf32>
    %1094 = arith.truncf %1093 : vector<64x32xf32> to vector<64x32xbf16>
    %c0_562 = arith.constant 0 : index
    %c0_563 = arith.constant 0 : index
    %1095 = vector.load %arg16[%c0_562, %c0_563] : memref<32x32xbf16, #tpu.memory_space<vmem>>, vector<32x32xbf16>
    %cst_564 = arith.constant dense<0.000000e+00> : vector<64x32xf32>
    %1096 = tpu.matmul %1094, %1095, %cst_564 {dimension_numbers = #tpu.dot_dimension_numbers<[1], [0], [0], [1], [0, 0, 1, 1], [], []>} : vector<64x32xbf16>, vector<32x32xbf16>, vector<64x32xf32> -> vector<64x32xf32>
    %c0_565 = arith.constant 0 : index
    %c0_566 = arith.constant 0 : index
    %1097 = vector.load %arg17[%c0_565, %c0_566] : memref<1x32xf32, #tpu.memory_space<vmem>>, vector<1x32xf32>
    %1098 = vector.broadcast %1097 : vector<1x32xf32> to vector<64x32xf32>
    %1099 = arith.addf %1096, %1098 : vector<64x32xf32>
    %1100 = arith.mulf %1099, %1099 : vector<64x32xf32>
    %1101 = arith.mulf %1099, %1100 : vector<64x32xf32>
    %cst_567 = arith.constant 4.471500e-02 : f32
    %1102 = vector.broadcast %cst_567 : f32 to vector<64x32xf32>
    %1103 = arith.mulf %1102, %1101 : vector<64x32xf32>
    %1104 = arith.addf %1099, %1103 : vector<64x32xf32>
    %cst_568 = arith.constant 0.797884583 : f32
    %1105 = vector.broadcast %cst_568 : f32 to vector<64x32xf32>
    %1106 = arith.mulf %1105, %1104 : vector<64x32xf32>
    %1107 = math.tanh %1106 : vector<64x32xf32>
    %cst_569 = arith.constant 1.000000e+00 : f32
    %1108 = vector.broadcast %cst_569 : f32 to vector<64x32xf32>
    %1109 = arith.addf %1108, %1107 : vector<64x32xf32>
    %cst_570 = arith.constant 5.000000e-01 : f32
    %1110 = vector.broadcast %cst_570 : f32 to vector<64x32xf32>
    %1111 = arith.mulf %1110, %1109 : vector<64x32xf32>
    %1112 = arith.mulf %1099, %1111 : vector<64x32xf32>
    %1113 = arith.truncf %1112 : vector<64x32xf32> to vector<64x32xbf16>
    %c0_571 = arith.constant 0 : index
    %c0_572 = arith.constant 0 : index
    %1114 = vector.load %arg18[%c0_571, %c0_572] : memref<32x32xbf16, #tpu.memory_space<vmem>>, vector<32x32xbf16>
    %cst_573 = arith.constant dense<0.000000e+00> : vector<64x32xf32>
    %1115 = tpu.matmul %1113, %1114, %cst_573 {dimension_numbers = #tpu.dot_dimension_numbers<[1], [0], [0], [1], [0, 0, 1, 1], [], []>} : vector<64x32xbf16>, vector<32x32xbf16>, vector<64x32xf32> -> vector<64x32xf32>
    %c0_574 = arith.constant 0 : index
    %c0_575 = arith.constant 0 : index
    %1116 = vector.load %arg19[%c0_574, %c0_575] : memref<1x32xf32, #tpu.memory_space<vmem>>, vector<1x32xf32>
    %1117 = vector.broadcast %1116 : vector<1x32xf32> to vector<64x32xf32>
    %1118 = arith.addf %1115, %1117 : vector<64x32xf32>
    %1119 = arith.mulf %1118, %1118 : vector<64x32xf32>
    %1120 = arith.mulf %1118, %1119 : vector<64x32xf32>
    %cst_576 = arith.constant 4.471500e-02 : f32
    %1121 = vector.broadcast %cst_576 : f32 to vector<64x32xf32>
    %1122 = arith.mulf %1121, %1120 : vector<64x32xf32>
    %1123 = arith.addf %1118, %1122 : vector<64x32xf32>
    %cst_577 = arith.constant 0.797884583 : f32
    %1124 = vector.broadcast %cst_577 : f32 to vector<64x32xf32>
    %1125 = arith.mulf %1124, %1123 : vector<64x32xf32>
    %1126 = math.tanh %1125 : vector<64x32xf32>
    %cst_578 = arith.constant 1.000000e+00 : f32
    %1127 = vector.broadcast %cst_578 : f32 to vector<64x32xf32>
    %1128 = arith.addf %1127, %1126 : vector<64x32xf32>
    %cst_579 = arith.constant 5.000000e-01 : f32
    %1129 = vector.broadcast %cst_579 : f32 to vector<64x32xf32>
    %1130 = arith.mulf %1129, %1128 : vector<64x32xf32>
    %1131 = arith.mulf %1118, %1130 : vector<64x32xf32>
    %1132 = arith.truncf %1131 : vector<64x32xf32> to vector<64x32xbf16>
    %c0_580 = arith.constant 0 : index
    %c0_581 = arith.constant 0 : index
    %1133 = vector.load %arg20[%c0_580, %c0_581] : memref<32x1xbf16, #tpu.memory_space<vmem>>, vector<32x1xbf16>
    %cst_582 = arith.constant dense<0.000000e+00> : vector<64x1xf32>
    %1134 = tpu.matmul %1132, %1133, %cst_582 {dimension_numbers = #tpu.dot_dimension_numbers<[1], [0], [0], [1], [0, 0, 1, 1], [], []>} : vector<64x32xbf16>, vector<32x1xbf16>, vector<64x1xf32> -> vector<64x1xf32>
    %c0_583 = arith.constant 0 : index
    %c0_584 = arith.constant 0 : index
    %1135 = vector.load %arg21[%c0_583, %c0_584] : memref<1x1xf32, #tpu.memory_space<vmem>>, vector<1x1xf32>
    %1136 = vector.broadcast %1135 : vector<1x1xf32> to vector<64x1xf32>
    %1137 = arith.addf %1134, %1136 : vector<64x1xf32>
    %1138 = vector.shape_cast %1137 : vector<64x1xf32> to vector<8x8x1xf32>
    %c0_585 = arith.constant 0 : index
    %c0_586 = arith.constant 0 : index
    %c0_587 = arith.constant 0 : index
    %1139 = vector.load %arg25[%c0_585, %c0_586, %c0_587] : memref<8x8x1xf32, #tpu.memory_space<vmem>>, vector<8x8x1xf32>
    tpu.vector_store %arg25[%c0_585, %c0_586, %c0_587], %1138 {strides = array<i32>} : memref<8x8x1xf32, #tpu.memory_space<vmem>>, vector<8x8x1xf32>,
    return
  }
  func.func @transform_0(%arg0: i32) -> (i32, i32) {
    %c0_i32 = arith.constant 0 : i32
    %c0_i32_0 = arith.constant 0 : i32
    return %arg0, %c0_i32 : i32, i32
  }
  func.func @transform_1(%arg0: i32) -> (i32, i32) {
    %c0_i32 = arith.constant 0 : i32
    %c0_i32_0 = arith.constant 0 : i32
    return %arg0, %c0_i32 : i32, i32
  }
  func.func @transform_2(%arg0: i32) -> (i32, i32, i32) {
    %c0_i32 = arith.constant 0 : i32
    %c0_i32_0 = arith.constant 0 : i32
    %c0_i32_1 = arith.constant 0 : i32
    return %c0_i32, %arg0, %c0_i32_0 : i32, i32, i32
  }
  func.func @transform_3(%arg0: i32) -> (i32, i32, i32) {
    %c0_i32 = arith.constant 0 : i32
    %c0_i32_0 = arith.constant 0 : i32
    %c0_i32_1 = arith.constant 0 : i32
    return %c0_i32, %arg0, %c0_i32_0 : i32, i32, i32
  }
  func.func @transform_4(%arg0: i32) -> (i32, i32, i32) {
    %c0_i32 = arith.constant 0 : i32
    %c0_i32_0 = arith.constant 0 : i32
    %c0_i32_1 = arith.constant 0 : i32
    return %c0_i32, %arg0, %c0_i32_0 : i32, i32, i32
  }
  func.func @transform_5(%arg0: i32) -> (i32, i32) {
    %c0_i32 = arith.constant 0 : i32
    %c0_i32_0 = arith.constant 0 : i32
    %c0_i32_1 = arith.constant 0 : i32
    return %c0_i32, %c0_i32_0 : i32, i32
  }
  func.func @transform_6(%arg0: i32) -> (i32, i32) {
    %c0_i32 = arith.constant 0 : i32
    %c0_i32_0 = arith.constant 0 : i32
    %c0_i32_1 = arith.constant 0 : i32
    return %c0_i32, %c0_i32_0 : i32, i32
  }
  func.func @transform_7(%arg0: i32) -> (i32, i32) {
    %c0_i32 = arith.constant 0 : i32
    %c0_i32_0 = arith.constant 0 : i32
    %c0_i32_1 = arith.constant 0 : i32
    return %c0_i32, %c0_i32_0 : i32, i32
  }
  func.func @transform_8(%arg0: i32) -> (i32, i32) {
    %c0_i32 = arith.constant 0 : i32
    %c0_i32_0 = arith.constant 0 : i32
    %c0_i32_1 = arith.constant 0 : i32
    return %c0_i32, %c0_i32_0 : i32, i32
  }
  func.func @transform_9(%arg0: i32) -> (i32, i32) {
    %c0_i32 = arith.constant 0 : i32
    %c0_i32_0 = arith.constant 0 : i32
    %c0_i32_1 = arith.constant 0 : i32
    return %c0_i32, %c0_i32_0 : i32, i32
  }
  func.func @transform_10(%arg0: i32) -> (i32, i32) {
    %c0_i32 = arith.constant 0 : i32
    %c0_i32_0 = arith.constant 0 : i32
    %c0_i32_1 = arith.constant 0 : i32
    return %c0_i32, %c0_i32_0 : i32, i32
  }
  func.func @transform_11(%arg0: i32) -> (i32, i32) {
    %c0_i32 = arith.constant 0 : i32
    %c0_i32_0 = arith.constant 0 : i32
    %c0_i32_1 = arith.constant 0 : i32
    return %c0_i32, %c0_i32_0 : i32, i32
  }
  func.func @transform_12(%arg0: i32) -> (i32, i32) {
    %c0_i32 = arith.constant 0 : i32
    %c0_i32_0 = arith.constant 0 : i32
    %c0_i32_1 = arith.constant 0 : i32
    return %c0_i32, %c0_i32_0 : i32, i32
  }
  func.func @transform_13(%arg0: i32) -> (i32, i32) {
    %c0_i32 = arith.constant 0 : i32
    %c0_i32_0 = arith.constant 0 : i32
    %c0_i32_1 = arith.constant 0 : i32
    return %c0_i32, %c0_i32_0 : i32, i32
  }
  func.func @transform_14(%arg0: i32) -> (i32, i32) {
    %c0_i32 = arith.constant 0 : i32
    %c0_i32_0 = arith.constant 0 : i32
    %c0_i32_1 = arith.constant 0 : i32
    return %c0_i32, %c0_i32_0 : i32, i32
  }
  func.func @transform_15(%arg0: i32) -> (i32, i32) {
    %c0_i32 = arith.constant 0 : i32
    %c0_i32_0 = arith.constant 0 : i32
    %c0_i32_1 = arith.constant 0 : i32
    return %c0_i32, %c0_i32_0 : i32, i32
  }
  func.func @transform_16(%arg0: i32) -> (i32, i32) {
    %c0_i32 = arith.constant 0 : i32
    %c0_i32_0 = arith.constant 0 : i32
    %c0_i32_1 = arith.constant 0 : i32
    return %c0_i32, %c0_i32_0 : i32, i32
  }
  func.func @transform_17(%arg0: i32) -> (i32, i32) {
    %c0_i32 = arith.constant 0 : i32
    %c0_i32_0 = arith.constant 0 : i32
    %c0_i32_1 = arith.constant 0 : i32
    return %c0_i32, %c0_i32_0 : i32, i32
  }
  func.func @transform_18(%arg0: i32) -> (i32, i32) {
    %c0_i32 = arith.constant 0 : i32
    %c0_i32_0 = arith.constant 0 : i32
    %c0_i32_1 = arith.constant 0 : i32
    return %c0_i32, %c0_i32_0 : i32, i32
  }
  func.func @transform_19(%arg0: i32) -> (i32, i32) {
    %c0_i32 = arith.constant 0 : i32
    %c0_i32_0 = arith.constant 0 : i32
    %c0_i32_1 = arith.constant 0 : i32
    return %c0_i32, %c0_i32_0 : i32, i32
  }
  func.func @transform_20(%arg0: i32) -> (i32, i32) {
    %c0_i32 = arith.constant 0 : i32
    %c0_i32_0 = arith.constant 0 : i32
    %c0_i32_1 = arith.constant 0 : i32
    return %c0_i32, %c0_i32_0 : i32, i32
  }
  func.func @transform_21(%arg0: i32) -> (i32, i32, i32) {
    %c0_i32 = arith.constant 0 : i32
    %c0_i32_0 = arith.constant 0 : i32
    %c0_i32_1 = arith.constant 0 : i32
    return %c0_i32, %arg0, %c0_i32_0 : i32, i32, i32
  }
  func.func @transform_22(%arg0: i32) -> (i32, i32, i32) {
    %c0_i32 = arith.constant 0 : i32
    %c0_i32_0 = arith.constant 0 : i32
    %c0_i32_1 = arith.constant 0 : i32
    return %c0_i32, %arg0, %c0_i32_0 : i32, i32, i32
  }
  func.func @transform_23(%arg0: i32) -> (i32, i32, i32) {
    %c0_i32 = arith.constant 0 : i32
    %c0_i32_0 = arith.constant 0 : i32
    %c0_i32_1 = arith.constant 0 : i32
    return %c0_i32, %arg0, %c0_i32_0 : i32, i32, i32
  }
  func.func @transform_24(%arg0: i32) -> (i32, i32, i32) {
    %c0_i32 = arith.constant 0 : i32
    %c0_i32_0 = arith.constant 0 : i32
    %c0_i32_1 = arith.constant 0 : i32
    return %c0_i32, %arg0, %c0_i32_0 : i32, i32, i32
  }
}

</mosaic_0001>

<bundles_post_ra>
// kernel: gfn_trajectory_fwd.1
= control target key start
LH: loop header
LB: loop body
LE: loop exit
PB: predicated region body
PF: predicated region fallthrough
CT: control target
= control target key end

     0   :  { %vm86_vm0 = vcmask 1043456   ;;  %v5640_v0 = vmov 0.0   ;;  %vm5641_vm1 = vmmov 0   ;;  %vm82_vm2 = vcmask 64512   ;;  %s7153_s29 = smov 120   ;;  %s7093_s5 = inlined_call_operand.vmem [shape: bf16[8,32], index: 5, kind: input, shape index: {}]   ;;  %s7094_s0 = inlined_call_operand.vmem [shape: f32[8,8], index: 0, kind: input, shape index: {}]   ;;  %s7095_s6 = inlined_call_operand.vmem [shape: bf16[32,32], index: 6, kind: input, shape index: {}]   ;;  %s7096_s1 = inlined_call_operand.vmem [shape: f32[8,32], index: 1, kind: input, shape index: {}]   ;;  %s7097_s8 = inlined_call_operand.vmem [shape: bf16[32,32], index: 8, kind: input, shape index: {}]   ;;  %s7098_s7 = inlined_call_operand.vmem [shape: f32[1,32], index: 7, kind: input, shape index: {}]   ;;  %s7099_s10 = inlined_call_operand.vmem [shape: bf16[32,32], index: 10, kind: input, shape index: {}]   ;;  %s7100_s9 = inlined_call_operand.vmem [shape: f32[1,32], index: 9, kind: input, shape index: {}]   ;;  %s7101_s11 = inlined_call_operand.vmem [shape: bf16[32,32], index: 11, kind: input, shape index: {}]   ;;  %s7102_s2 = inlined_call_operand.vmem [shape: f32[8,8,32], index: 2, kind: input, shape index: {}]   ;;  %s7103_s13 = inlined_call_operand.vmem [shape: bf16[32,16], index: 13, kind: input, shape index: {}]   ;;  %s7104_s4 = inlined_call_operand.vmem [shape: f32[8,8,8], index: 4, kind: input, shape index: {}]   ;;  %s7105_s3 = inlined_call_operand.vmem [shape: f32[8,8,8], index: 3, kind: input, shape index: {}]   ;;  %s7106_s12 = inlined_call_operand.vmem [shape: f32[1,32], index: 12, kind: input, shape index: {}]   ;;  %s7107_s14 = inlined_call_operand.vmem [shape: f32[1,16], index: 14, kind: input, shape index: {}]   ;;  %s7108_s21 = inlined_call_operand.vmem [shape: f32[8,8,8], index: 21, kind: output, shape index: {0}]   ;;  %s7109_s22 = inlined_call_operand.vmem [shape: f32[8,8,1], index: 22, kind: output, shape index: {1}]   ;;  %s7110_s15 = inlined_call_operand.vmem [shape: bf16[32,32], index: 15, kind: input, shape index: {}]   ;;  %s7111_s17 = inlined_call_operand.vmem [shape: bf16[32,32], index: 17, kind: input, shape index: {}]   ;;  %s7112_s16 = inlined_call_operand.vmem [shape: f32[1,32], index: 16, kind: input, shape index: {}]   ;;  %s7113_s19 = inlined_call_operand.vmem [shape: bf16[32,1], index: 19, kind: input, shape index: {}]   ;;  %s7114_s18 = inlined_call_operand.vmem [shape: f32[1,32], index: 18, kind: input, shape index: {}]   ;;  %s7115_s23 = inlined_call_operand.vmem [shape: f32[8,8,1], index: 23, kind: output, shape index: {2}]   ;;  %s7116_s20 = inlined_call_operand.<no memory space> [shape: f32[1,1], index: 20, kind: input, shape index: {}]   ;;  %s7117_s24 = inlined_call_operand.vmem [shape: f32[8,8,1], index: 24, kind: output, shape index: {3}]  }
   0x1   :  { %7132 = sst [smem:[#allocation5_spill]] %s7093_s5  ;;  %4967 = vmatprep.subr.bf16.mxu1 %v5640_v0  ;;  %4969 = vmatprep.mubr.msk.bf16.mxu1 %vm5641_vm1, %v5640_v0  ;;  %vm163_vm3 = vcmask 261120   ;;  %v79_v61 = vld [vmem:[%s7102_s2] sm:$0xff]  ;;  %vm3922_vm4 = vcmask 7168  }
   0x2   :  { %7133 = sst [smem:[#allocation6_spill]] %s7094_s0  ;;  %s7144_s27 = sld [smem:[#allocation5_spill]]  ;;  %4981 = vmatprep.subr.bf16.mxu0 %v5640_v0  ;;  %4985 = vmatprep.mubr.msk.bf16.mxu0 %vm5641_vm1, %v5640_v0 }
   0x3   :  { %7134 = sst [smem:[#allocation7_spill]] %s7095_s6  ;;  %s7145_s6 = sld [smem:[#allocation6_spill]] }
   0x4   :  { %7135 = sst [smem:[#allocation8_spill]] %s7096_s1 }
   0x5   :  { %7136 = sst [smem:[#allocation9_spill]] %s7097_s8  ;;  %s7147_s8 = sld [smem:[#allocation8_spill]] }
   0x6   :  { %7137 = sst [smem:[#allocation10_spill]] %s7098_s7  ;;  %s7148_s26 = sld [smem:[#allocation9_spill]] }
   0x7   :  { %7138 = sst [smem:[#allocation11_spill]] %s7099_s10  ;;  %s7149_s1 = sld [smem:[#allocation10_spill]] }
   0x8   :  { %7139 = sst [smem:[#allocation12_spill]] %s7100_s9  ;;  %v81_v1 = vld [vmem:[%s7144_s27] sm:$0xf]  ;;  %s7146_s9 = sld [smem:[#allocation7_spill]] }
   0x9   :  { %7140 = sst [smem:[#allocation13_spill]] %s7101_s11  ;;  %v5784_v2 = vld [vmem:[%s7145_s6] sm:$0xff]  ;;  %v88_v3 = vsel %vm86_vm0, %v81_v1, 0  ;;  %s7150_s25 = sld [smem:[#allocation11_spill]] }
   0xa   :  { %7141 = sst [smem:[#allocation14_spill]] %s7115_s23  ;;  %v80_v4 = vpack.c.bf16 %v5784_v2, %v5784_v2  ;;  %4968 = vmatpush3.bf16.msra.mxu1 %v88_v3  ;;  %s7151_s10 = sld [smem:[#allocation12_spill]] }
   0xb   :  { %7142 = sst [smem:[#allocation15_spill]] %s7116_s20  ;;  %4973 = vmatprep.subr.bf16.mxu1 %v5640_v0  ;;  %v5807_v7 = vld [vmem:[%s7147_s8] sm:$0xff]  ;;  %s7152_s30 = sld [smem:[#allocation13_spill]] }
   0xc   :  { %7143 = sst [smem:[#allocation16_spill]] %s7117_s24  ;;  %v5404_v23 = vld [vmem:[%s7148_s26] sm:$0xff]   ;;  %v5405_v24 = vld [vmem:[%s7148_s26 + $0x8] sm:$0xff]   ;;  %s7128_s6 = smov 8  }
   0xd   :  { %4970 = vmatmul.mubr.msk.bf16.vlgmr.msra.gmra.mrb[0].mxu1 %vm82_vm2, %v80_v4  ;;  %4982 = vmatpush3.bf16.msra.mxu0 %v5404_v23  ;;  %v5824_v25 = vld [vmem:[%s7149_s1] ss:$0 sm:$0xff]  ;;  %s7126_s11 = smov 120   ;;  %s7154_s24 = smov 8  }
   0xe   :  { %4977 = vmatprep.mubr.msk.bf16.mxu1 %vm5641_vm1, %v5640_v0  ;;  %v5402_v5 = vld [vmem:[%s7146_s9] sm:$0xff]   ;;  %v5403_v6 = vld [vmem:[%s7146_s9 + $0x8] sm:$0xff]   ;;  %4983 = vmatprep.subr.bf16.mxu0 %v5640_v0  ;;  %s7156_s23 = sld [smem:[#allocation15_spill]] }
   0xf   :  { %4974 = vmatpush3.bf16.msra.mxu1 %v5402_v5  ;;  %v5406_v41 = vld [vmem:[%s7150_s25] sm:$0xff]   ;;  %v5407_v42 = vld [vmem:[%s7150_s25 + $0x8] sm:$0xff]  }
  0x10   :  { %4975 = vmatprep.subr.bf16.mxu1 %v5640_v0  ;;  %v5841_v43 = vld [vmem:[%s7151_s10] ss:$0 sm:$0xff] }
  0x11   :  { %4984 = vmatpush3.bf16.msra.mxu0 %v5405_v24  ;;  %v5408_v59 = vld [vmem:[%s7152_s30] sm:$0xff]   ;;  %v5409_v60 = vld [vmem:[%s7152_s30 + $0x8] sm:$0xff]  }
  0x12   :  { %4997 = vmatprep.subr.bf16.mxu0 %v5640_v0  ;;  %v5887_v23 = vld [vmem:[%s7106_s12] ss:$0 sm:$0xff] }
  0x13   :  { %4976 = vmatpush3.bf16.msra.mxu1 %v5403_v6 }
  0x14   :  { %4989 = vmatprep.subr.bf16.mxu1 %v5640_v0 }
  0xe0   :  { %v124_v8 = vpop.f32.mrb[0].mxu1 }
  0xe1   :  { %v125_v9 = vadd.f32 %v124_v8, %v5807_v7  ;;  %v4971_v10 = vpop.f32.mrb[1].mxu1 }
  0xe2   :  { %v127_v11 = vpop.f32.mrb[2].mxu1 }
  0xe3   :  { %v130_v12 = vmul.f32 %v125_v9, %v125_v9  ;;  %v4972_v13 = vpop.f32.mrb[3].mxu1 }
  0xe5   :  { %v131_v14 = vmul.f32 %v130_v12, %v125_v9 }
  0xe7   :  { %v132_v15 = vmul.f32 0.044715, %v131_v14 }
  0xe9   :  { %v133_v16 = vadd.f32 %v132_v15, %v125_v9 }
  0xeb   :  { %v134_v17 = vmul.f32 0.7978846, %v133_v16  ;;  %v5410_v16 = vld [vmem:[%s7103_s13] sm:$0xff]  }
  0xed   :  { %5488 = vtanh.f32 %v134_v17  ;;  %v5411_v17 = vld [vmem:[%s7103_s13 + $0x8] sm:$0xff]  }
  0xf7   :  { %v5489_v18 = vpop.eup %5488 }
  0xf8   :  { %v136_v19 = vadd.f32 1.0, %v5489_v18  ;;  %v5642_v18 = vmov 0  }
  0xf9   :  { %5382 = vset.pattern.permute.xlu1 %v5642_v18 }
  0xfa   :  { %v137_v20 = vmul.f32 0.5, %v136_v19  ;;  %v77_v19 = vld [vmem:[%s7104_s4] sm:$0xff] }
  0xfb   :  { %509 = vperm.xlu1 %5382, %v77_v19  }
  0xfc   :  { %v138_v21 = vmul.f32 %v137_v20, %v125_v9  ;;  %v5643_v20 = vmov 1  }
  0xfd   :  { %5381 = vset.pattern.permute.xlu0 %v5643_v20 }
  0xfe   :  { %v139_v22 = vpack.c.bf16 %v138_v21, %v138_v21  ;;  %518 = vperm.xlu0 %5381, %v77_v19   ;;  %v78_v21 = vld [vmem:[%s7105_s3] sm:$0xff] }
  0xff   :  { %5384 = vset.pattern.permute.xlu1 %v5643_v20 }
 0x100   :  { %4978 = vmatmul.mubr.msk.bf16.vlgmr.msra.gmra.mrb[4].mxu1 %vm163_vm3, %v139_v22  ;;  %v4617_v22 = vld [vmem:[%s7104_s4 + $0x8] sm:$0xff] }
 0x101   :  { %4993 = vmatprep.mubr.msk.bf16.mxu1 %vm5641_vm1, %v5640_v0  ;;  %4990 = vmatpush3.bf16.msra.mxu1 %v5406_v41 }
 0x102   :  { %4991 = vmatprep.subr.bf16.mxu1 %v5640_v0  ;;  %523 = vrot.lane.b32.xlu0 %v78_v21, %s7128_s6  ;;  %v5414_v21 = vld [vmem:[%s7148_s26] sm:$0xff]  }
 0x105   :  { %4992 = vmatpush3.bf16.msra.mxu1 %v5407_v42  ;;  %v5901_v42 = vld [vmem:[%s7107_s14] ss:$0 sm:$0xff] }
 0x106   :  { %5005 = vmatprep.subr.bf16.mxu1 %v5640_v0  ;;  %980 = vperm.xlu0 %5381, %v4617_v22  }
 0x10a   :  { %5383 = vset.pattern.permute.xlu0 %v5642_v18 }
 0x10b   :  { %971 = vperm.xlu0 %5383, %v4617_v22   ;;  %v5415_v22 = vld [vmem:[%s7148_s26 + $0x8] sm:$0xff]  }
 0x1d3   :  { %v201_v26 = vpop.f32.mrb[4].mxu1 }
 0x1d4   :  { %v202_v27 = vadd.f32 %v5824_v25, %v201_v26  ;;  %v4979_v28 = vpop.f32.mrb[5].mxu1 }
 0x1d5   :  { %v204_v29 = vpop.f32.mrb[6].mxu1 }
 0x1d6   :  { %v207_v30 = vmul.f32 %v202_v27, %v202_v27  ;;  %v4980_v31 = vpop.f32.mrb[7].mxu1 }
 0x1d8   :  { %v208_v32 = vmul.f32 %v207_v30, %v202_v27 }
 0x1da   :  { %v209_v33 = vmul.f32 0.044715, %v208_v32 }
 0x1dc   :  { %v210_v34 = vadd.f32 %v209_v33, %v202_v27 }
 0x1de   :  { %v211_v35 = vmul.f32 0.7978846, %v210_v34 }
 0x1e0   :  { %5490 = vtanh.f32 %v211_v35 }
 0x1ea   :  { %v5491_v36 = vpop.eup %5490 }
 0x1eb   :  { %v213_v37 = vadd.f32 1.0, %v5491_v36 }
 0x1ed   :  { %v214_v38 = vmul.f32 0.5, %v213_v37 }
 0x1ef   :  { %v215_v39 = vmul.f32 %v214_v38, %v202_v27 }
 0x1f1   :  { %v216_v40 = vpack.c.bf16 %v215_v39, %v215_v39 }
 0x1f3   :  { %4986 = vmatmul.mubr.msk.bf16.vlgmr.msra.gmra.mrb[0].mxu0 %vm163_vm3, %v216_v40  ;;  %v546_v40 = vld [vmem:[%s7144_s27] sm:$0xf] }
 0x1f4   :  { %5001 = vmatprep.mubr.msk.bf16.mxu0 %vm5641_vm1, %v5640_v0  ;;  %4998 = vmatpush3.bf16.msra.mxu0 %v5408_v59  ;;  %v551_v41 = vsel %vm86_vm0, %v546_v40, 0  ;;  %v5416_v40 = vld [vmem:[%s7150_s25] sm:$0xff]  }
 0x1f5   :  { %4999 = vmatprep.subr.bf16.mxu0 %v5640_v0 }
 0x1f8   :  { %5000 = vmatpush3.bf16.msra.mxu0 %v5409_v60 }
 0x1f9   :  { %5013 = vmatprep.subr.bf16.mxu0 %v5640_v0 }
 0x2c6   :  { %v277_v44 = vpop.f32.mrb[0].mxu0 }
 0x2c7   :  { %v278_v45 = vadd.f32 %v5841_v43, %v277_v44  ;;  %v4987_v46 = vpop.f32.mrb[1].mxu0 }
 0x2c8   :  { %v280_v47 = vpop.f32.mrb[2].mxu0 }
 0x2c9   :  { %v283_v48 = vmul.f32 %v278_v45, %v278_v45  ;;  %v4988_v49 = vpop.f32.mrb[3].mxu0 }
 0x2cb   :  { %v284_v50 = vmul.f32 %v283_v48, %v278_v45 }
 0x2cd   :  { %v285_v51 = vmul.f32 0.044715, %v284_v50 }
 0x2cf   :  { %v286_v52 = vadd.f32 %v285_v51, %v278_v45 }
 0x2d1   :  { %v287_v53 = vmul.f32 0.7978846, %v286_v52 }
 0x2d3   :  { %5492 = vtanh.f32 %v287_v53  ;;  %v519_v53 = vpop.permute.xlu0 %518 }
 0x2dd   :  { %v5493_v54 = vpop.eup %5492 }
 0x2de   :  { %v289_v55 = vadd.f32 1.0, %v5493_v54 }
 0x2e0   :  { %v290_v56 = vmul.f32 0.5, %v289_v55 }
 0x2e2   :  { %v291_v57 = vmul.f32 %v290_v56, %v278_v45  ;;  %v524_v56 = vpop.permute.xlu0 %523 }
 0x2e4   :  { %v292_v58 = vpack.c.bf16 %v291_v57, %v291_v57  ;;  %533 = vst.msk [vmem:[#allocation2] sm:$0xff] %vm163_vm3, %v291_v57 }
 0x2e6   :  { %4994 = vmatmul.mubr.msk.bf16.vlgmr.msra.gmra.mrb[8].mxu1 %vm163_vm3, %v292_v58  ;;  %v510_v58 = vpop.permute.xlu1 %509 }
 0x2e7   :  { %5009 = vmatprep.mubr.msk.bf16.mxu1 %vm5641_vm1, %v5640_v0  ;;  %5006 = vmatpush3.bf16.msra.mxu1 %v5410_v16 }
 0x2e8   :  { %5007 = vmatprep.subr.bf16.mxu1 %v5640_v0 }
 0x2eb   :  { %5008 = vmatpush3.bf16.msra.mxu1 %v5411_v17 }
 0x2ec   :  { %5019 = vmatprep.subr.bf16.mxu1 %v5640_v0 }
 0x3b9   :  { %v346_v62 = vpop.f32.mrb[8].mxu1 }
 0x3ba   :  { %v347_v63 = vadd.f32 %v346_v62, %v79_v61  ;;  %v4995_v1 = vpop.f32.mrb[9].mxu1 }
 0x3bb   :  { %v349_v3 = vpop.f32.mrb[10].mxu1  ;;  %v5413_v1 = vld [vmem:[%s7146_s9 + $0x8] sm:$0xff]  }
 0x3bc   :  { %v352_v4 = vmul.f32 %v347_v63, %v347_v63  ;;  %v4996_v5 = vpop.f32.mrb[11].mxu1 }
 0x3be   :  { %v353_v6 = vmul.f32 %v352_v4, %v347_v63 }
 0x3c0   :  { %v354_v8 = vmul.f32 0.044715, %v353_v6 }
 0x3c2   :  { %v355_v9 = vadd.f32 %v354_v8, %v347_v63 }
 0x3c4   :  { %v356_v10 = vmul.f32 0.7978846, %v355_v9 }
 0x3c6   :  { %5494 = vtanh.f32 %v356_v10 }
 0x3d0   :  { %v5495_v11 = vpop.eup %5494 }
 0x3d1   :  { %v358_v12 = vadd.f32 1.0, %v5495_v11 }
 0x3d3   :  { %v359_v13 = vmul.f32 0.5, %v358_v12 }
 0x3d5   :  { %v360_v14 = vmul.f32 %v359_v13, %v347_v63 }
 0x3d7   :  { %v361_v15 = vpack.c.bf16 %v360_v14, %v360_v14 }
 0x3d9   :  { %5002 = vmatmul.mubr.msk.bf16.vlgmr.msra.gmra.mrb[4].mxu0 %vm163_vm3, %v361_v15 }
 0x3da   :  { %5015 = vmatprep.mubr.msk.bf16.mxu0 %vm5641_vm1, %v5640_v0  ;;  %5014 = vmatpush3.bf16.msra.mxu0 %v551_v41  ;;  %v5417_v41 = vld [vmem:[%s7150_s25 + $0x8] sm:$0xff]  }
 0x3db   :  { %5027 = vmatprep.subr.bf16.mxu0 %v5640_v0 }
 0x4ac   :  { %v422_v24 = vpop.f32.mrb[4].mxu0 }
 0x4ad   :  { %v423_v26 = vadd.f32 %v5887_v23, %v422_v24  ;;  %v5003_v27 = vpop.f32.mrb[5].mxu0 }
 0x4ae   :  { %v425_v28 = vpop.f32.mrb[6].mxu0 }
 0x4af   :  { %v428_v29 = vmul.f32 %v423_v26, %v423_v26  ;;  %v5004_v30 = vpop.f32.mrb[7].mxu0 }
 0x4b1   :  { %v429_v31 = vmul.f32 %v428_v29, %v423_v26 }
 0x4b3   :  { %v430_v32 = vmul.f32 0.044715, %v429_v31 }
 0x4b5   :  { %v431_v33 = vadd.f32 %v430_v32, %v423_v26 }
 0x4b7   :  { %v432_v34 = vmul.f32 0.7978846, %v431_v33 }
 0x4b9   :  { %5496 = vtanh.f32 %v432_v34 }
 0x4c3   :  { %v5497_v35 = vpop.eup %5496 }
 0x4c4   :  { %v434_v36 = vadd.f32 1.0, %v5497_v35 }
 0x4c6   :  { %v435_v37 = vmul.f32 0.5, %v434_v36 }
 0x4c8   :  { %v436_v38 = vmul.f32 %v435_v37, %v423_v26 }
 0x4ca   :  { %v437_v39 = vpack.c.bf16 %v436_v38, %v436_v38 }
 0x4cc   :  { %5010 = vmatmul.mubr.msk.bf16.vlgmr.msra.gmra.mrb[12].mxu1 %vm163_vm3, %v437_v39 }
 0x4cd   :  { %5023 = vmatprep.mubr.msk.bf16.mxu1 %vm5641_vm1, %v5640_v0 }
 0x59f   :  { %v498_v44 = vpop.f32.mrb[12].mxu1 }
 0x5a0   :  { %v499_v45 = vadd.f32 %v5901_v42, %v498_v44  ;;  %v5011_v46 = vpop.f32.mrb[13].mxu1 }
 0x5a1   :  { %v501_v47 = vpop.f32.mrb[14].mxu1 }
 0x5a2   :  { %5498 = vtanh.f32 %v499_v45  ;;  %v5012_v48 = vpop.f32.mrb[15].mxu1  ;;  %v512_v59 = vmul.f32 %v510_v58, %v499_v45 }
 0x5a4   :  { %v513_v60 = vadd.f32 %v512_v59, %v5784_v2  ;;  %v5412_v2 = vld [vmem:[%s7146_s9] sm:$0xff]  }
 0x5a5   :  { %5020 = vmatpush3.bf16.msra.mxu1 %v5412_v2 }
 0x5a6   :  { %5021 = vmatprep.subr.bf16.mxu1 %v5640_v0 }
 0x5a9   :  { %5022 = vmatpush3.bf16.msra.mxu1 %v5413_v1 }
 0x5aa   :  { %5035 = vmatprep.subr.bf16.mxu1 %v5640_v0 }
 0x5ac   :  { %v5499_v49 = vpop.eup %5498 }
 0x5ad   :  { %v5904_v50 = vmul.f32 4.0, %v5499_v49 }
 0x5af   :  { %v514_v51 = vmul.f32 0.5, %v5904_v50 }
 0x5b1   :  { %v515_v52 = vmul.f32 1.442695, %v514_v51 }
 0x5b3   :  { %5500 = vpow2.f32 %v515_v52 }
 0x5bd   :  { %v5501_v54 = vpop.eup %5500 }
 0x5be   :  { %v521_v55 = vmul.f32 %v5501_v54, %v519_v53 }
 0x5c0   :  { %v526_v57 = vmul.f32 %v524_v56, %v521_v55 }
 0x5c2   :  { %528 = vrot.lane.b32.xlu1 %v526_v57, %s7126_s11 }
 0x634   :  { %v529_v61 = vpop.permute.xlu1 %528 }
 0x635   :  { %v5909_v62 = vadd.f32 %v529_v61, %v513_v60  ;;  %v5418_v60 = vld [vmem:[%s7152_s30] sm:$0xff]   ;;  %v5419_v61 = vld [vmem:[%s7152_s30 + $0x8] sm:$0xff]  }
 0x637   :  { %532 = vst.msk [vmem:[%s7108_s21] sm:$0xff] %vm82_vm2, %v5909_v62  ;;  %v545_v63 = vpack.c.bf16 %v5909_v62, %v5909_v62 }
 0x639   :  { %5016 = vmatmul.mubr.msk.bf16.vlgmr.msra.gmra.mrb[8].mxu0 %vm82_vm2, %v545_v63  ;;  %v4619_v63 = vld [vmem:[%s7102_s2 + $0x8] sm:$0xff] }
 0x63a   :  { %5031 = vmatprep.mubr.msk.bf16.mxu0 %vm5641_vm1, %v5640_v0  ;;  %5028 = vmatpush3.bf16.msra.mxu0 %v5414_v21  ;;  %v4618_v21 = vld [vmem:[%s7105_s3 + $0x8] sm:$0xff] }
 0x63b   :  { %5029 = vmatprep.subr.bf16.mxu0 %v5640_v0  ;;  %985 = vrot.lane.b32.xlu1 %v4618_v21, %s7128_s6 }
 0x63e   :  { %5030 = vmatpush3.bf16.msra.mxu0 %v5415_v22 }
 0x63f   :  { %5043 = vmatprep.subr.bf16.mxu0 %v5640_v0 }
 0x70c   :  { %v587_v3 = vpop.f32.mrb[8].mxu0 }
 0x70d   :  { %v588_v4 = vadd.f32 %v587_v3, %v5807_v7  ;;  %v5017_v5 = vpop.f32.mrb[9].mxu0 }
 0x70e   :  { %v590_v6 = vpop.f32.mrb[10].mxu0 }
 0x70f   :  { %v593_v8 = vmul.f32 %v588_v4, %v588_v4  ;;  %v5018_v9 = vpop.f32.mrb[11].mxu0 }
 0x711   :  { %v594_v10 = vmul.f32 %v593_v8, %v588_v4 }
 0x713   :  { %v595_v11 = vmul.f32 0.044715, %v594_v10 }
 0x715   :  { %v596_v12 = vadd.f32 %v595_v11, %v588_v4 }
 0x717   :  { %v597_v13 = vmul.f32 0.7978846, %v596_v12 }
 0x719   :  { %5502 = vtanh.f32 %v597_v13 }
 0x723   :  { %v5503_v14 = vpop.eup %5502 }
 0x724   :  { %v599_v15 = vadd.f32 1.0, %v5503_v14 }
 0x726   :  { %v600_v16 = vmul.f32 0.5, %v599_v15 }
 0x728   :  { %v601_v17 = vmul.f32 %v600_v16, %v588_v4 }
 0x72a   :  { %v602_v19 = vpack.c.bf16 %v601_v17, %v601_v17  ;;  %v5420_v17 = vld [vmem:[%s7103_s13] sm:$0xff]  }
 0x72c   :  { %5024 = vmatmul.mubr.msk.bf16.vlgmr.msra.gmra.mrb[16].mxu1 %vm163_vm3, %v602_v19  ;;  %v5421_v19 = vld [vmem:[%s7103_s13 + $0x8] sm:$0xff]  }
 0x72d   :  { %5039 = vmatprep.mubr.msk.bf16.mxu1 %vm5641_vm1, %v5640_v0  ;;  %5036 = vmatpush3.bf16.msra.mxu1 %v5416_v40 }
 0x72e   :  { %5037 = vmatprep.subr.bf16.mxu1 %v5640_v0 }
 0x731   :  { %5038 = vmatpush3.bf16.msra.mxu1 %v5417_v41 }
 0x732   :  { %5051 = vmatprep.subr.bf16.mxu1 %v5640_v0 }
 0x7ff   :  { %v663_v24 = vpop.f32.mrb[16].mxu1 }
 0x800   :  { %v664_v26 = vadd.f32 %v5824_v25, %v663_v24  ;;  %v5025_v27 = vpop.f32.mrb[17].mxu1 }
 0x801   :  { %v666_v28 = vpop.f32.mrb[18].mxu1 }
 0x802   :  { %v669_v29 = vmul.f32 %v664_v26, %v664_v26  ;;  %v5026_v30 = vpop.f32.mrb[19].mxu1 }
 0x804   :  { %v670_v31 = vmul.f32 %v669_v29, %v664_v26 }
 0x806   :  { %v671_v32 = vmul.f32 0.044715, %v670_v31 }
 0x808   :  { %v672_v33 = vadd.f32 %v671_v32, %v664_v26 }
 0x80a   :  { %v673_v34 = vmul.f32 0.7978846, %v672_v33 }
 0x80c   :  { %5504 = vtanh.f32 %v673_v34 }
 0x816   :  { %v5505_v35 = vpop.eup %5504 }
 0x817   :  { %v675_v36 = vadd.f32 1.0, %v5505_v35 }
 0x819   :  { %v676_v37 = vmul.f32 0.5, %v675_v36 }
 0x81b   :  { %v677_v38 = vmul.f32 %v676_v37, %v664_v26 }
 0x81d   :  { %v678_v39 = vpack.c.bf16 %v677_v38, %v677_v38 }
 0x81f   :  { %5032 = vmatmul.mubr.msk.bf16.vlgmr.msra.gmra.mrb[12].mxu0 %vm163_vm3, %v678_v39  ;;  %v1011_v39 = vld [vmem:[%s7144_s27] sm:$0xf] }
 0x820   :  { %5047 = vmatprep.mubr.msk.bf16.mxu0 %vm5641_vm1, %v5640_v0  ;;  %5044 = vmatpush3.bf16.msra.mxu0 %v5418_v60  ;;  %v1016_v40 = vsel %vm86_vm0, %v1011_v39, 0  ;;  %v4689_v60 = vld [vmem:[%s7104_s4 + $0x20] sm:$0xff] }
 0x821   :  { %5045 = vmatprep.subr.bf16.mxu0 %v5640_v0 }
 0x824   :  { %5046 = vmatpush3.bf16.msra.mxu0 %v5419_v61  ;;  %v4713_v61 = vld [vmem:[%s7104_s4 + $0x28] sm:$0xff] }
 0x825   :  { %5059 = vmatprep.subr.bf16.mxu0 %v5640_v0 }
 0x8f2   :  { %v739_v44 = vpop.f32.mrb[12].mxu0 }
 0x8f3   :  { %v740_v45 = vadd.f32 %v5841_v43, %v739_v44  ;;  %v5033_v46 = vpop.f32.mrb[13].mxu0 }
 0x8f4   :  { %v742_v47 = vpop.f32.mrb[14].mxu0 }
 0x8f5   :  { %v745_v48 = vmul.f32 %v740_v45, %v740_v45  ;;  %v5034_v49 = vpop.f32.mrb[15].mxu0 }
 0x8f7   :  { %v746_v51 = vmul.f32 %v745_v48, %v740_v45 }
 0x8f9   :  { %v747_v52 = vmul.f32 0.044715, %v746_v51 }
 0x8fb   :  { %v748_v53 = vadd.f32 %v747_v52, %v740_v45 }
 0x8fd   :  { %v749_v54 = vmul.f32 0.7978846, %v748_v53 }
 0x8ff   :  { %5506 = vtanh.f32 %v749_v54  ;;  %v981_v54 = vpop.permute.xlu0 %980 }
 0x909   :  { %v5507_v55 = vpop.eup %5506 }
 0x90a   :  { %v751_v56 = vadd.f32 1.0, %v5507_v55  ;;  %v986_v55 = vpop.permute.xlu1 %985 }
 0x90c   :  { %v752_v57 = vmul.f32 0.5, %v751_v56 }
 0x90e   :  { %v753_v58 = vmul.f32 %v752_v57, %v740_v45 }
 0x910   :  { %v754_v59 = vpack.c.bf16 %v753_v58, %v753_v58  ;;  %997 = vst.msk [vmem:[#allocation2 + $0x8] sm:$0xff] %vm163_vm3, %v753_v58  ;;  %v4641_v58 = vld [vmem:[%s7104_s4 + $0x10] sm:$0xff] }
 0x912   :  { %5040 = vmatmul.mubr.msk.bf16.vlgmr.msra.gmra.mrb[20].mxu1 %vm163_vm3, %v754_v59  ;;  %v4665_v59 = vld [vmem:[%s7104_s4 + $0x18] sm:$0xff] }
 0x913   :  { %5055 = vmatprep.mubr.msk.bf16.mxu1 %vm5641_vm1, %v5640_v0  ;;  %5052 = vmatpush3.bf16.msra.mxu1 %v5420_v17  ;;  %v5422_v17 = vld [vmem:[%s7146_s9] sm:$0xff]  }
 0x914   :  { %5053 = vmatprep.subr.bf16.mxu1 %v5640_v0 }
 0x917   :  { %5054 = vmatpush3.bf16.msra.mxu1 %v5421_v19  ;;  %v5423_v19 = vld [vmem:[%s7146_s9 + $0x8] sm:$0xff]  }
 0x918   :  { %5065 = vmatprep.subr.bf16.mxu1 %v5640_v0 }
 0x9e5   :  { %v808_v2 = vpop.f32.mrb[20].mxu1 }
 0x9e6   :  { %v809_v1 = vadd.f32 %v4619_v63, %v808_v2  ;;  %v5041_v3 = vpop.f32.mrb[21].mxu1  ;;  %v4737_v63 = vld [vmem:[%s7104_s4 + $0x30] sm:$0xff]  ;;  %v4761_v2 = vld [vmem:[%s7104_s4 + $0x38] sm:$0xff] }
 0x9e7   :  { %v811_v4 = vpop.f32.mrb[22].mxu1 }
 0x9e8   :  { %v814_v5 = vmul.f32 %v809_v1, %v809_v1  ;;  %v5042_v6 = vpop.f32.mrb[23].mxu1 }
 0x9ea   :  { %v815_v8 = vmul.f32 %v814_v5, %v809_v1 }
 0x9ec   :  { %v816_v9 = vmul.f32 0.044715, %v815_v8 }
 0x9ee   :  { %v817_v10 = vadd.f32 %v816_v9, %v809_v1 }
 0x9f0   :  { %v818_v11 = vmul.f32 0.7978846, %v817_v10 }
 0x9f2   :  { %5508 = vtanh.f32 %v818_v11 }
 0x9fc   :  { %v5509_v12 = vpop.eup %5508 }
 0x9fd   :  { %v820_v13 = vadd.f32 1.0, %v5509_v12 }
 0x9ff   :  { %v821_v14 = vmul.f32 0.5, %v820_v13 }
 0xa01   :  { %v822_v15 = vmul.f32 %v821_v14, %v809_v1  ;;  %v972_v1 = vpop.permute.xlu0 %971 }
 0xa03   :  { %v823_v16 = vpack.c.bf16 %v822_v15, %v822_v15 }
 0xa05   :  { %5048 = vmatmul.mubr.msk.bf16.vlgmr.msra.gmra.mrb[16].mxu0 %vm163_vm3, %v823_v16 }
 0xa06   :  { %5061 = vmatprep.mubr.msk.bf16.mxu0 %vm5641_vm1, %v5640_v0  ;;  %5060 = vmatpush3.bf16.msra.mxu0 %v1016_v40 }
 0xa07   :  { %5073 = vmatprep.subr.bf16.mxu0 %v5640_v0 }
 0xad8   :  { %v884_v22 = vpop.f32.mrb[16].mxu0 }
 0xad9   :  { %v885_v24 = vadd.f32 %v5887_v23, %v884_v22  ;;  %v5049_v26 = vpop.f32.mrb[17].mxu0 }
 0xada   :  { %v887_v27 = vpop.f32.mrb[18].mxu0 }
 0xadb   :  { %v890_v28 = vmul.f32 %v885_v24, %v885_v24  ;;  %v5050_v29 = vpop.f32.mrb[19].mxu0 }
 0xadd   :  { %v891_v30 = vmul.f32 %v890_v28, %v885_v24 }
 0xadf   :  { %v892_v31 = vmul.f32 0.044715, %v891_v30 }
 0xae1   :  { %v893_v32 = vadd.f32 %v892_v31, %v885_v24 }
 0xae3   :  { %v894_v33 = vmul.f32 0.7978846, %v893_v32 }
 0xae5   :  { %5510 = vtanh.f32 %v894_v33 }
 0xaef   :  { %v5511_v34 = vpop.eup %5510 }
 0xaf0   :  { %v896_v35 = vadd.f32 1.0, %v5511_v34 }
 0xaf2   :  { %v897_v36 = vmul.f32 0.5, %v896_v35 }
 0xaf4   :  { %v898_v37 = vmul.f32 %v897_v36, %v885_v24 }
 0xaf6   :  { %v899_v38 = vpack.c.bf16 %v898_v37, %v898_v37 }
 0xaf8   :  { %5056 = vmatmul.mubr.msk.bf16.vlgmr.msra.gmra.mrb[24].mxu1 %vm163_vm3, %v899_v38  ;;  %v5425_v38 = vld [vmem:[%s7148_s26 + $0x8] sm:$0xff]  }
 0xaf9   :  { %5069 = vmatprep.mubr.msk.bf16.mxu1 %vm5641_vm1, %v5640_v0  ;;  %5066 = vmatpush3.bf16.msra.mxu1 %v5422_v17 }
 0xafa   :  { %5067 = vmatprep.subr.bf16.mxu1 %v5640_v0 }
 0xafd   :  { %5068 = vmatpush3.bf16.msra.mxu1 %v5423_v19 }
 0xafe   :  { %5081 = vmatprep.subr.bf16.mxu1 %v5640_v0 }
 0xbcb   :  { %v960_v41 = vpop.f32.mrb[24].mxu1 }
 0xbcc   :  { %v961_v44 = vadd.f32 %v5901_v42, %v960_v41  ;;  %v5057_v45 = vpop.f32.mrb[25].mxu1 }
 0xbcd   :  { %v963_v46 = vpop.f32.mrb[26].mxu1 }
 0xbce   :  { %5512 = vtanh.f32 %v961_v44  ;;  %v5058_v47 = vpop.f32.mrb[27].mxu1  ;;  %v974_v3 = vmul.f32 %v972_v1, %v961_v44 }
 0xbd0   :  { %v975_v4 = vadd.f32 %v974_v3, %v5909_v62 }
 0xbd8   :  { %v5513_v48 = vpop.eup %5512 }
 0xbd9   :  { %v5994_v49 = vmul.f32 4.0, %v5513_v48 }
 0xbdb   :  { %v976_v51 = vmul.f32 0.5, %v5994_v49 }
 0xbdd   :  { %v977_v52 = vmul.f32 1.442695, %v976_v51 }
 0xbdf   :  { %5514 = vpow2.f32 %v977_v52 }
 0xbe9   :  { %v5515_v53 = vpop.eup %5514 }
 0xbea   :  { %v983_v56 = vmul.f32 %v5515_v53, %v981_v54 }
 0xbec   :  { %v988_v57 = vmul.f32 %v986_v55, %v983_v56 }
 0xbee   :  { %990 = vrot.lane.b32.xlu1 %v988_v57, %s7153_s29 }
 0xbf2   :  { %1445 = vperm.xlu1 %5384, %v4641_v58  }
 0xbf6   :  { %5385 = vset.pattern.permute.xlu1 %v5642_v18 }
 0xbf7   :  { %1436 = vperm.xlu1 %5385, %v4641_v58   ;;  %v5427_v58 = vld [vmem:[%s7150_s25 + $0x8] sm:$0xff]  }
 0xbfb   :  { %5386 = vset.pattern.permute.xlu1 %v5643_v20 }
 0xbfc   :  { %1910 = vperm.xlu1 %5386, %v4665_v59  }
 0xc00   :  { %5387 = vset.pattern.permute.xlu1 %v5642_v18 }
 0xc01   :  { %1901 = vperm.xlu1 %5387, %v4665_v59  }
 0xc05   :  { %5388 = vset.pattern.permute.xlu1 %v5643_v20 }
 0xc06   :  { %2375 = vperm.xlu1 %5388, %v4689_v60  }
 0xc0a   :  { %5389 = vset.pattern.permute.xlu1 %v5642_v18 }
 0xc0b   :  { %2366 = vperm.xlu1 %5389, %v4689_v60  }
 0xc0f   :  { %5390 = vset.pattern.permute.xlu1 %v5643_v20 }
 0xc10   :  { %2840 = vperm.xlu1 %5390, %v4713_v61  }
 0xc14   :  { %5391 = vset.pattern.permute.xlu1 %v5642_v18 }
 0xc15   :  { %2831 = vperm.xlu1 %5391, %v4713_v61  }
 0xc19   :  { %5392 = vset.pattern.permute.xlu1 %v5643_v20 }
 0xc1a   :  { %3305 = vperm.xlu1 %5392, %v4737_v63  }
 0xc1e   :  { %5393 = vset.pattern.permute.xlu1 %v5642_v18 }
 0xc1f   :  { %3296 = vperm.xlu1 %5393, %v4737_v63  }
 0xc23   :  { %5394 = vset.pattern.permute.xlu1 %v5643_v20 }
 0xc24   :  { %3770 = vperm.xlu1 %5394, %v4761_v2  }
 0xc28   :  { %535 = vrot.lane.b32.xlu1 %v5904_v50, %s7153_s29 }
 0xc60   :  { %v991_v5 = vpop.permute.xlu1 %990 }
 0xc61   :  { %v6029_v6 = vadd.f32 %v991_v5, %v975_v4 }
 0xc63   :  { %4640 = vst.msk [vmem:[%s7108_s21 + $0x8] sm:$0xff] %vm82_vm2, %v6029_v6  ;;  %v1010_v18 = vpack.c.bf16 %v6029_v6, %v6029_v6 }
 0xc65   :  { %5062 = vmatmul.mubr.msk.bf16.vlgmr.msra.gmra.mrb[20].mxu0 %vm82_vm2, %v1010_v18 }
 0xc66   :  { %5077 = vmatprep.mubr.msk.bf16.mxu0 %vm5641_vm1, %v5640_v0 }
 0xc71   :  { %v6041_v20 = vpop.permute.xlu1 %1445 }
 0xc76   :  { %v6043_v50 = vpop.permute.xlu1 %1436 }
 0xc7b   :  { %v6045_v62 = vpop.permute.xlu1 %1910 }
 0xc80   :  { %v6047_v8 = vpop.permute.xlu1 %1901 }
 0xc85   :  { %v6049_v9 = vpop.permute.xlu1 %2375 }
 0xc8a   :  { %v6051_v10 = vpop.permute.xlu1 %2366 }
 0xc8f   :  { %v6053_v11 = vpop.permute.xlu1 %2840 }
 0xc94   :  { %v6055_v12 = vpop.permute.xlu1 %2831 }
 0xc99   :  { %v6057_v13 = vpop.permute.xlu1 %3305 }
 0xc9e   :  { %v6059_v14 = vpop.permute.xlu1 %3296 }
 0xca3   :  { %v6061_v15 = vpop.permute.xlu1 %3770 }
 0xca7   :  { %v536_v16 = vpop.permute.xlu1 %535 }
 0xca8   :  { %538 = vst.msk [vmem:[#allocation3] sm:$0xff] %vm82_vm2, %v536_v16 }
 0xd38   :  { %v1052_v21 = vpop.f32.mrb[20].mxu0 }
 0xd39   :  { %v1053_v22 = vadd.f32 %v1052_v21, %v5807_v7  ;;  %v5063_v24 = vpop.f32.mrb[21].mxu0  ;;  %v5424_v7 = vld [vmem:[%s7148_s26] sm:$0xff]  }
 0xd3a   :  { %v1055_v26 = vpop.f32.mrb[22].mxu0  ;;  %5074 = vmatpush3.bf16.msra.mxu0 %v5424_v7  ;;  %v5429_v24 = vld [vmem:[%s7152_s30 + $0x8] sm:$0xff]  }
 0xd3b   :  { %v1058_v27 = vmul.f32 %v1053_v22, %v1053_v22  ;;  %v5064_v28 = vpop.f32.mrb[23].mxu0  ;;  %5075 = vmatprep.subr.bf16.mxu0 %v5640_v0  ;;  %v4643_v26 = vld [vmem:[%s7102_s2 + $0x10] sm:$0xff] }
 0xd3d   :  { %v1059_v29 = vmul.f32 %v1058_v27, %v1053_v22 }
 0xd3e   :  { %5076 = vmatpush3.bf16.msra.mxu0 %v5425_v38 }
 0xd3f   :  { %v1060_v30 = vmul.f32 0.044715, %v1059_v29  ;;  %5089 = vmatprep.subr.bf16.mxu0 %v5640_v0 }
 0xd41   :  { %v1061_v31 = vadd.f32 %v1060_v30, %v1053_v22 }
 0xd43   :  { %v1062_v32 = vmul.f32 0.7978846, %v1061_v31 }
 0xd45   :  { %5516 = vtanh.f32 %v1062_v32 }
 0xd4f   :  { %v5517_v33 = vpop.eup %5516 }
 0xd50   :  { %v1064_v34 = vadd.f32 1.0, %v5517_v33 }
 0xd52   :  { %v1065_v35 = vmul.f32 0.5, %v1064_v34 }
 0xd54   :  { %v1066_v36 = vmul.f32 %v1065_v35, %v1053_v22 }
 0xd56   :  { %v1067_v37 = vpack.c.bf16 %v1066_v36, %v1066_v36 }
 0xd58   :  { %5070 = vmatmul.mubr.msk.bf16.vlgmr.msra.gmra.mrb[28].mxu1 %vm163_vm3, %v1067_v37 }
 0xd59   :  { %5085 = vmatprep.mubr.msk.bf16.mxu1 %vm5641_vm1, %v5640_v0 }
 0xe2b   :  { %v1128_v39 = vpop.f32.mrb[28].mxu1 }
 0xe2c   :  { %v1129_v40 = vadd.f32 %v5824_v25, %v1128_v39  ;;  %v5071_v41 = vpop.f32.mrb[29].mxu1  ;;  %v5426_v25 = vld [vmem:[%s7150_s25] sm:$0xff]  }
 0xe2d   :  { %v1131_v44 = vpop.f32.mrb[30].mxu1  ;;  %5082 = vmatpush3.bf16.msra.mxu1 %v5426_v25  ;;  %v5430_v41 = vld [vmem:[%s7103_s13] sm:$0xff]  }
 0xe2e   :  { %v1134_v45 = vmul.f32 %v1129_v40, %v1129_v40  ;;  %v5072_v46 = vpop.f32.mrb[31].mxu1  ;;  %5083 = vmatprep.subr.bf16.mxu1 %v5640_v0  ;;  %v5431_v44 = vld [vmem:[%s7103_s13 + $0x8] sm:$0xff]  }
 0xe30   :  { %v1135_v47 = vmul.f32 %v1134_v45, %v1129_v40  ;;  %v4642_v45 = vld [vmem:[%s7105_s3 + $0x10] sm:$0xff] }
 0xe31   :  { %5084 = vmatpush3.bf16.msra.mxu1 %v5427_v58  ;;  %1450 = vrot.lane.b32.xlu0 %v4642_v45, %s7154_s24 }
 0xe32   :  { %v1136_v48 = vmul.f32 0.044715, %v1135_v47  ;;  %5097 = vmatprep.subr.bf16.mxu1 %v5640_v0 }
 0xe34   :  { %v1137_v51 = vadd.f32 %v1136_v48, %v1129_v40 }
 0xe36   :  { %v1138_v52 = vmul.f32 0.7978846, %v1137_v51 }
 0xe38   :  { %5518 = vtanh.f32 %v1138_v52 }
 0xe42   :  { %v5519_v53 = vpop.eup %5518 }
 0xe43   :  { %v1140_v54 = vadd.f32 1.0, %v5519_v53 }
 0xe45   :  { %v1141_v55 = vmul.f32 0.5, %v1140_v54 }
 0xe47   :  { %v1142_v56 = vmul.f32 %v1141_v55, %v1129_v40 }
 0xe49   :  { %v1143_v57 = vpack.c.bf16 %v1142_v56, %v1142_v56 }
 0xe4b   :  { %5078 = vmatmul.mubr.msk.bf16.vlgmr.msra.gmra.mrb[24].mxu0 %vm163_vm3, %v1143_v57 }
 0xe4c   :  { %5093 = vmatprep.mubr.msk.bf16.mxu0 %vm5641_vm1, %v5640_v0 }
 0xf1e   :  { %v1204_v59 = vpop.f32.mrb[24].mxu0 }
 0xf1f   :  { %v1205_v60 = vadd.f32 %v5841_v43, %v1204_v59  ;;  %v5079_v61 = vpop.f32.mrb[25].mxu0  ;;  %v5428_v43 = vld [vmem:[%s7152_s30] sm:$0xff]  }
 0xf20   :  { %v1207_v63 = vpop.f32.mrb[26].mxu0  ;;  %5090 = vmatpush3.bf16.msra.mxu0 %v5428_v43 }
 0xf21   :  { %v1210_v2 = vmul.f32 %v1205_v60, %v1205_v60  ;;  %v5080_v1 = vpop.f32.mrb[27].mxu0  ;;  %5091 = vmatprep.subr.bf16.mxu0 %v5640_v0 }
 0xf23   :  { %v1211_v3 = vmul.f32 %v1210_v2, %v1205_v60 }
 0xf24   :  { %5092 = vmatpush3.bf16.msra.mxu0 %v5429_v24 }
 0xf25   :  { %v1212_v4 = vmul.f32 0.044715, %v1211_v3  ;;  %5105 = vmatprep.subr.bf16.mxu0 %v5640_v0 }
 0xf27   :  { %v1213_v5 = vadd.f32 %v1212_v4, %v1205_v60  ;;  %v1476_v4 = vld [vmem:[%s7144_s27] sm:$0xf] }
 0xf29   :  { %v1214_v18 = vmul.f32 0.7978846, %v1213_v5  ;;  %v1481_v5 = vsel %vm86_vm0, %v1476_v4, 0  ;;  %v5437_v4 = vld [vmem:[%s7150_s25 + $0x8] sm:$0xff]  }
 0xf2b   :  { %5520 = vtanh.f32 %v1214_v18 }
 0xf35   :  { %v5521_v16 = vpop.eup %5520 }
 0xf36   :  { %v1216_v17 = vadd.f32 1.0, %v5521_v16 }
 0xf38   :  { %v1217_v19 = vmul.f32 0.5, %v1216_v17 }
 0xf3a   :  { %v1218_v21 = vmul.f32 %v1217_v19, %v1205_v60 }
 0xf3c   :  { %v1219_v22 = vpack.c.bf16 %v1218_v21, %v1218_v21  ;;  %1462 = vst.msk [vmem:[#allocation2 + $0x10] sm:$0xff] %vm163_vm3, %v1218_v21  ;;  %v1451_v21 = vpop.permute.xlu0 %1450 }
 0xf3e   :  { %5086 = vmatmul.mubr.msk.bf16.vlgmr.msra.gmra.mrb[32].mxu1 %vm163_vm3, %v1219_v22 }
 0xf3f   :  { %5101 = vmatprep.mubr.msk.bf16.mxu1 %vm5641_vm1, %v5640_v0  ;;  %5098 = vmatpush3.bf16.msra.mxu1 %v5430_v41 }
 0xf40   :  { %5099 = vmatprep.subr.bf16.mxu1 %v5640_v0 }
 0xf43   :  { %5100 = vmatpush3.bf16.msra.mxu1 %v5431_v44 }
 0xf44   :  { %5111 = vmatprep.subr.bf16.mxu1 %v5640_v0 }
0x1011   :  { %v1273_v27 = vpop.f32.mrb[32].mxu1 }
0x1012   :  { %v1274_v28 = vadd.f32 %v4643_v26, %v1273_v27  ;;  %v5087_v29 = vpop.f32.mrb[33].mxu1 }
0x1013   :  { %v1276_v30 = vpop.f32.mrb[34].mxu1 }
0x1014   :  { %v1279_v31 = vmul.f32 %v1274_v28, %v1274_v28  ;;  %v5088_v32 = vpop.f32.mrb[35].mxu1 }
0x1016   :  { %v1280_v33 = vmul.f32 %v1279_v31, %v1274_v28  ;;  %v6166_v31 = vld [vmem:[%s7147_s8] sm:$0xff] }
0x1018   :  { %v1281_v34 = vmul.f32 0.044715, %v1280_v33 }
0x101a   :  { %v1282_v35 = vadd.f32 %v1281_v34, %v1274_v28 }
0x101c   :  { %v1283_v36 = vmul.f32 0.7978846, %v1282_v35 }
0x101e   :  { %5522 = vtanh.f32 %v1283_v36 }
0x1028   :  { %v5523_v37 = vpop.eup %5522 }
0x1029   :  { %v1285_v7 = vadd.f32 1.0, %v5523_v37 }
0x102b   :  { %v1286_v38 = vmul.f32 0.5, %v1285_v7 }
0x102d   :  { %v1287_v39 = vmul.f32 %v1286_v38, %v1274_v28 }
0x102f   :  { %v1288_v40 = vpack.c.bf16 %v1287_v39, %v1287_v39 }
0x1031   :  { %5094 = vmatmul.mubr.msk.bf16.vlgmr.msra.gmra.mrb[28].mxu0 %vm163_vm3, %v1288_v40 }
0x1032   :  { %5107 = vmatprep.mubr.msk.bf16.mxu0 %vm5641_vm1, %v5640_v0  ;;  %5106 = vmatpush3.bf16.msra.mxu0 %v1481_v5  ;;  %v6200_v5 = vld [vmem:[%s7151_s10] ss:$0 sm:$0xff] }
0x1033   :  { %5119 = vmatprep.subr.bf16.mxu0 %v5640_v0 }
0x1104   :  { %v1349_v46 = vpop.f32.mrb[28].mxu0 }
0x1105   :  { %v1350_v47 = vadd.f32 %v5887_v23, %v1349_v46  ;;  %v5095_v48 = vpop.f32.mrb[29].mxu0 }
0x1106   :  { %v1352_v51 = vpop.f32.mrb[30].mxu0  ;;  %v5435_v48 = vld [vmem:[%s7148_s26 + $0x8] sm:$0xff]  }
0x1107   :  { %v1355_v52 = vmul.f32 %v1350_v47, %v1350_v47  ;;  %v5096_v53 = vpop.f32.mrb[31].mxu0  ;;  %v6183_v51 = vld [vmem:[%s7149_s1] ss:$0 sm:$0xff] }
0x1109   :  { %v1356_v54 = vmul.f32 %v1355_v52, %v1350_v47 }
0x110b   :  { %v1357_v55 = vmul.f32 0.044715, %v1356_v54 }
0x110d   :  { %v1358_v56 = vadd.f32 %v1357_v55, %v1350_v47 }
0x110f   :  { %v1359_v57 = vmul.f32 0.7978846, %v1358_v56 }
0x1111   :  { %5524 = vtanh.f32 %v1359_v57 }
0x111b   :  { %v5525_v25 = vpop.eup %5524 }
0x111c   :  { %v1361_v58 = vadd.f32 1.0, %v5525_v25 }
0x111e   :  { %v1362_v59 = vmul.f32 0.5, %v1361_v58 }
0x1120   :  { %v1363_v60 = vmul.f32 %v1362_v59, %v1350_v47  ;;  %v5434_v47 = vld [vmem:[%s7148_s26] sm:$0xff]  }
0x1122   :  { %v1364_v61 = vpack.c.bf16 %v1363_v60, %v1363_v60 }
0x1124   :  { %5102 = vmatmul.mubr.msk.bf16.vlgmr.msra.gmra.mrb[36].mxu1 %vm163_vm3, %v1364_v61 }
0x1125   :  { %5115 = vmatprep.mubr.msk.bf16.mxu1 %vm5641_vm1, %v5640_v0 }
0x11f7   :  { %v1425_v23 = vpop.f32.mrb[36].mxu1 }
0x11f8   :  { %v1426_v63 = vadd.f32 %v5901_v42, %v1425_v23  ;;  %v5103_v2 = vpop.f32.mrb[37].mxu1 }
0x11f9   :  { %v1428_v1 = vpop.f32.mrb[38].mxu1 }
0x11fa   :  { %5526 = vtanh.f32 %v1426_v63  ;;  %v5104_v3 = vpop.f32.mrb[39].mxu1  ;;  %v1439_v26 = vmul.f32 %v6043_v50, %v1426_v63  ;;  %v5433_v50 = vld [vmem:[%s7146_s9 + $0x8] sm:$0xff]  }
0x11fb   :  { %v5436_v3 = vld [vmem:[%s7150_s25] sm:$0xff]  }
0x11fc   :  { %v1440_v27 = vadd.f32 %v1439_v26, %v6029_v6  ;;  %v5432_v6 = vld [vmem:[%s7146_s9] sm:$0xff]  }
0x11fd   :  { %5112 = vmatpush3.bf16.msra.mxu1 %v5432_v6 }
0x11fe   :  { %5113 = vmatprep.subr.bf16.mxu1 %v5640_v0 }
0x1201   :  { %5114 = vmatpush3.bf16.msra.mxu1 %v5433_v50 }
0x1202   :  { %5127 = vmatprep.subr.bf16.mxu1 %v5640_v0 }
0x1204   :  { %v5527_v18 = vpop.eup %5526 }
0x1205   :  { %v1432_v16 = vmul.f32 4.0, %v5527_v18 }
0x1207   :  { %1464 = vrot.lane.b32.xlu1 %v1432_v16, %s7153_s29  ;;  %v1441_v17 = vmul.f32 0.5, %v1432_v16 }
0x1209   :  { %v1442_v19 = vmul.f32 1.442695, %v1441_v17 }
0x120b   :  { %5528 = vpow2.f32 %v1442_v19 }
0x1215   :  { %v5529_v42 = vpop.eup %5528 }
0x1216   :  { %v1448_v22 = vmul.f32 %v5529_v42, %v6041_v20 }
0x1218   :  { %v1453_v43 = vmul.f32 %v1451_v21, %v1448_v22 }
0x121a   :  { %1455 = vrot.lane.b32.xlu0 %v1453_v43, %s7153_s29 }
0x1279   :  { %v1465_v24 = vpop.permute.xlu1 %1464 }
0x127a   :  { %1468 = vst.msk [vmem:[#allocation3 + $0x10] sm:$0xff] %vm82_vm2, %v1465_v24 }
0x128c   :  { %v1456_v28 = vpop.permute.xlu0 %1455 }
0x128d   :  { %v6143_v29 = vadd.f32 %v1456_v28, %v1440_v27 }
0x128f   :  { %4664 = vst.msk [vmem:[%s7108_s21 + $0x10] sm:$0xff] %vm82_vm2, %v6143_v29  ;;  %v1475_v20 = vpack.c.bf16 %v6143_v29, %v6143_v29 }
0x1291   :  { %5108 = vmatmul.mubr.msk.bf16.vlgmr.msra.gmra.mrb[32].mxu0 %vm82_vm2, %v1475_v20 }
0x1292   :  { %5123 = vmatprep.mubr.msk.bf16.mxu0 %vm5641_vm1, %v5640_v0  ;;  %5120 = vmatpush3.bf16.msra.mxu0 %v5434_v47 }
0x1293   :  { %5121 = vmatprep.subr.bf16.mxu0 %v5640_v0 }
0x1296   :  { %5122 = vmatpush3.bf16.msra.mxu0 %v5435_v48 }
0x1297   :  { %5135 = vmatprep.subr.bf16.mxu0 %v5640_v0 }
0x1364   :  { %v1517_v30 = vpop.f32.mrb[32].mxu0 }
0x1365   :  { %v1518_v32 = vadd.f32 %v6166_v31, %v1517_v30  ;;  %v5109_v33 = vpop.f32.mrb[33].mxu0  ;;  %v5438_v30 = vld [vmem:[%s7152_s30] sm:$0xff]  }
0x1366   :  { %v1520_v34 = vpop.f32.mrb[34].mxu0  ;;  %v4667_v33 = vld [vmem:[%s7102_s2 + $0x18] sm:$0xff] }
0x1367   :  { %v1523_v35 = vmul.f32 %v1518_v32, %v1518_v32  ;;  %v5110_v36 = vpop.f32.mrb[35].mxu0 }
0x1369   :  { %v1524_v37 = vmul.f32 %v1523_v35, %v1518_v32 }
0x136b   :  { %v1525_v7 = vmul.f32 0.044715, %v1524_v37 }
0x136d   :  { %v1526_v38 = vadd.f32 %v1525_v7, %v1518_v32 }
0x136f   :  { %v1527_v39 = vmul.f32 0.7978846, %v1526_v38 }
0x1371   :  { %5530 = vtanh.f32 %v1527_v39 }
0x137b   :  { %v5531_v40 = vpop.eup %5530 }
0x137c   :  { %v1529_v41 = vadd.f32 1.0, %v5531_v40 }
0x137e   :  { %v1530_v44 = vmul.f32 0.5, %v1529_v41 }
0x1380   :  { %v1531_v45 = vmul.f32 %v1530_v44, %v1518_v32  ;;  %v5439_v32 = vld [vmem:[%s7152_s30 + $0x8] sm:$0xff]  }
0x1382   :  { %v1532_v46 = vpack.c.bf16 %v1531_v45, %v1531_v45 }
0x1384   :  { %5116 = vmatmul.mubr.msk.bf16.vlgmr.msra.gmra.mrb[40].mxu1 %vm163_vm3, %v1532_v46 }
0x1385   :  { %5131 = vmatprep.mubr.msk.bf16.mxu1 %vm5641_vm1, %v5640_v0  ;;  %5128 = vmatpush3.bf16.msra.mxu1 %v5436_v3 }
0x1386   :  { %5129 = vmatprep.subr.bf16.mxu1 %v5640_v0 }
0x1389   :  { %5130 = vmatpush3.bf16.msra.mxu1 %v5437_v4 }
0x138a   :  { %5143 = vmatprep.subr.bf16.mxu1 %v5640_v0 }
0x1457   :  { %v1593_v52 = vpop.f32.mrb[40].mxu1 }
0x1458   :  { %v1594_v53 = vadd.f32 %v6183_v51, %v1593_v52  ;;  %v5117_v54 = vpop.f32.mrb[41].mxu1 }
0x1459   :  { %v1596_v55 = vpop.f32.mrb[42].mxu1  ;;  %v5441_v54 = vld [vmem:[%s7103_s13 + $0x8] sm:$0xff]  }
0x145a   :  { %v1599_v56 = vmul.f32 %v1594_v53, %v1594_v53  ;;  %v5118_v57 = vpop.f32.mrb[43].mxu1  ;;  %v4666_v55 = vld [vmem:[%s7105_s3 + $0x18] sm:$0xff] }
0x145b   :  { %1915 = vrot.lane.b32.xlu0 %v4666_v55, %s7154_s24 }
0x145c   :  { %v1600_v25 = vmul.f32 %v1599_v56, %v1594_v53  ;;  %v6236_v56 = vld [vmem:[%s7106_s12] ss:$0 sm:$0xff] }
0x145e   :  { %v1601_v58 = vmul.f32 0.044715, %v1600_v25 }
0x1460   :  { %v1602_v59 = vadd.f32 %v1601_v58, %v1594_v53 }
0x1462   :  { %v1603_v60 = vmul.f32 0.7978846, %v1602_v59 }
0x1464   :  { %5532 = vtanh.f32 %v1603_v60 }
0x146e   :  { %v5533_v61 = vpop.eup %5532 }
0x146f   :  { %v1605_v23 = vadd.f32 1.0, %v5533_v61 }
0x1471   :  { %v1606_v63 = vmul.f32 0.5, %v1605_v23 }
0x1473   :  { %v1607_v2 = vmul.f32 %v1606_v63, %v1594_v53  ;;  %v5440_v53 = vld [vmem:[%s7103_s13] sm:$0xff]  }
0x1475   :  { %v1608_v1 = vpack.c.bf16 %v1607_v2, %v1607_v2 }
0x1477   :  { %5124 = vmatmul.mubr.msk.bf16.vlgmr.msra.gmra.mrb[36].mxu0 %vm163_vm3, %v1608_v1 }
0x1478   :  { %5139 = vmatprep.mubr.msk.bf16.mxu0 %vm5641_vm1, %v5640_v0  ;;  %5136 = vmatpush3.bf16.msra.mxu0 %v5438_v30 }
0x1479   :  { %5137 = vmatprep.subr.bf16.mxu0 %v5640_v0 }
0x147c   :  { %5138 = vmatpush3.bf16.msra.mxu0 %v5439_v32 }
0x147d   :  { %5151 = vmatprep.subr.bf16.mxu0 %v5640_v0 }
0x14cd   :  { %v1916_v32 = vpop.permute.xlu0 %1915 }
0x154a   :  { %v1669_v18 = vpop.f32.mrb[36].mxu0 }
0x154b   :  { %v1670_v16 = vadd.f32 %v6200_v5, %v1669_v18  ;;  %v5125_v17 = vpop.f32.mrb[37].mxu0 }
0x154c   :  { %v1672_v19 = vpop.f32.mrb[38].mxu0 }
0x154d   :  { %v1675_v42 = vmul.f32 %v1670_v16, %v1670_v16  ;;  %v5126_v21 = vpop.f32.mrb[39].mxu0  ;;  %v1941_v19 = vld [vmem:[%s7144_s27] sm:$0xf] }
0x154e   :  { %v6250_v21 = vld [vmem:[%s7107_s14] ss:$0 sm:$0xff] }
0x154f   :  { %v1676_v22 = vmul.f32 %v1675_v42, %v1670_v16  ;;  %v1946_v42 = vsel %vm86_vm0, %v1941_v19, 0 }
0x1551   :  { %v1677_v43 = vmul.f32 0.044715, %v1676_v22 }
0x1553   :  { %v1678_v24 = vadd.f32 %v1677_v43, %v1670_v16 }
0x1555   :  { %v1679_v26 = vmul.f32 0.7978846, %v1678_v24 }
0x1557   :  { %5534 = vtanh.f32 %v1679_v26 }
0x1561   :  { %v5535_v27 = vpop.eup %5534 }
0x1562   :  { %v1681_v28 = vadd.f32 1.0, %v5535_v27 }
0x1564   :  { %v1682_v20 = vmul.f32 0.5, %v1681_v28 }
0x1566   :  { %v1683_v6 = vmul.f32 %v1682_v20, %v1670_v16 }
0x1568   :  { %v1684_v50 = vpack.c.bf16 %v1683_v6, %v1683_v6  ;;  %1927 = vst.msk [vmem:[#allocation2 + $0x18] sm:$0xff] %vm163_vm3, %v1683_v6 }
0x156a   :  { %5132 = vmatmul.mubr.msk.bf16.vlgmr.msra.gmra.mrb[44].mxu1 %vm163_vm3, %v1684_v50 }
0x156b   :  { %5147 = vmatprep.mubr.msk.bf16.mxu1 %vm5641_vm1, %v5640_v0  ;;  %5144 = vmatpush3.bf16.msra.mxu1 %v5440_v53 }
0x156c   :  { %5145 = vmatprep.subr.bf16.mxu1 %v5640_v0 }
0x156f   :  { %5146 = vmatpush3.bf16.msra.mxu1 %v5441_v54 }
0x1570   :  { %5157 = vmatprep.subr.bf16.mxu1 %v5640_v0 }
0x163d   :  { %v1738_v34 = vpop.f32.mrb[44].mxu1 }
0x163e   :  { %v1739_v35 = vadd.f32 %v4667_v33, %v1738_v34  ;;  %v5133_v36 = vpop.f32.mrb[45].mxu1 }
0x163f   :  { %v1741_v37 = vpop.f32.mrb[46].mxu1 }
0x1640   :  { %v1744_v7 = vmul.f32 %v1739_v35, %v1739_v35  ;;  %v5134_v38 = vpop.f32.mrb[47].mxu1 }
0x1642   :  { %v1745_v39 = vmul.f32 %v1744_v7, %v1739_v35 }
0x1644   :  { %v1746_v40 = vmul.f32 0.044715, %v1745_v39 }
0x1646   :  { %v1747_v41 = vadd.f32 %v1746_v40, %v1739_v35 }
0x1648   :  { %v1748_v44 = vmul.f32 0.7978846, %v1747_v41 }
0x164a   :  { %5536 = vtanh.f32 %v1748_v44 }
0x1654   :  { %v5537_v45 = vpop.eup %5536 }
0x1655   :  { %v1750_v46 = vadd.f32 1.0, %v5537_v45 }
0x1657   :  { %v1751_v47 = vmul.f32 0.5, %v1750_v46 }
0x1659   :  { %v1752_v48 = vmul.f32 %v1751_v47, %v1739_v35 }
0x165b   :  { %v1753_v52 = vpack.c.bf16 %v1752_v48, %v1752_v48 }
0x165d   :  { %5140 = vmatmul.mubr.msk.bf16.vlgmr.msra.gmra.mrb[40].mxu0 %vm163_vm3, %v1753_v52 }
0x165e   :  { %5153 = vmatprep.mubr.msk.bf16.mxu0 %vm5641_vm1, %v5640_v0  ;;  %5152 = vmatpush3.bf16.msra.mxu0 %v1946_v42 }
0x165f   :  { %5165 = vmatprep.subr.bf16.mxu0 %v5640_v0 }
0x1730   :  { %v1814_v57 = vpop.f32.mrb[40].mxu0 }
0x1731   :  { %v1815_v25 = vadd.f32 %v6236_v56, %v1814_v57  ;;  %v5141_v58 = vpop.f32.mrb[41].mxu0 }
0x1732   :  { %v1817_v59 = vpop.f32.mrb[42].mxu0  ;;  %v5444_v58 = vld [vmem:[%s7148_s26] sm:$0xff]  }
0x1733   :  { %v1820_v60 = vmul.f32 %v1815_v25, %v1815_v25  ;;  %v5142_v61 = vpop.f32.mrb[43].mxu0  ;;  %v5445_v59 = vld [vmem:[%s7148_s26 + $0x8] sm:$0xff]  }
0x1735   :  { %v1821_v23 = vmul.f32 %v1820_v60, %v1815_v25 }
0x1737   :  { %v1822_v63 = vmul.f32 0.044715, %v1821_v23 }
0x1739   :  { %v1823_v2 = vadd.f32 %v1822_v63, %v1815_v25 }
0x173b   :  { %v1824_v1 = vmul.f32 0.7978846, %v1823_v2 }
0x173d   :  { %5538 = vtanh.f32 %v1824_v1 }
0x1747   :  { %v5539_v3 = vpop.eup %5538 }
0x1748   :  { %v1826_v4 = vadd.f32 1.0, %v5539_v3 }
0x174a   :  { %v1827_v18 = vmul.f32 0.5, %v1826_v4 }
0x174c   :  { %v1828_v16 = vmul.f32 %v1827_v18, %v1815_v25 }
0x174e   :  { %v1829_v17 = vpack.c.bf16 %v1828_v16, %v1828_v16 }
0x1750   :  { %5148 = vmatmul.mubr.msk.bf16.vlgmr.msra.gmra.mrb[48].mxu1 %vm163_vm3, %v1829_v17 }
0x1751   :  { %5161 = vmatprep.mubr.msk.bf16.mxu1 %vm5641_vm1, %v5640_v0 }
0x1823   :  { %v1890_v22 = vpop.f32.mrb[48].mxu1 }
0x1824   :  { %v1891_v43 = vadd.f32 %v6250_v21, %v1890_v22  ;;  %v5149_v24 = vpop.f32.mrb[49].mxu1 }
0x1825   :  { %v1893_v26 = vpop.f32.mrb[50].mxu1  ;;  %v5446_v24 = vld [vmem:[%s7150_s25] sm:$0xff]  }
0x1826   :  { %5540 = vtanh.f32 %v1891_v43  ;;  %v5150_v27 = vpop.f32.mrb[51].mxu1  ;;  %v1904_v35 = vmul.f32 %v6047_v8, %v1891_v43  ;;  %v5443_v8 = vld [vmem:[%s7146_s9 + $0x8] sm:$0xff]  }
0x1827   :  { %v5447_v26 = vld [vmem:[%s7150_s25 + $0x8] sm:$0xff]  }
0x1828   :  { %v1905_v36 = vadd.f32 %v1904_v35, %v6143_v29 }
0x1830   :  { %v5541_v28 = vpop.eup %5540 }
0x1831   :  { %v6253_v20 = vmul.f32 4.0, %v5541_v28 }
0x1833   :  { %v1906_v6 = vmul.f32 0.5, %v6253_v20 }
0x1835   :  { %v1907_v50 = vmul.f32 1.442695, %v1906_v6 }
0x1837   :  { %5542 = vpow2.f32 %v1907_v50 }
0x1841   :  { %v5543_v30 = vpop.eup %5542 }
0x1842   :  { %v1913_v33 = vmul.f32 %v5543_v30, %v6045_v62  ;;  %v5442_v62 = vld [vmem:[%s7146_s9] sm:$0xff]  }
0x1843   :  { %5158 = vmatpush3.bf16.msra.mxu1 %v5442_v62 }
0x1844   :  { %v1918_v34 = vmul.f32 %v1916_v32, %v1913_v33  ;;  %5159 = vmatprep.subr.bf16.mxu1 %v5640_v0 }
0x1846   :  { %1920 = vrot.lane.b32.xlu0 %v1918_v34, %s7153_s29 }
0x1847   :  { %5160 = vmatpush3.bf16.msra.mxu1 %v5443_v8 }
0x1848   :  { %5173 = vmatprep.subr.bf16.mxu1 %v5640_v0 }
0x18b8   :  { %v1921_v37 = vpop.permute.xlu0 %1920 }
0x18b9   :  { %v6260_v7 = vadd.f32 %v1921_v37, %v1905_v36 }
0x18bb   :  { %4688 = vst.msk [vmem:[%s7108_s21 + $0x18] sm:$0xff] %vm82_vm2, %v6260_v7  ;;  %v1940_v38 = vpack.c.bf16 %v6260_v7, %v6260_v7 }
0x18bd   :  { %5154 = vmatmul.mubr.msk.bf16.vlgmr.msra.gmra.mrb[44].mxu0 %vm82_vm2, %v1940_v38 }
0x18be   :  { %5169 = vmatprep.mubr.msk.bf16.mxu0 %vm5641_vm1, %v5640_v0  ;;  %5166 = vmatpush3.bf16.msra.mxu0 %v5444_v58 }
0x18bf   :  { %5167 = vmatprep.subr.bf16.mxu0 %v5640_v0 }
0x18c2   :  { %5168 = vmatpush3.bf16.msra.mxu0 %v5445_v59 }
0x18c3   :  { %5181 = vmatprep.subr.bf16.mxu0 %v5640_v0 }
0x1990   :  { %v1982_v29 = vpop.f32.mrb[44].mxu0 }
0x1991   :  { %v1983_v39 = vadd.f32 %v6166_v31, %v1982_v29  ;;  %v5155_v40 = vpop.f32.mrb[45].mxu0 }
0x1992   :  { %v1985_v41 = vpop.f32.mrb[46].mxu0  ;;  %v5449_v40 = vld [vmem:[%s7152_s30 + $0x8] sm:$0xff]  }
0x1993   :  { %v1988_v44 = vmul.f32 %v1983_v39, %v1983_v39  ;;  %v5156_v45 = vpop.f32.mrb[47].mxu0  ;;  %v4691_v41 = vld [vmem:[%s7102_s2 + $0x20] sm:$0xff] }
0x1995   :  { %v1989_v46 = vmul.f32 %v1988_v44, %v1983_v39 }
0x1997   :  { %v1990_v47 = vmul.f32 0.044715, %v1989_v46 }
0x1999   :  { %v1991_v48 = vadd.f32 %v1990_v47, %v1983_v39 }
0x199b   :  { %v1992_v52 = vmul.f32 0.7978846, %v1991_v48 }
0x199d   :  { %5544 = vtanh.f32 %v1992_v52 }
0x19a7   :  { %v5545_v53 = vpop.eup %5544 }
0x19a8   :  { %v1994_v54 = vadd.f32 1.0, %v5545_v53 }
0x19aa   :  { %v1995_v55 = vmul.f32 0.5, %v1994_v54 }
0x19ac   :  { %v1996_v57 = vmul.f32 %v1995_v55, %v1983_v39  ;;  %v5448_v39 = vld [vmem:[%s7152_s30] sm:$0xff]  }
0x19ae   :  { %v1997_v25 = vpack.c.bf16 %v1996_v57, %v1996_v57 }
0x19b0   :  { %5162 = vmatmul.mubr.msk.bf16.vlgmr.msra.gmra.mrb[52].mxu1 %vm163_vm3, %v1997_v25 }
0x19b1   :  { %5177 = vmatprep.mubr.msk.bf16.mxu1 %vm5641_vm1, %v5640_v0  ;;  %5174 = vmatpush3.bf16.msra.mxu1 %v5446_v24 }
0x19b2   :  { %5175 = vmatprep.subr.bf16.mxu1 %v5640_v0 }
0x19b5   :  { %5176 = vmatpush3.bf16.msra.mxu1 %v5447_v26 }
0x19b6   :  { %5189 = vmatprep.subr.bf16.mxu1 %v5640_v0 }
0x1a83   :  { %v2058_v60 = vpop.f32.mrb[52].mxu1 }
0x1a84   :  { %v2059_v61 = vadd.f32 %v6183_v51, %v2058_v60  ;;  %v5163_v23 = vpop.f32.mrb[53].mxu1 }
0x1a85   :  { %v2061_v63 = vpop.f32.mrb[54].mxu1  ;;  %v5450_v23 = vld [vmem:[%s7103_s13] sm:$0xff]  }
0x1a86   :  { %v2064_v2 = vmul.f32 %v2059_v61, %v2059_v61  ;;  %v5164_v1 = vpop.f32.mrb[55].mxu1  ;;  %v5451_v63 = vld [vmem:[%s7103_s13 + $0x8] sm:$0xff]  }
0x1a88   :  { %v2065_v3 = vmul.f32 %v2064_v2, %v2059_v61  ;;  %v4690_v2 = vld [vmem:[%s7105_s3 + $0x20] sm:$0xff] }
0x1a89   :  { %2380 = vrot.lane.b32.xlu0 %v4690_v2, %s7154_s24 }
0x1a8a   :  { %v2066_v4 = vmul.f32 0.044715, %v2065_v3 }
0x1a8c   :  { %v2067_v18 = vadd.f32 %v2066_v4, %v2059_v61 }
0x1a8e   :  { %v2068_v16 = vmul.f32 0.7978846, %v2067_v18 }
0x1a90   :  { %5546 = vtanh.f32 %v2068_v16 }
0x1a9a   :  { %v5547_v17 = vpop.eup %5546 }
0x1a9b   :  { %v2070_v19 = vadd.f32 1.0, %v5547_v17 }
0x1a9d   :  { %v2071_v42 = vmul.f32 0.5, %v2070_v19 }
0x1a9f   :  { %v2072_v22 = vmul.f32 %v2071_v42, %v2059_v61 }
0x1aa1   :  { %v2073_v43 = vpack.c.bf16 %v2072_v22, %v2072_v22 }
0x1aa3   :  { %5170 = vmatmul.mubr.msk.bf16.vlgmr.msra.gmra.mrb[48].mxu0 %vm163_vm3, %v2073_v43 }
0x1aa4   :  { %5185 = vmatprep.mubr.msk.bf16.mxu0 %vm5641_vm1, %v5640_v0  ;;  %5182 = vmatpush3.bf16.msra.mxu0 %v5448_v39 }
0x1aa5   :  { %5183 = vmatprep.subr.bf16.mxu0 %v5640_v0 }
0x1aa8   :  { %5184 = vmatpush3.bf16.msra.mxu0 %v5449_v40 }
0x1aa9   :  { %5197 = vmatprep.subr.bf16.mxu0 %v5640_v0 }
0x1afb   :  { %v2381_v39 = vpop.permute.xlu0 %2380 }
0x1b76   :  { %v2134_v27 = vpop.f32.mrb[48].mxu0 }
0x1b77   :  { %v2135_v28 = vadd.f32 %v6200_v5, %v2134_v27  ;;  %v5171_v6 = vpop.f32.mrb[49].mxu0 }
0x1b78   :  { %v2137_v50 = vpop.f32.mrb[50].mxu0 }
0x1b79   :  { %v2140_v30 = vmul.f32 %v2135_v28, %v2135_v28  ;;  %v5172_v32 = vpop.f32.mrb[51].mxu0 }
0x1b7b   :  { %v2141_v33 = vmul.f32 %v2140_v30, %v2135_v28 }
0x1b7d   :  { %v2142_v34 = vmul.f32 0.044715, %v2141_v33 }
0x1b7f   :  { %v2143_v35 = vadd.f32 %v2142_v34, %v2135_v28 }
0x1b81   :  { %v2144_v36 = vmul.f32 0.7978846, %v2143_v35  ;;  %v2406_v35 = vld [vmem:[%s7144_s27] sm:$0xf] }
0x1b83   :  { %5548 = vtanh.f32 %v2144_v36  ;;  %v2411_v36 = vsel %vm86_vm0, %v2406_v35, 0  ;;  %v5457_v35 = vld [vmem:[%s7150_s25 + $0x8] sm:$0xff]  }
0x1b8d   :  { %v5549_v37 = vpop.eup %5548 }
0x1b8e   :  { %v2146_v38 = vadd.f32 1.0, %v5549_v37 }
0x1b90   :  { %v2147_v62 = vmul.f32 0.5, %v2146_v38 }
0x1b92   :  { %v2148_v8 = vmul.f32 %v2147_v62, %v2135_v28 }
0x1b94   :  { %v2149_v29 = vpack.c.bf16 %v2148_v8, %v2148_v8  ;;  %2392 = vst.msk [vmem:[#allocation2 + $0x20] sm:$0xff] %vm163_vm3, %v2148_v8 }
0x1b96   :  { %5178 = vmatmul.mubr.msk.bf16.vlgmr.msra.gmra.mrb[56].mxu1 %vm163_vm3, %v2149_v29 }
0x1b97   :  { %5193 = vmatprep.mubr.msk.bf16.mxu1 %vm5641_vm1, %v5640_v0  ;;  %5190 = vmatpush3.bf16.msra.mxu1 %v5450_v23 }
0x1b98   :  { %5191 = vmatprep.subr.bf16.mxu1 %v5640_v0 }
0x1b9b   :  { %5192 = vmatpush3.bf16.msra.mxu1 %v5451_v63 }
0x1b9c   :  { %5203 = vmatprep.subr.bf16.mxu1 %v5640_v0 }
0x1c69   :  { %v2203_v44 = vpop.f32.mrb[56].mxu1 }
0x1c6a   :  { %v2204_v45 = vadd.f32 %v4691_v41, %v2203_v44  ;;  %v5179_v46 = vpop.f32.mrb[57].mxu1 }
0x1c6b   :  { %v2206_v47 = vpop.f32.mrb[58].mxu1 }
0x1c6c   :  { %v2209_v48 = vmul.f32 %v2204_v45, %v2204_v45  ;;  %v5180_v52 = vpop.f32.mrb[59].mxu1 }
0x1c6e   :  { %v2210_v53 = vmul.f32 %v2209_v48, %v2204_v45 }
0x1c70   :  { %v2211_v54 = vmul.f32 0.044715, %v2210_v53 }
0x1c72   :  { %v2212_v55 = vadd.f32 %v2211_v54, %v2204_v45 }
0x1c74   :  { %v2213_v57 = vmul.f32 0.7978846, %v2212_v55 }
0x1c76   :  { %5550 = vtanh.f32 %v2213_v57 }
0x1c80   :  { %v5551_v25 = vpop.eup %5550 }
0x1c81   :  { %v2215_v58 = vadd.f32 1.0, %v5551_v25 }
0x1c83   :  { %v2216_v59 = vmul.f32 0.5, %v2215_v58 }
0x1c85   :  { %v2217_v60 = vmul.f32 %v2216_v59, %v2204_v45 }
0x1c87   :  { %v2218_v61 = vpack.c.bf16 %v2217_v60, %v2217_v60 }
0x1c89   :  { %5186 = vmatmul.mubr.msk.bf16.vlgmr.msra.gmra.mrb[52].mxu0 %vm163_vm3, %v2218_v61 }
0x1c8a   :  { %5199 = vmatprep.mubr.msk.bf16.mxu0 %vm5641_vm1, %v5640_v0  ;;  %5198 = vmatpush3.bf16.msra.mxu0 %v2411_v36 }
0x1c8b   :  { %5211 = vmatprep.subr.bf16.mxu0 %v5640_v0 }
0x1d5c   :  { %v2279_v1 = vpop.f32.mrb[52].mxu0 }
0x1d5d   :  { %v2280_v3 = vadd.f32 %v6236_v56, %v2279_v1  ;;  %v5187_v4 = vpop.f32.mrb[53].mxu0 }
0x1d5e   :  { %v2282_v18 = vpop.f32.mrb[54].mxu0  ;;  %v5454_v4 = vld [vmem:[%s7148_s26] sm:$0xff]  }
0x1d5f   :  { %v2285_v16 = vmul.f32 %v2280_v3, %v2280_v3  ;;  %v5188_v17 = vpop.f32.mrb[55].mxu0  ;;  %v5455_v18 = vld [vmem:[%s7148_s26 + $0x8] sm:$0xff]  }
0x1d61   :  { %v2286_v19 = vmul.f32 %v2285_v16, %v2280_v3 }
0x1d63   :  { %v2287_v42 = vmul.f32 0.044715, %v2286_v19 }
0x1d65   :  { %v2288_v22 = vadd.f32 %v2287_v42, %v2280_v3 }
0x1d67   :  { %v2289_v43 = vmul.f32 0.7978846, %v2288_v22 }
0x1d69   :  { %5552 = vtanh.f32 %v2289_v43 }
0x1d73   :  { %v5553_v24 = vpop.eup %5552 }
0x1d74   :  { %v2291_v26 = vadd.f32 1.0, %v5553_v24 }
0x1d76   :  { %v2292_v27 = vmul.f32 0.5, %v2291_v26 }
0x1d78   :  { %v2293_v28 = vmul.f32 %v2292_v27, %v2280_v3 }
0x1d7a   :  { %v2294_v6 = vpack.c.bf16 %v2293_v28, %v2293_v28 }
0x1d7c   :  { %5194 = vmatmul.mubr.msk.bf16.vlgmr.msra.gmra.mrb[60].mxu1 %vm163_vm3, %v2294_v6 }
0x1d7d   :  { %5207 = vmatprep.mubr.msk.bf16.mxu1 %vm5641_vm1, %v5640_v0 }
0x1e4f   :  { %v2355_v50 = vpop.f32.mrb[60].mxu1 }
0x1e50   :  { %v2356_v30 = vadd.f32 %v6250_v21, %v2355_v50  ;;  %v5195_v32 = vpop.f32.mrb[61].mxu1 }
0x1e51   :  { %v2358_v33 = vpop.f32.mrb[62].mxu1 }
0x1e52   :  { %5554 = vtanh.f32 %v2356_v30  ;;  %v5196_v34 = vpop.f32.mrb[63].mxu1  ;;  %v2369_v45 = vmul.f32 %v6051_v10, %v2356_v30  ;;  %v5452_v10 = vld [vmem:[%s7146_s9] sm:$0xff]  }
0x1e53   :  { %5204 = vmatpush3.bf16.msra.mxu1 %v5452_v10  ;;  %v5456_v34 = vld [vmem:[%s7150_s25] sm:$0xff]  }
0x1e54   :  { %v2370_v46 = vadd.f32 %v2369_v45, %v6260_v7  ;;  %5205 = vmatprep.subr.bf16.mxu1 %v5640_v0  ;;  %v5453_v7 = vld [vmem:[%s7146_s9 + $0x8] sm:$0xff]  }
0x1e57   :  { %5206 = vmatpush3.bf16.msra.mxu1 %v5453_v7  ;;  %v5458_v7 = vld [vmem:[%s7152_s30] sm:$0xff]  }
0x1e58   :  { %5219 = vmatprep.subr.bf16.mxu1 %v5640_v0 }
0x1e5c   :  { %v5555_v37 = vpop.eup %5554 }
0x1e5d   :  { %v2362_v38 = vmul.f32 4.0, %v5555_v37 }
0x1e5f   :  { %2394 = vrot.lane.b32.xlu1 %v2362_v38, %s7153_s29  ;;  %v2371_v62 = vmul.f32 0.5, %v2362_v38 }
0x1e61   :  { %v2372_v8 = vmul.f32 1.442695, %v2371_v62 }
0x1e63   :  { %5556 = vpow2.f32 %v2372_v8 }
0x1e6d   :  { %v5557_v29 = vpop.eup %5556 }
0x1e6e   :  { %v2378_v40 = vmul.f32 %v5557_v29, %v6049_v9 }
0x1e70   :  { %v2383_v41 = vmul.f32 %v2381_v39, %v2378_v40 }
0x1e72   :  { %2385 = vrot.lane.b32.xlu0 %v2383_v41, %s7153_s29 }
0x1ed1   :  { %v2395_v44 = vpop.permute.xlu1 %2394 }
0x1ed2   :  { %2398 = vst.msk [vmem:[#allocation3 + $0x20] sm:$0xff] %vm82_vm2, %v2395_v44 }
0x1ee4   :  { %v2386_v47 = vpop.permute.xlu0 %2385 }
0x1ee5   :  { %v6351_v48 = vadd.f32 %v2386_v47, %v2370_v46 }
0x1ee7   :  { %4712 = vst.msk [vmem:[%s7108_s21 + $0x20] sm:$0xff] %vm82_vm2, %v6351_v48  ;;  %v2405_v9 = vpack.c.bf16 %v6351_v48, %v6351_v48 }
0x1ee9   :  { %5200 = vmatmul.mubr.msk.bf16.vlgmr.msra.gmra.mrb[56].mxu0 %vm82_vm2, %v2405_v9 }
0x1eea   :  { %5215 = vmatprep.mubr.msk.bf16.mxu0 %vm5641_vm1, %v5640_v0  ;;  %5212 = vmatpush3.bf16.msra.mxu0 %v5454_v4 }
0x1eeb   :  { %5213 = vmatprep.subr.bf16.mxu0 %v5640_v0 }
0x1eee   :  { %5214 = vmatpush3.bf16.msra.mxu0 %v5455_v18 }
0x1eef   :  { %5227 = vmatprep.subr.bf16.mxu0 %v5640_v0 }
0x1fbc   :  { %v2447_v52 = vpop.f32.mrb[56].mxu0 }
0x1fbd   :  { %v2448_v53 = vadd.f32 %v6166_v31, %v2447_v52  ;;  %v5201_v54 = vpop.f32.mrb[57].mxu0  ;;  %v5459_v52 = vld [vmem:[%s7152_s30 + $0x8] sm:$0xff]  }
0x1fbe   :  { %v2450_v55 = vpop.f32.mrb[58].mxu0 }
0x1fbf   :  { %v2453_v57 = vmul.f32 %v2448_v53, %v2448_v53  ;;  %v5202_v25 = vpop.f32.mrb[59].mxu0 }
0x1fc1   :  { %v2454_v58 = vmul.f32 %v2453_v57, %v2448_v53 }
0x1fc3   :  { %v2455_v59 = vmul.f32 0.044715, %v2454_v58 }
0x1fc5   :  { %v2456_v60 = vadd.f32 %v2455_v59, %v2448_v53 }
0x1fc7   :  { %v2457_v61 = vmul.f32 0.7978846, %v2456_v60 }
0x1fc9   :  { %5558 = vtanh.f32 %v2457_v61 }
0x1fd3   :  { %v5559_v23 = vpop.eup %5558 }
0x1fd4   :  { %v2459_v63 = vadd.f32 1.0, %v5559_v23 }
0x1fd6   :  { %v2460_v2 = vmul.f32 0.5, %v2459_v63 }
0x1fd8   :  { %v2461_v1 = vmul.f32 %v2460_v2, %v2448_v53  ;;  %v4715_v53 = vld [vmem:[%s7102_s2 + $0x28] sm:$0xff] }
0x1fda   :  { %v2462_v3 = vpack.c.bf16 %v2461_v1, %v2461_v1 }
0x1fdc   :  { %5208 = vmatmul.mubr.msk.bf16.vlgmr.msra.gmra.mrb[64].mxu1 %vm163_vm3, %v2462_v3 }
0x1fdd   :  { %5223 = vmatprep.mubr.msk.bf16.mxu1 %vm5641_vm1, %v5640_v0  ;;  %5220 = vmatpush3.bf16.msra.mxu1 %v5456_v34 }
0x1fde   :  { %5221 = vmatprep.subr.bf16.mxu1 %v5640_v0 }
0x1fe1   :  { %5222 = vmatpush3.bf16.msra.mxu1 %v5457_v35 }
0x1fe2   :  { %5235 = vmatprep.subr.bf16.mxu1 %v5640_v0 }
0x20af   :  { %v2523_v16 = vpop.f32.mrb[64].mxu1 }
0x20b0   :  { %v2524_v17 = vadd.f32 %v6183_v51, %v2523_v16  ;;  %v5209_v19 = vpop.f32.mrb[65].mxu1  ;;  %v5460_v16 = vld [vmem:[%s7103_s13] sm:$0xff]  }
0x20b1   :  { %v2526_v42 = vpop.f32.mrb[66].mxu1  ;;  %v4714_v19 = vld [vmem:[%s7105_s3 + $0x28] sm:$0xff] }
0x20b2   :  { %v2529_v22 = vmul.f32 %v2524_v17, %v2524_v17  ;;  %v5210_v43 = vpop.f32.mrb[67].mxu1  ;;  %2845 = vrot.lane.b32.xlu0 %v4714_v19, %s7154_s24  ;;  %v5465_v19 = vld [vmem:[%s7148_s26 + $0x8] sm:$0xff]  }
0x20b4   :  { %v2530_v24 = vmul.f32 %v2529_v22, %v2524_v17 }
0x20b6   :  { %v2531_v26 = vmul.f32 0.044715, %v2530_v24 }
0x20b8   :  { %v2532_v27 = vadd.f32 %v2531_v26, %v2524_v17 }
0x20ba   :  { %v2533_v28 = vmul.f32 0.7978846, %v2532_v27 }
0x20bc   :  { %5560 = vtanh.f32 %v2533_v28 }
0x20c6   :  { %v5561_v6 = vpop.eup %5560 }
0x20c7   :  { %v2535_v50 = vadd.f32 1.0, %v5561_v6 }
0x20c9   :  { %v2536_v30 = vmul.f32 0.5, %v2535_v50 }
0x20cb   :  { %v2537_v32 = vmul.f32 %v2536_v30, %v2524_v17  ;;  %v5461_v17 = vld [vmem:[%s7103_s13 + $0x8] sm:$0xff]  }
0x20cd   :  { %v2538_v33 = vpack.c.bf16 %v2537_v32, %v2537_v32 }
0x20cf   :  { %5216 = vmatmul.mubr.msk.bf16.vlgmr.msra.gmra.mrb[60].mxu0 %vm163_vm3, %v2538_v33 }
0x20d0   :  { %5231 = vmatprep.mubr.msk.bf16.mxu0 %vm5641_vm1, %v5640_v0  ;;  %5228 = vmatpush3.bf16.msra.mxu0 %v5458_v7 }
0x20d1   :  { %5229 = vmatprep.subr.bf16.mxu0 %v5640_v0 }
0x20d4   :  { %5230 = vmatpush3.bf16.msra.mxu0 %v5459_v52 }
0x20d5   :  { %5243 = vmatprep.subr.bf16.mxu0 %v5640_v0 }
0x21a2   :  { %v2599_v36 = vpop.f32.mrb[60].mxu0 }
0x21a3   :  { %v2600_v37 = vadd.f32 %v6200_v5, %v2599_v36  ;;  %v5217_v38 = vpop.f32.mrb[61].mxu0 }
0x21a4   :  { %v2602_v62 = vpop.f32.mrb[62].mxu0 }
0x21a5   :  { %v2605_v8 = vmul.f32 %v2600_v37, %v2600_v37  ;;  %v5218_v29 = vpop.f32.mrb[63].mxu0 }
0x21a7   :  { %v2606_v39 = vmul.f32 %v2605_v8, %v2600_v37 }
0x21a9   :  { %v2607_v40 = vmul.f32 0.044715, %v2606_v39 }
0x21ab   :  { %v2608_v41 = vadd.f32 %v2607_v40, %v2600_v37 }
0x21ad   :  { %v2609_v44 = vmul.f32 0.7978846, %v2608_v41 }
0x21af   :  { %5562 = vtanh.f32 %v2609_v44 }
0x21b9   :  { %v5563_v45 = vpop.eup %5562 }
0x21ba   :  { %v2611_v46 = vadd.f32 1.0, %v5563_v45 }
0x21bc   :  { %v2612_v47 = vmul.f32 0.5, %v2611_v46 }
0x21be   :  { %v2613_v9 = vmul.f32 %v2612_v47, %v2600_v37  ;;  %v2871_v37 = vld [vmem:[%s7144_s27] sm:$0xf] }
0x21bf   :  { %v2876_v38 = vsel %vm86_vm0, %v2871_v37, 0  ;;  %v5467_v37 = vld [vmem:[%s7150_s25 + $0x8] sm:$0xff]  }
0x21c0   :  { %v2614_v10 = vpack.c.bf16 %v2613_v9, %v2613_v9  ;;  %2857 = vst.msk [vmem:[#allocation2 + $0x28] sm:$0xff] %vm163_vm3, %v2613_v9  ;;  %v2846_v9 = vpop.permute.xlu0 %2845 }
0x21c2   :  { %5224 = vmatmul.mubr.msk.bf16.vlgmr.msra.gmra.mrb[68].mxu1 %vm163_vm3, %v2614_v10 }
0x21c3   :  { %5239 = vmatprep.mubr.msk.bf16.mxu1 %vm5641_vm1, %v5640_v0  ;;  %5236 = vmatpush3.bf16.msra.mxu1 %v5460_v16 }
0x21c4   :  { %5237 = vmatprep.subr.bf16.mxu1 %v5640_v0 }
0x21c7   :  { %5238 = vmatpush3.bf16.msra.mxu1 %v5461_v17 }
0x21c8   :  { %5249 = vmatprep.subr.bf16.mxu1 %v5640_v0 }
0x2295   :  { %v2668_v54 = vpop.f32.mrb[68].mxu1 }
0x2296   :  { %v2669_v55 = vadd.f32 %v4715_v53, %v2668_v54  ;;  %v5225_v57 = vpop.f32.mrb[69].mxu1 }
0x2297   :  { %v2671_v25 = vpop.f32.mrb[70].mxu1 }
0x2298   :  { %v2674_v58 = vmul.f32 %v2669_v55, %v2669_v55  ;;  %v5226_v59 = vpop.f32.mrb[71].mxu1 }
0x229a   :  { %v2675_v60 = vmul.f32 %v2674_v58, %v2669_v55 }
0x229c   :  { %v2676_v61 = vmul.f32 0.044715, %v2675_v60 }
0x229e   :  { %v2677_v23 = vadd.f32 %v2676_v61, %v2669_v55 }
0x22a0   :  { %v2678_v63 = vmul.f32 0.7978846, %v2677_v23 }
0x22a2   :  { %5564 = vtanh.f32 %v2678_v63 }
0x22ac   :  { %v5565_v2 = vpop.eup %5564 }
0x22ad   :  { %v2680_v1 = vadd.f32 1.0, %v5565_v2 }
0x22af   :  { %v2681_v3 = vmul.f32 0.5, %v2680_v1 }
0x22b1   :  { %v2682_v4 = vmul.f32 %v2681_v3, %v2669_v55 }
0x22b3   :  { %v2683_v18 = vpack.c.bf16 %v2682_v4, %v2682_v4 }
0x22b5   :  { %5232 = vmatmul.mubr.msk.bf16.vlgmr.msra.gmra.mrb[64].mxu0 %vm163_vm3, %v2683_v18 }
0x22b6   :  { %5245 = vmatprep.mubr.msk.bf16.mxu0 %vm5641_vm1, %v5640_v0  ;;  %5244 = vmatpush3.bf16.msra.mxu0 %v2876_v38 }
0x22b7   :  { %5257 = vmatprep.subr.bf16.mxu0 %v5640_v0 }
0x2388   :  { %v2744_v42 = vpop.f32.mrb[64].mxu0 }
0x2389   :  { %v2745_v22 = vadd.f32 %v6236_v56, %v2744_v42  ;;  %v5233_v43 = vpop.f32.mrb[65].mxu0 }
0x238a   :  { %v2747_v24 = vpop.f32.mrb[66].mxu0 }
0x238b   :  { %v2750_v26 = vmul.f32 %v2745_v22, %v2745_v22  ;;  %v5234_v27 = vpop.f32.mrb[67].mxu0 }
0x238d   :  { %v2751_v28 = vmul.f32 %v2750_v26, %v2745_v22 }
0x238f   :  { %v2752_v6 = vmul.f32 0.044715, %v2751_v28 }
0x2391   :  { %v2753_v50 = vadd.f32 %v2752_v6, %v2745_v22 }
0x2393   :  { %v2754_v30 = vmul.f32 0.7978846, %v2753_v50 }
0x2395   :  { %5566 = vtanh.f32 %v2754_v30 }
0x239f   :  { %v5567_v32 = vpop.eup %5566 }
0x23a0   :  { %v2756_v33 = vadd.f32 1.0, %v5567_v32 }
0x23a2   :  { %v2757_v34 = vmul.f32 0.5, %v2756_v33 }
0x23a4   :  { %v2758_v35 = vmul.f32 %v2757_v34, %v2745_v22 }
0x23a6   :  { %v2759_v36 = vpack.c.bf16 %v2758_v35, %v2758_v35 }
0x23a8   :  { %5240 = vmatmul.mubr.msk.bf16.vlgmr.msra.gmra.mrb[72].mxu1 %vm163_vm3, %v2759_v36 }
0x23a9   :  { %5253 = vmatprep.mubr.msk.bf16.mxu1 %vm5641_vm1, %v5640_v0 }
0x247b   :  { %v2820_v62 = vpop.f32.mrb[72].mxu1 }
0x247c   :  { %v2821_v8 = vadd.f32 %v6250_v21, %v2820_v62  ;;  %v5241_v29 = vpop.f32.mrb[73].mxu1 }
0x247d   :  { %v2823_v39 = vpop.f32.mrb[74].mxu1 }
0x247e   :  { %5568 = vtanh.f32 %v2821_v8  ;;  %v5242_v40 = vpop.f32.mrb[75].mxu1  ;;  %v2834_v52 = vmul.f32 %v6055_v12, %v2821_v8  ;;  %v5463_v12 = vld [vmem:[%s7146_s9 + $0x8] sm:$0xff]  }
0x2480   :  { %v2835_v53 = vadd.f32 %v2834_v52, %v6351_v48 }
0x2488   :  { %v5569_v41 = vpop.eup %5568 }
0x2489   :  { %v6436_v44 = vmul.f32 4.0, %v5569_v41 }
0x248b   :  { %v2836_v45 = vmul.f32 0.5, %v6436_v44 }
0x248d   :  { %v2837_v46 = vmul.f32 1.442695, %v2836_v45 }
0x248f   :  { %5570 = vpow2.f32 %v2837_v46 }
0x2499   :  { %v5571_v47 = vpop.eup %5570 }
0x249a   :  { %v2843_v10 = vmul.f32 %v5571_v47, %v6053_v11  ;;  %v5462_v11 = vld [vmem:[%s7146_s9] sm:$0xff]  }
0x249b   :  { %5250 = vmatpush3.bf16.msra.mxu1 %v5462_v11 }
0x249c   :  { %v2848_v7 = vmul.f32 %v2846_v9, %v2843_v10  ;;  %5251 = vmatprep.subr.bf16.mxu1 %v5640_v0 }
0x249e   :  { %2850 = vrot.lane.b32.xlu0 %v2848_v7, %s7153_s29 }
0x249f   :  { %5252 = vmatpush3.bf16.msra.mxu1 %v5463_v12 }
0x24a0   :  { %5265 = vmatprep.subr.bf16.mxu1 %v5640_v0 }
0x2510   :  { %v2851_v54 = vpop.permute.xlu0 %2850 }
0x2511   :  { %v6443_v55 = vadd.f32 %v2851_v54, %v2835_v53  ;;  %v5469_v54 = vld [vmem:[%s7152_s30 + $0x8] sm:$0xff]  }
0x2513   :  { %4736 = vst.msk [vmem:[%s7108_s21 + $0x28] sm:$0xff] %vm82_vm2, %v6443_v55  ;;  %v2870_v57 = vpack.c.bf16 %v6443_v55, %v6443_v55 }
0x2515   :  { %5246 = vmatmul.mubr.msk.bf16.vlgmr.msra.gmra.mrb[68].mxu0 %vm82_vm2, %v2870_v57  ;;  %v4739_v57 = vld [vmem:[%s7102_s2 + $0x30] sm:$0xff] }
0x2516   :  { %5261 = vmatprep.mubr.msk.bf16.mxu0 %vm5641_vm1, %v5640_v0 }
0x25e8   :  { %v2912_v48 = vpop.f32.mrb[68].mxu0 }
0x25e9   :  { %v2913_v25 = vadd.f32 %v6166_v31, %v2912_v48  ;;  %v5247_v58 = vpop.f32.mrb[69].mxu0  ;;  %v5464_v31 = vld [vmem:[%s7148_s26] sm:$0xff]  }
0x25ea   :  { %v2915_v59 = vpop.f32.mrb[70].mxu0  ;;  %5258 = vmatpush3.bf16.msra.mxu0 %v5464_v31  ;;  %v4738_v31 = vld [vmem:[%s7105_s3 + $0x30] sm:$0xff] }
0x25eb   :  { %v2918_v60 = vmul.f32 %v2913_v25, %v2913_v25  ;;  %v5248_v61 = vpop.f32.mrb[71].mxu0  ;;  %5259 = vmatprep.subr.bf16.mxu0 %v5640_v0  ;;  %3310 = vrot.lane.b32.xlu0 %v4738_v31, %s7154_s24 }
0x25ed   :  { %v2919_v23 = vmul.f32 %v2918_v60, %v2913_v25 }
0x25ee   :  { %5260 = vmatpush3.bf16.msra.mxu0 %v5465_v19 }
0x25ef   :  { %v2920_v63 = vmul.f32 0.044715, %v2919_v23  ;;  %5273 = vmatprep.subr.bf16.mxu0 %v5640_v0 }
0x25f1   :  { %v2921_v2 = vadd.f32 %v2920_v63, %v2913_v25 }
0x25f3   :  { %v2922_v1 = vmul.f32 0.7978846, %v2921_v2 }
0x25f5   :  { %5572 = vtanh.f32 %v2922_v1 }
0x25ff   :  { %v5573_v3 = vpop.eup %5572 }
0x2600   :  { %v2924_v4 = vadd.f32 1.0, %v5573_v3 }
0x2602   :  { %v2925_v18 = vmul.f32 0.5, %v2924_v4 }
0x2604   :  { %v2926_v16 = vmul.f32 %v2925_v18, %v2913_v25 }
0x2606   :  { %v2927_v17 = vpack.c.bf16 %v2926_v16, %v2926_v16  ;;  %v5470_v16 = vld [vmem:[%s7103_s13] sm:$0xff]  }
0x2608   :  { %5254 = vmatmul.mubr.msk.bf16.vlgmr.msra.gmra.mrb[76].mxu1 %vm163_vm3, %v2927_v17  ;;  %v5471_v17 = vld [vmem:[%s7103_s13 + $0x8] sm:$0xff]  }
0x2609   :  { %5269 = vmatprep.mubr.msk.bf16.mxu1 %vm5641_vm1, %v5640_v0 }
0x26db   :  { %v2988_v42 = vpop.f32.mrb[76].mxu1 }
0x26dc   :  { %v2989_v22 = vadd.f32 %v6183_v51, %v2988_v42  ;;  %v5255_v43 = vpop.f32.mrb[77].mxu1  ;;  %v5466_v51 = vld [vmem:[%s7150_s25] sm:$0xff]  }
0x26dd   :  { %v2991_v24 = vpop.f32.mrb[78].mxu1  ;;  %5266 = vmatpush3.bf16.msra.mxu1 %v5466_v51 }
0x26de   :  { %v2994_v26 = vmul.f32 %v2989_v22, %v2989_v22  ;;  %v5256_v27 = vpop.f32.mrb[79].mxu1  ;;  %5267 = vmatprep.subr.bf16.mxu1 %v5640_v0 }
0x26e0   :  { %v2995_v28 = vmul.f32 %v2994_v26, %v2989_v22 }
0x26e1   :  { %5268 = vmatpush3.bf16.msra.mxu1 %v5467_v37 }
0x26e2   :  { %v2996_v6 = vmul.f32 0.044715, %v2995_v28  ;;  %5281 = vmatprep.subr.bf16.mxu1 %v5640_v0 }
0x26e4   :  { %v2997_v50 = vadd.f32 %v2996_v6, %v2989_v22 }
0x26e6   :  { %v2998_v30 = vmul.f32 0.7978846, %v2997_v50 }
0x26e8   :  { %5574 = vtanh.f32 %v2998_v30 }
0x26f2   :  { %v5575_v32 = vpop.eup %5574 }
0x26f3   :  { %v3000_v33 = vadd.f32 1.0, %v5575_v32 }
0x26f5   :  { %v3001_v34 = vmul.f32 0.5, %v3000_v33 }
0x26f7   :  { %v3002_v35 = vmul.f32 %v3001_v34, %v2989_v22 }
0x26f9   :  { %v3003_v36 = vpack.c.bf16 %v3002_v35, %v3002_v35 }
0x26fb   :  { %5262 = vmatmul.mubr.msk.bf16.vlgmr.msra.gmra.mrb[72].mxu0 %vm163_vm3, %v3003_v36 }
0x26fc   :  { %5277 = vmatprep.mubr.msk.bf16.mxu0 %vm5641_vm1, %v5640_v0 }
0x27ce   :  { %v3064_v38 = vpop.f32.mrb[72].mxu0 }
0x27cf   :  { %v3065_v62 = vadd.f32 %v6200_v5, %v3064_v38  ;;  %v5263_v8 = vpop.f32.mrb[73].mxu0  ;;  %v5468_v5 = vld [vmem:[%s7152_s30] sm:$0xff]  }
0x27d0   :  { %v3067_v29 = vpop.f32.mrb[74].mxu0  ;;  %5274 = vmatpush3.bf16.msra.mxu0 %v5468_v5  ;;  %v3336_v8 = vld [vmem:[%s7144_s27] sm:$0xf]  ;;  %v6554_v5 = vld [vmem:[%s7104_s4 + $0x38] sm:$0xff] }
0x27d1   :  { %v3070_v39 = vmul.f32 %v3065_v62, %v3065_v62  ;;  %v5264_v40 = vpop.f32.mrb[75].mxu0  ;;  %5275 = vmatprep.subr.bf16.mxu0 %v5640_v0  ;;  %v3341_v29 = vsel %vm86_vm0, %v3336_v8, 0 }
0x27d3   :  { %v3071_v41 = vmul.f32 %v3070_v39, %v3065_v62 }
0x27d4   :  { %5276 = vmatpush3.bf16.msra.mxu0 %v5469_v54  ;;  %v4762_v54 = vld [vmem:[%s7105_s3 + $0x38] sm:$0xff] }
0x27d5   :  { %v3072_v45 = vmul.f32 0.044715, %v3071_v41  ;;  %5289 = vmatprep.subr.bf16.mxu0 %v5640_v0  ;;  %v3794_v41 = vld [vmem:[%s7104_s4] sm:$0xff]  ;;  %v3825_v31 = vmul.f32 %v4762_v54, %v4762_v54 }
0x27d7   :  { %v3073_v46 = vadd.f32 %v3072_v45, %v3065_v62 }
0x27d9   :  { %v3074_v47 = vmul.f32 0.7978846, %v3073_v46  ;;  %v6538_v46 = vld [vmem:[%s7104_s4 + $0x10] sm:$0xff] }
0x27db   :  { %5576 = vtanh.f32 %v3074_v47  ;;  %v6544_v47 = vld [vmem:[%s7104_s4 + $0x18] sm:$0xff] }
0x27e5   :  { %v5577_v9 = vpop.eup %5576 }
0x27e6   :  { %v3076_v10 = vadd.f32 1.0, %v5577_v9  ;;  %v3799_v9 = vld [vmem:[%s7104_s4 + $0x28] sm:$0xff] }
0x27e8   :  { %v3077_v7 = vmul.f32 0.5, %v3076_v10 }
0x27ea   :  { %v3078_v52 = vmul.f32 %v3077_v7, %v3065_v62  ;;  %v3311_v7 = vpop.permute.xlu0 %3310 }
0x27ec   :  { %v3079_v53 = vpack.c.bf16 %v3078_v52, %v3078_v52  ;;  %3322 = vst.msk [vmem:[#allocation2 + $0x30] sm:$0xff] %vm163_vm3, %v3078_v52 }
0x27ee   :  { %5270 = vmatmul.mubr.msk.bf16.vlgmr.msra.gmra.mrb[80].mxu1 %vm163_vm3, %v3079_v53 }
0x27ef   :  { %5285 = vmatprep.mubr.msk.bf16.mxu1 %vm5641_vm1, %v5640_v0  ;;  %5282 = vmatpush3.bf16.msra.mxu1 %v5470_v16 }
0x27f0   :  { %5283 = vmatprep.subr.bf16.mxu1 %v5640_v0 }
0x27f3   :  { %5284 = vmatpush3.bf16.msra.mxu1 %v5471_v17 }
0x27f4   :  { %5295 = vmatprep.subr.bf16.mxu1 %v5640_v0 }
0x28c1   :  { %v3133_v11 = vpop.f32.mrb[80].mxu1 }
0x28c2   :  { %v3134_v12 = vadd.f32 %v4739_v57, %v3133_v11  ;;  %v5271_v48 = vpop.f32.mrb[81].mxu1  ;;  %v3795_v57 = vld [vmem:[%s7104_s4 + $0x8] sm:$0xff]  ;;  %v6574_v11 = vld [vmem:[%s7104_s4 + $0x20] sm:$0xff] }
0x28c3   :  { %v3136_v25 = vpop.f32.mrb[82].mxu1 }
0x28c4   :  { %v3139_v58 = vmul.f32 %v3134_v12, %v3134_v12  ;;  %v5272_v59 = vpop.f32.mrb[83].mxu1  ;;  %v3810_v25 = vld [vmem:[%s7105_s3] sm:$0xff] }
0x28c6   :  { %v3140_v60 = vmul.f32 %v3139_v58, %v3134_v12  ;;  %v3818_v58 = vmul.f32 %v3810_v25, %v3810_v25 }
0x28c8   :  { %v3141_v61 = vmul.f32 0.044715, %v3140_v60  ;;  %v3826_v60 = vadd.f32 1.837877, %v3818_v58 }
0x28ca   :  { %v3142_v23 = vadd.f32 %v3141_v61, %v3134_v12 }
0x28cc   :  { %v3143_v63 = vmul.f32 0.7978846, %v3142_v23 }
0x28ce   :  { %5578 = vtanh.f32 %v3143_v63 }
0x28d8   :  { %v5579_v2 = vpop.eup %5578 }
0x28d9   :  { %v3145_v1 = vadd.f32 1.0, %v5579_v2 }
0x28db   :  { %v3146_v3 = vmul.f32 0.5, %v3145_v1  ;;  %v3802_v1 = vld [vmem:[#allocation3] sm:$0xff] }
0x28dd   :  { %v3147_v4 = vmul.f32 %v3146_v3, %v3134_v12  ;;  %v5649_v12 = vmov 5  }
0x28df   :  { %v3148_v18 = vpack.c.bf16 %v3147_v4, %v3147_v4 }
0x28e1   :  { %5278 = vmatmul.mubr.msk.bf16.vlgmr.msra.gmra.mrb[76].mxu0 %vm163_vm3, %v3148_v18 }
0x28e2   :  { %5291 = vmatprep.mubr.msk.bf16.mxu0 %vm5641_vm1, %v5640_v0  ;;  %5290 = vmatpush3.bf16.msra.mxu0 %v3341_v29  ;;  %v3937_v29 = vld [vmem:[%s7108_s21 + $0x28] sm:$0xff] }
0x28e3   :  { %5303 = vmatprep.subr.bf16.mxu0 %v5640_v0 }
0x29b4   :  { %v3209_v19 = vpop.f32.mrb[76].mxu0 }
0x29b5   :  { %v3210_v42 = vadd.f32 %v6236_v56, %v3209_v19  ;;  %v5279_v22 = vpop.f32.mrb[77].mxu0  ;;  %v5646_v56 = vmov 2  }
0x29b6   :  { %v3212_v43 = vpop.f32.mrb[78].mxu0  ;;  %5395 = vset.pattern.permute.xlu1 %v5646_v56  ;;  %v3833_v22 = vadd.f32 1.837877, %v3825_v31 }
0x29b7   :  { %v3215_v24 = vmul.f32 %v3210_v42, %v3210_v42  ;;  %v5280_v26 = vpop.f32.mrb[79].mxu0 }
0x29b9   :  { %v3216_v27 = vmul.f32 %v3215_v24, %v3210_v42 }
0x29bb   :  { %v3217_v28 = vmul.f32 0.044715, %v3216_v27 }
0x29bd   :  { %v3218_v6 = vadd.f32 %v3217_v28, %v3210_v42 }
0x29bf   :  { %v3219_v50 = vmul.f32 0.7978846, %v3218_v6 }
0x29c1   :  { %5580 = vtanh.f32 %v3219_v50  ;;  %v3935_v50 = vld [vmem:[%s7108_s21 + $0x18] sm:$0xff] }
0x29cb   :  { %v5581_v30 = vpop.eup %5580 }
0x29cc   :  { %v3221_v32 = vadd.f32 1.0, %v5581_v30 }
0x29ce   :  { %v3222_v33 = vmul.f32 0.5, %v3221_v32 }
0x29d0   :  { %v3223_v34 = vmul.f32 %v3222_v33, %v3210_v42 }
0x29d2   :  { %v3224_v35 = vpack.c.bf16 %v3223_v34, %v3223_v34  ;;  %v6635_v34 = vld [vmem:[%s7108_s21 + $0x10] sm:$0xff] }
0x29d4   :  { %5286 = vmatmul.mubr.msk.bf16.vlgmr.msra.gmra.mrb[84].mxu1 %vm163_vm3, %v3224_v35 }
0x29d5   :  { %5299 = vmatprep.mubr.msk.bf16.mxu1 %vm5641_vm1, %v5640_v0 }
0x2aa7   :  { %v3285_v36 = vpop.f32.mrb[84].mxu1 }
0x2aa8   :  { %v6523_v51 = vadd.f32 %v6250_v21, %v3285_v36  ;;  %v5287_v37 = vpop.f32.mrb[85].mxu1 }
0x2aa9   :  { %v3288_v38 = vpop.f32.mrb[86].mxu1 }
0x2aaa   :  { %5582 = vtanh.f32 %v6523_v51  ;;  %v5288_v62 = vpop.f32.mrb[87].mxu1  ;;  %v3299_v59 = vmul.f32 %v6059_v14, %v6523_v51  ;;  %v3936_v38 = vld [vmem:[%s7108_s21 + $0x20] sm:$0xff] }
0x2aac   :  { %v3300_v63 = vadd.f32 %v3299_v59, %v6443_v55 }
0x2ab4   :  { %v5583_v39 = vpop.eup %5582 }
0x2ab5   :  { %v3292_v40 = vmul.f32 4.0, %v5583_v39 }
0x2ab7   :  { %3324 = vrot.lane.b32.xlu1 %v3292_v40, %s7153_s29  ;;  %v3301_v21 = vmul.f32 0.5, %v3292_v40 }
0x2ab9   :  { %v3302_v45 = vmul.f32 1.442695, %v3301_v21 }
0x2abb   :  { %5584 = vpow2.f32 %v3302_v45  ;;  %3836 = vperm.xlu1 %5395, %v3794_v41  }
0x2abf   :  { %3846 = vperm.xlu1 %5395, %v6538_v46  }
0x2ac3   :  { %3851 = vperm.xlu1 %5395, %v6544_v47  }
0x2ac5   :  { %v5585_v10 = vpop.eup %5584 }
0x2ac6   :  { %v3308_v52 = vmul.f32 %v5585_v10, %v6057_v13  ;;  %v5647_v13 = vmov 3  }
0x2ac7   :  { %3861 = vperm.xlu1 %5395, %v3799_v9  }
0x2ac8   :  { %v3313_v53 = vmul.f32 %v3311_v7, %v3308_v52 }
0x2aca   :  { %3315 = vrot.lane.b32.xlu0 %v3313_v53, %s7153_s29 }
0x2acb   :  { %3871 = vperm.xlu1 %5395, %v6554_v5  }
0x2ace   :  { %3775 = vrot.lane.b32.xlu0 %v4762_v54, %s7154_s24 }
0x2acf   :  { %5397 = vset.pattern.permute.xlu1 %v5647_v13 }
0x2ad0   :  { %3941 = vperm.xlu1 %5397, %v3795_v57  }
0x2ad2   :  { %999 = vrot.lane.b32.xlu0 %v5994_v49, %s7153_s29  ;;  %v5633_v49 = vld [vmem:[%s7104_s4 + $0x38] sm:$0xff] }
0x2ad4   :  { %3945 = vperm.xlu1 %5397, %v6538_v46  }
0x2ad6   :  { %1929 = vrot.lane.b32.xlu0 %v6253_v20, %s7153_s29  ;;  %v3800_v20 = vld [vmem:[%s7104_s4 + $0x30] sm:$0xff] }
0x2ad8   :  { %3949 = vperm.xlu1 %5397, %v6544_v47  }
0x2ada   :  { %2859 = vrot.lane.b32.xlu0 %v6436_v44, %s7153_s29  ;;  %v5648_v44 = vmov 4  }
0x2adc   :  { %3953 = vperm.xlu1 %5397, %v6574_v11  }
0x2ade   :  { %3761 = vperm.xlu0 %5383, %v5633_v49  }
0x2ae0   :  { %3957 = vperm.xlu1 %5397, %v3799_v9  }
0x2ae2   :  { %5396 = vset.pattern.permute.xlu0 %v5646_v56 }
0x2ae3   :  { %3841 = vperm.xlu0 %5396, %v3795_v57  }
0x2ae4   :  { %3961 = vperm.xlu1 %5397, %v3800_v20  }
0x2ae7   :  { %3856 = vperm.xlu0 %5396, %v6574_v11  }
0x2ae8   :  { %3965 = vperm.xlu1 %5397, %v6554_v5  }
0x2aeb   :  { %3866 = vperm.xlu0 %5396, %v3800_v20  }
0x2aec   :  { %5398 = vset.pattern.permute.xlu1 %v5648_v44 }
0x2aed   :  { %3990 = vperm.xlu1 %5398, %v3795_v57  }
0x2aef   :  { %5399 = vset.pattern.permute.xlu0 %v5648_v44 }
0x2af1   :  { %3998 = vperm.xlu1 %5398, %v6544_v47  }
0x2af5   :  { %4002 = vperm.xlu1 %5398, %v6574_v11  }
0x2af9   :  { %4006 = vperm.xlu1 %5398, %v3799_v9  }
0x2afd   :  { %4010 = vperm.xlu1 %5398, %v3800_v20  }
0x2b01   :  { %4014 = vperm.xlu1 %5398, %v6554_v5  }
0x2b05   :  { %5400 = vset.pattern.permute.xlu1 %v5649_v12 }
0x2b06   :  { %4039 = vperm.xlu1 %5400, %v3795_v57  }
0x2b0a   :  { %4043 = vperm.xlu1 %5400, %v6538_v46  }
0x2b29   :  { %v3325_v48 = vpop.permute.xlu1 %3324 }
0x2b2a   :  { %3328 = vst.msk [vmem:[#allocation3 + $0x30] sm:$0xff] %vm82_vm2, %v3325_v48  ;;  %v5473_v48 = vld [vmem:[%s7146_s9 + $0x8] sm:$0xff]  }
0x2b3a   :  { %v3837_v61 = vpop.permute.xlu1 %3836 }
0x2b3b   :  { %v3874_v23 = vadd.f32 %v3837_v61, %v3826_v60 }
0x2b3c   :  { %v3316_v2 = vpop.permute.xlu0 %3315 }
0x2b3d   :  { %v6598_v3 = vadd.f32 %v3316_v2, %v3300_v63  ;;  %v3882_v4 = vadd.f32 %v3874_v23, %v3802_v1  ;;  %v5634_v2 = vld [vmem:[%s7147_s8] sm:$0xff] }
0x2b3e   :  { %v6600_v18 = vpop.permute.xlu1 %3846 }
0x2b3f   :  { %4760 = vst.msk [vmem:[%s7108_s21 + $0x30] sm:$0xff] %vm82_vm2, %v6598_v3  ;;  %v3335_v14 = vpack.c.bf16 %v6598_v3, %v6598_v3  ;;  %v3890_v16 = vsel %vm82_vm2, %v3882_v4, 0.0 }
0x2b40   :  { %3891 = vadd.xlane.f32.xlu0 %v3890_v16  ;;  %v6610_v55 = vpop.permute.xlu0 %3775 }
0x2b41   :  { %5292 = vmatmul.mubr.msk.bf16.vlgmr.msra.gmra.mrb[80].mxu0 %vm82_vm2, %v3335_v14 }
0x2b42   :  { %v6613_v17 = vpop.permute.xlu1 %3851  ;;  %5307 = vmatprep.mubr.msk.bf16.mxu0 %vm5641_vm1, %v5640_v0 }
0x2b44   :  { %v1000_v19 = vpop.permute.xlu0 %999 }
0x2b45   :  { %1003 = vst.msk [vmem:[#allocation3 + $0x8] sm:$0xff] %vm82_vm2, %v1000_v19 }
0x2b46   :  { %v6618_v42 = vpop.permute.xlu1 %3861  ;;  %v6653_v45 = vld [vmem:[%s7108_s21 + $0x30] sm:$0xff] }
0x2b48   :  { %v1930_v43 = vpop.permute.xlu0 %1929 }
0x2b49   :  { %1933 = vst.msk [vmem:[#allocation3 + $0x18] sm:$0xff] %vm82_vm2, %v1930_v43 }
0x2b4a   :  { %v3872_v24 = vpop.permute.xlu1 %3871 }
0x2b4b   :  { %v6621_v26 = vadd.f32 %v3872_v24, %v3833_v22 }
0x2b4c   :  { %v2860_v27 = vpop.permute.xlu0 %2859 }
0x2b4d   :  { %2863 = vst.msk [vmem:[#allocation3 + $0x28] sm:$0xff] %vm82_vm2, %v2860_v27 }
0x2b4f   :  { %v6624_v28 = vpop.permute.xlu1 %3941 }
0x2b53   :  { %v6626_v6 = vpop.permute.xlu1 %3945 }
0x2b56   :  { %3994 = vperm.xlu0 %5399, %v6538_v46  }
0x2b57   :  { %v3950_v30 = vpop.permute.xlu1 %3949 }
0x2b58   :  { %v3970_v32 = vmul.f32 %v3950_v30, %v3935_v50 }
0x2b5a   :  { %v3977_v33 = vsub.f32 %v3935_v50, %v3970_v32  ;;  %5401 = vset.pattern.permute.xlu0 %v5649_v12  ;;  %v5472_v12 = vld [vmem:[%s7146_s9] sm:$0xff]  }
0x2b5b   :  { %v3954_v35 = vpop.permute.xlu1 %3953  ;;  %5296 = vmatpush3.bf16.msra.mxu1 %v5472_v12  ;;  %v5477_v12 = vld [vmem:[%s7150_s25 + $0x8] sm:$0xff]  }
0x2b5c   :  { %v3984_v56 = vsub.f32 %v6635_v34, %v3977_v33  ;;  %v3971_v62 = vmul.f32 %v3954_v35, %v3936_v38  ;;  %5297 = vmatprep.subr.bf16.mxu1 %v5640_v0  ;;  %v5474_v35 = vld [vmem:[%s7148_s26] sm:$0xff]  }
0x2b5d   :  { %v6671_v25 = vpop.permute.xlu0 %3761  ;;  %5304 = vmatpush3.bf16.msra.mxu0 %v5474_v35  ;;  %v4763_v35 = vld [vmem:[%s7102_s2 + $0x38] sm:$0xff] }
0x2b5e   :  { %v3978_v39 = vsub.f32 %v3936_v38, %v3971_v62  ;;  %5305 = vmatprep.subr.bf16.mxu0 %v5640_v0 }
0x2b5f   :  { %v3958_v36 = vpop.permute.xlu1 %3957  ;;  %5298 = vmatpush3.bf16.msra.mxu1 %v5473_v48  ;;  %v4769_v48 = vld [vmem:[%s7151_s10] ss:$0 sm:$0xff] }
0x2b60   :  { %v3972_v40 = vmul.f32 %v3958_v36, %v3937_v29  ;;  %v3985_v10 = vsub.f32 %v3935_v50, %v3978_v39  ;;  %5311 = vmatprep.subr.bf16.mxu1 %v5640_v0  ;;  %v4765_v36 = vld [vmem:[%s7149_s1] ss:$0 sm:$0xff] }
0x2b62   :  { %v3979_v46 = vsub.f32 %v3937_v29, %v3972_v40  ;;  %v6673_v58 = vpop.permute.xlu0 %3841 }
0x2b63   :  { %v3962_v51 = vpop.permute.xlu1 %3961 }
0x2b64   :  { %v3973_v9 = vmul.f32 %v3962_v51, %v6653_v45  ;;  %v3986_v54 = vsub.f32 %v3936_v38, %v3979_v46 }
0x2b66   :  { %v3980_v53 = vsub.f32 %v6653_v45, %v3973_v9  ;;  %v6675_v59 = vpop.permute.xlu0 %3856 }
0x2b67   :  { %v6638_v37 = vpop.permute.xlu1 %3965 }
0x2b68   :  { %v3987_v49 = vsub.f32 %v3937_v29, %v3980_v53 }
0x2b6a   :  { %v6677_v60 = vpop.permute.xlu0 %3866 }
0x2b6c   :  { %v6643_v8 = vpop.permute.xlu1 %3990 }
0x2b70   :  { %v3999_v21 = vpop.permute.xlu1 %3998 }
0x2b71   :  { %v6648_v41 = vmul.f32 %v3999_v21, %v3984_v56  ;;  %v5475_v56 = vld [vmem:[%s7148_s26 + $0x8] sm:$0xff]  }
0x2b72   :  { %5306 = vmatpush3.bf16.msra.mxu0 %v5475_v56 }
0x2b73   :  { %5319 = vmatprep.subr.bf16.mxu0 %v5640_v0 }
0x2b74   :  { %v4003_v7 = vpop.permute.xlu1 %4002 }
0x2b75   :  { %v6656_v52 = vmul.f32 %v4003_v7, %v3985_v10 }
0x2b78   :  { %v4007_v57 = vpop.permute.xlu1 %4006 }
0x2b79   :  { %v6659_v13 = vmul.f32 %v4007_v57, %v3986_v54 }
0x2b7c   :  { %v4011_v20 = vpop.permute.xlu1 %4010 }
0x2b7d   :  { %v6661_v44 = vmul.f32 %v4011_v20, %v3987_v49  ;;  %v5476_v20 = vld [vmem:[%s7150_s25] sm:$0xff]  }
0x2bcd   :  { %v3892_v61 = vpop.xlane.xlu0 %3891 }
0x2bce   :  { %v3914_v23 = vmul.f32 -0.5, %v3892_v61 }
0x2bd0   :  { %3923 = vst.msk [vmem:[%s7109_s22] sm:$0xff] %vm3922_vm4, %v3914_v23 }
0x2c14   :  { %v3377_v63 = vpop.f32.mrb[80].mxu0 }
0x2c15   :  { %v3378_v1 = vadd.f32 %v5634_v2, %v3377_v63  ;;  %v5293_v4 = vpop.f32.mrb[81].mxu0 }
0x2c16   :  { %v3380_v14 = vpop.f32.mrb[82].mxu0 }
0x2c17   :  { %v3383_v16 = vmul.f32 %v3378_v1, %v3378_v1  ;;  %v5294_v31 = vpop.f32.mrb[83].mxu0 }
0x2c19   :  { %v3384_v19 = vmul.f32 %v3383_v16, %v3378_v1 }
0x2c1b   :  { %v3385_v22 = vmul.f32 0.044715, %v3384_v19 }
0x2c1d   :  { %v3386_v43 = vadd.f32 %v3385_v22, %v3378_v1 }
0x2c1f   :  { %v3387_v24 = vmul.f32 0.7978846, %v3386_v43 }
0x2c21   :  { %5586 = vtanh.f32 %v3387_v24 }
0x2c2b   :  { %v5587_v27 = vpop.eup %5586 }
0x2c2c   :  { %v3389_v50 = vadd.f32 1.0, %v5587_v27 }
0x2c2e   :  { %v3390_v30 = vmul.f32 0.5, %v3389_v50 }
0x2c30   :  { %v3391_v32 = vmul.f32 %v3390_v30, %v3378_v1  ;;  %v5478_v30 = vld [vmem:[%s7152_s30] sm:$0xff]  }
0x2c32   :  { %v3392_v33 = vpack.c.bf16 %v3391_v32, %v3391_v32  ;;  %v5479_v32 = vld [vmem:[%s7152_s30 + $0x8] sm:$0xff]  }
0x2c34   :  { %5300 = vmatmul.mubr.msk.bf16.vlgmr.msra.gmra.mrb[88].mxu1 %vm163_vm3, %v3392_v33  ;;  %v5480_v33 = vld [vmem:[%s7110_s15] sm:$0xff]  }
0x2c35   :  { %5315 = vmatprep.mubr.msk.bf16.mxu1 %vm5641_vm1, %v5640_v0  ;;  %5312 = vmatpush3.bf16.msra.mxu1 %v5476_v20  ;;  %v5481_v20 = vld [vmem:[%s7110_s15 + $0x8] sm:$0xff]  }
0x2c36   :  { %5313 = vmatprep.subr.bf16.mxu1 %v5640_v0 }
0x2c39   :  { %5314 = vmatpush3.bf16.msra.mxu1 %v5477_v12 }
0x2c3a   :  { %5327 = vmatprep.subr.bf16.mxu1 %v5640_v0 }
0x2d07   :  { %v3453_v51 = vpop.f32.mrb[88].mxu1 }
0x2d08   :  { %v3454_v38 = vadd.f32 %v4765_v36, %v3453_v51  ;;  %v5301_v62 = vpop.f32.mrb[89].mxu1 }
0x2d09   :  { %v3456_v29 = vpop.f32.mrb[90].mxu1 }
0x2d0a   :  { %v3459_v39 = vmul.f32 %v3454_v38, %v3454_v38  ;;  %v5302_v40 = vpop.f32.mrb[91].mxu1 }
0x2d0c   :  { %v3460_v21 = vmul.f32 %v3459_v39, %v3454_v38 }
0x2d0e   :  { %v3461_v46 = vmul.f32 0.044715, %v3460_v21 }
0x2d10   :  { %v3462_v9 = vadd.f32 %v3461_v46, %v3454_v38 }
0x2d12   :  { %v3463_v10 = vmul.f32 0.7978846, %v3462_v9 }
0x2d14   :  { %5588 = vtanh.f32 %v3463_v10 }
0x2d1e   :  { %v5589_v7 = vpop.eup %5588 }
0x2d1f   :  { %v3465_v53 = vadd.f32 1.0, %v5589_v7 }
0x2d21   :  { %v3466_v54 = vmul.f32 0.5, %v3465_v53 }
0x2d23   :  { %v3467_v57 = vmul.f32 %v3466_v54, %v3454_v38  ;;  %v4110_v54 = vld [vmem:[#allocation2 + $0x8] sm:$0xff] }
0x2d25   :  { %v3468_v49 = vpack.c.bf16 %v3467_v57, %v3467_v57 }
0x2d27   :  { %5308 = vmatmul.mubr.msk.bf16.vlgmr.msra.gmra.mrb[84].mxu0 %vm163_vm3, %v3468_v49  ;;  %v4109_v49 = vld [vmem:[#allocation2] sm:$0xff] }
0x2d28   :  { %5323 = vmatprep.mubr.msk.bf16.mxu0 %vm5641_vm1, %v5640_v0  ;;  %5320 = vmatpush3.bf16.msra.mxu0 %v5478_v30  ;;  %v4117_v12 = vpack.c.bf16 %v4110_v54, %v4109_v49 }
0x2d29   :  { %5321 = vmatprep.subr.bf16.mxu0 %v5640_v0 }
0x2d2c   :  { %5322 = vmatpush3.bf16.msra.mxu0 %v5479_v32 }
0x2d2d   :  { %5335 = vmatprep.subr.bf16.mxu0 %v5480_v33 }
0x2dfa   :  { %v3529_v61 = vpop.f32.mrb[84].mxu0 }
0x2dfb   :  { %v3530_v23 = vadd.f32 %v4769_v48, %v3529_v61  ;;  %v5309_v63 = vpop.f32.mrb[85].mxu0  ;;  %v4112_v48 = vld [vmem:[#allocation2 + $0x18] sm:$0xff]  ;;  %v4114_v61 = vld [vmem:[#allocation2 + $0x28] sm:$0xff] }
0x2dfc   :  { %v3532_v2 = vpop.f32.mrb[86].mxu0 }
0x2dfd   :  { %v3535_v1 = vmul.f32 %v3530_v23, %v3530_v23  ;;  %v5310_v4 = vpop.f32.mrb[87].mxu0  ;;  %v4113_v2 = vld [vmem:[#allocation2 + $0x20] sm:$0xff] }
0x2dff   :  { %v3536_v14 = vmul.f32 %v3535_v1, %v3530_v23  ;;  %v4119_v1 = vpack.c.bf16 %v4114_v61, %v4113_v2 }
0x2e01   :  { %v3537_v16 = vmul.f32 0.044715, %v3536_v14  ;;  %v4115_v14 = vld [vmem:[#allocation2 + $0x30] sm:$0xff] }
0x2e03   :  { %v3538_v31 = vadd.f32 %v3537_v16, %v3530_v23 }
0x2e05   :  { %v3539_v19 = vmul.f32 0.7978846, %v3538_v31  ;;  %v5482_v31 = vld [vmem:[%s7103_s13] sm:$0xff]  }
0x2e07   :  { %5590 = vtanh.f32 %v3539_v19  ;;  %v5483_v19 = vld [vmem:[%s7103_s13 + $0x8] sm:$0xff]  }
0x2e11   :  { %v5591_v22 = vpop.eup %5590 }
0x2e12   :  { %v3541_v43 = vadd.f32 1.0, %v5591_v22  ;;  %v6749_v22 = vld [vmem:[%s7111_s17] sm:$0xff]  }
0x2e14   :  { %v3542_v24 = vmul.f32 0.5, %v3541_v43  ;;  %v4776_v43 = vld [vmem:[%s7106_s12] ss:$0 sm:$0xff]  ;;  %s7157_s12 = sld [smem:[#allocation16_spill]] }
0x2e16   :  { %v3543_v27 = vmul.f32 %v3542_v24, %v3530_v23  ;;  %v4111_v23 = vld [vmem:[#allocation2 + $0x10] sm:$0xff] }
0x2e17   :  { %v4118_v63 = vpack.c.bf16 %v4112_v48, %v4111_v23 }
0x2e18   :  { %v3544_v50 = vpack.c.bf16 %v3543_v27, %v3543_v27  ;;  %3787 = vst.msk [vmem:[#allocation2 + $0x38] sm:$0xff] %vm163_vm3, %v3543_v27 }
0x2e1a   :  { %5316 = vmatmul.mubr.msk.bf16.vlgmr.msra.gmra.mrb[92].mxu1 %vm163_vm3, %v3544_v50 }
0x2e1b   :  { %5331 = vmatprep.mubr.msk.bf16.mxu1 %vm5641_vm1, %v5640_v0  ;;  %5328 = vmatpush3.bf16.msra.mxu1 %v5482_v31 }
0x2e1c   :  { %5329 = vmatprep.subr.bf16.mxu1 %v5640_v0 }
0x2e1f   :  { %v4116_v4 = vld [vmem:[#allocation2 + $0x38] sm:$0xff]  ;;  %5330 = vmatpush3.bf16.msra.mxu1 %v5483_v19 }
0x2e20   :  { %v4120_v16 = vpack.c.bf16 %v4116_v4, %v4115_v14  ;;  %5347 = vmatprep.subr.bf16.mxu1 %v6749_v22 }
0x2eed   :  { %v3598_v56 = vpop.f32.mrb[92].mxu1 }
0x2eee   :  { %v3599_v36 = vadd.f32 %v4763_v35, %v3598_v56  ;;  %v5317_v51 = vpop.f32.mrb[93].mxu1  ;;  %v4792_v56 = vld [vmem:[%s7112_s16] ss:$0 sm:$0xff] }
0x2eef   :  { %v3601_v38 = vpop.f32.mrb[94].mxu1 }
0x2ef0   :  { %v3604_v62 = vmul.f32 %v3599_v36, %v3599_v36  ;;  %v5318_v29 = vpop.f32.mrb[95].mxu1 }
0x2ef2   :  { %v3605_v39 = vmul.f32 %v3604_v62, %v3599_v36 }
0x2ef4   :  { %v3606_v40 = vmul.f32 0.044715, %v3605_v39 }
0x2ef6   :  { %v3607_v21 = vadd.f32 %v3606_v40, %v3599_v36 }
0x2ef8   :  { %v3608_v46 = vmul.f32 0.7978846, %v3607_v21 }
0x2efa   :  { %5592 = vtanh.f32 %v3608_v46 }
0x2f04   :  { %v5593_v9 = vpop.eup %5592 }
0x2f05   :  { %v3610_v10 = vadd.f32 1.0, %v5593_v9 }
0x2f07   :  { %v3611_v7 = vmul.f32 0.5, %v3610_v10 }
0x2f09   :  { %v3612_v53 = vmul.f32 %v3611_v7, %v3599_v36 }
0x2f0b   :  { %v3613_v57 = vpack.c.bf16 %v3612_v53, %v3612_v53 }
0x2f0d   :  { %5324 = vmatmul.mubr.msk.bf16.vlgmr.msra.gmra.mrb[88].mxu0 %vm163_vm3, %v3613_v57 }
0x2f0e   :  { %5336 = vmatpush3.bf16.msra.mxu0 %v5480_v33  ;;  %5339 = vmatprep.mubr.msk.bf16.mxu0 %vm163_vm3, %v4117_v12 }
0x2f0f   :  { %5337 = vmatprep.subr.bf16.mxu0 %v5481_v20 }
0x2f12   :  { %5338 = vmatpush3.bf16.msra.mxu0 %v5481_v20 }
0x2f15   :  { %5340 = vmatmul.mubr.msk.bf16.vlgmr.msra.gmra.mrb[92].mxu0 %vm163_vm3, %v4118_v63 }
0x2f16   :  { %5343 = vmatprep.mubr.msk.bf16.mxu0 %vm163_vm3, %v4119_v1 }
0x2f1d   :  { %5344 = vmatmul.mubr.msk.bf16.gmra.mrb[96].mxu0 %vm163_vm3, %v4120_v16 }
0x2fe0   :  { %v3674_v24 = vpop.f32.mrb[88].mxu0 }
0x2fe1   :  { %v6755_v27 = vadd.f32 %v4776_v43, %v3674_v24  ;;  %v5325_v50 = vpop.f32.mrb[89].mxu0 }
0x2fe2   :  { %v3677_v30 = vpop.f32.mrb[90].mxu0 }
0x2fe3   :  { %v3680_v32 = vmul.f32 %v6755_v27, %v6755_v27  ;;  %v5326_v33 = vpop.f32.mrb[91].mxu0 }
0x2fe5   :  { %v3681_v35 = vmul.f32 %v3680_v32, %v6755_v27 }
0x2fe7   :  { %v3682_v36 = vmul.f32 0.044715, %v3681_v35 }
0x2fe8   :  { %v5341_v51 = vpop.f32.mrb[92].mxu0 }
0x2fe9   :  { %v3683_v38 = vadd.f32 %v3682_v36, %v6755_v27  ;;  %v6764_v62 = vadd.f32 %v5341_v51, %v4792_v56  ;;  %v4190_v29 = vpop.f32.mrb[93].mxu0 }
0x2fea   :  { %v6766_v39 = vadd.f32 %v4792_v56, %v4190_v29  ;;  %v5342_v40 = vpop.f32.mrb[94].mxu0 }
0x2feb   :  { %v3684_v21 = vmul.f32 0.7978846, %v3683_v38  ;;  %v4223_v46 = vmul.f32 %v6764_v62, %v6764_v62  ;;  %v6770_v9 = vadd.f32 %v5342_v40, %v4792_v56  ;;  %v4193_v10 = vpop.f32.mrb[95].mxu0 }
0x2fec   :  { %v4221_v7 = vmul.f32 %v6766_v39, %v6766_v39  ;;  %v6774_v53 = vadd.f32 %v4792_v56, %v4193_v10 }
0x2fed   :  { %5594 = vtanh.f32 %v3684_v21  ;;  %v4231_v54 = vmul.f32 %v4223_v46, %v6764_v62  ;;  %v4224_v57 = vmul.f32 %v6770_v9, %v6770_v9 }
0x2fee   :  { %v4229_v49 = vmul.f32 %v4221_v7, %v6766_v39  ;;  %v4222_v20 = vmul.f32 %v6774_v53, %v6774_v53 }
0x2fef   :  { %v4239_v12 = vmul.f32 0.044715, %v4231_v54  ;;  %v4232_v48 = vmul.f32 %v4224_v57, %v6770_v9 }
0x2ff0   :  { %v4237_v61 = vmul.f32 0.044715, %v4229_v49  ;;  %v4230_v23 = vmul.f32 %v4222_v20, %v6774_v53  ;;  %v5345_v63 = vpop.f32.mrb[96].mxu0 }
0x2ff1   :  { %v4247_v2 = vadd.f32 %v4239_v12, %v6764_v62  ;;  %v4240_v1 = vmul.f32 0.044715, %v4232_v48  ;;  %v6785_v4 = vadd.f32 %v5345_v63, %v4792_v56  ;;  %v4206_v14 = vpop.f32.mrb[97].mxu0 }
0x2ff2   :  { %v4245_v16 = vadd.f32 %v4237_v61, %v6766_v39  ;;  %v4238_v31 = vmul.f32 0.044715, %v4230_v23  ;;  %v6788_v19 = vadd.f32 %v4792_v56, %v4206_v14  ;;  %v5346_v43 = vpop.f32.mrb[98].mxu0 }
0x2ff3   :  { %v4255_v24 = vmul.f32 0.7978846, %v4247_v2  ;;  %v4248_v50 = vadd.f32 %v4240_v1, %v6770_v9  ;;  %v4227_v30 = vmul.f32 %v6785_v4, %v6785_v4  ;;  %v6793_v32 = vadd.f32 %v5346_v43, %v4792_v56  ;;  %v4209_v33 = vpop.f32.mrb[99].mxu0 }
0x2ff4   :  { %v4253_v35 = vmul.f32 0.7978846, %v4245_v16  ;;  %v4246_v36 = vadd.f32 %v4238_v31, %v6774_v53  ;;  %v4225_v51 = vmul.f32 %v6788_v19, %v6788_v19  ;;  %v6798_v38 = vadd.f32 %v4792_v56, %v4209_v33  ;;  %v5485_v33 = vld [vmem:[%s7111_s17 + $0x8] sm:$0xff]   ;;  %s7155_s17 = sld [smem:[#allocation14_spill]] }
0x2ff5   :  { %5596 = vtanh.f32 %v4255_v24  ;;  %v4256_v29 = vmul.f32 0.7978846, %v4248_v50  ;;  %v4235_v40 = vmul.f32 %v4227_v30, %v6785_v4  ;;  %v4228_v21 = vmul.f32 %v6793_v32, %v6793_v32 }
0x2ff6   :  { %5598 = vtanh.f32 %v4253_v35  ;;  %v4254_v46 = vmul.f32 0.7978846, %v4246_v36  ;;  %v4233_v10 = vmul.f32 %v4225_v51, %v6788_v19  ;;  %v4226_v7 = vmul.f32 %v6798_v38, %v6798_v38 }
0x2ff7   :  { %v5595_v54 = vpop.eup %5594  ;;  %5600 = vtanh.f32 %v4256_v29  ;;  %v4243_v57 = vmul.f32 0.044715, %v4235_v40  ;;  %v4236_v56 = vmul.f32 %v4228_v21, %v6793_v32 }
0x2ff8   :  { %v3686_v49 = vadd.f32 1.0, %v5595_v54  ;;  %5602 = vtanh.f32 %v4254_v46  ;;  %v4241_v20 = vmul.f32 0.044715, %v4233_v10  ;;  %v4234_v12 = vmul.f32 %v4226_v7, %v6798_v38 }
0x2ff9   :  { %v4251_v48 = vadd.f32 %v4243_v57, %v6785_v4  ;;  %v4244_v61 = vmul.f32 0.044715, %v4236_v56 }
0x2ffa   :  { %v3687_v23 = vmul.f32 0.5, %v3686_v49  ;;  %v4249_v63 = vadd.f32 %v4241_v20, %v6788_v19  ;;  %v4242_v2 = vmul.f32 0.044715, %v4234_v12  ;;  %3931 = vst.msk [vmem:[%s7155_s17] sm:$0xff] %vm3922_vm4, %v5640_v0 }
0x2ffb   :  { %v4259_v1 = vmul.f32 0.7978846, %v4251_v48  ;;  %v4252_v14 = vadd.f32 %v4244_v61, %v6793_v32 }
0x2ffc   :  { %v3688_v16 = vmul.f32 %v3687_v23, %v6755_v27  ;;  %v4257_v31 = vmul.f32 0.7978846, %v4249_v63  ;;  %v4250_v43 = vadd.f32 %v4242_v2, %v6798_v38 }
0x2ffd   :  { %5604 = vtanh.f32 %v4259_v1  ;;  %v4260_v24 = vmul.f32 0.7978846, %v4252_v14 }
0x2ffe   :  { %v3689_v50 = vpack.c.bf16 %v3688_v16, %v3688_v16  ;;  %5606 = vtanh.f32 %v4257_v31  ;;  %v4258_v30 = vmul.f32 0.7978846, %v4250_v43 }
0x2fff   :  { %v5597_v35 = vpop.eup %5596  ;;  %5608 = vtanh.f32 %v4260_v24 }
0x3000   :  { %v5599_v36 = vpop.eup %5598  ;;  %v4271_v51 = vadd.f32 1.0, %v5597_v35  ;;  %5610 = vtanh.f32 %v4258_v30  ;;  %5332 = vmatmul.mubr.msk.bf16.vlgmr.msra.gmra.mrb[96].mxu1 %vm163_vm3, %v3689_v50 }
0x3001   :  { %v5601_v27 = vpop.eup %5600  ;;  %v4269_v29 = vadd.f32 1.0, %v5599_v36  ;;  %5348 = vmatpush3.bf16.msra.mxu1 %v6749_v22  ;;  %v5486_v36 = vld [vmem:[%s7113_s19] sm:$0xff]  }
0x3002   :  { %v5603_v40 = vpop.eup %5602  ;;  %v4279_v21 = vmul.f32 0.5, %v4271_v51  ;;  %v4272_v46 = vadd.f32 1.0, %v5601_v27  ;;  %5349 = vmatprep.subr.bf16.mxu1 %v5485_v33  ;;  %5359 = vmatprep.subr.bf16.mxu0 %v5486_v36 }
0x3003   :  { %v4277_v10 = vmul.f32 0.5, %v4269_v29  ;;  %v4270_v7 = vadd.f32 1.0, %v5603_v40  ;;  %5360 = vmatpush3.bf16.msra.mxu0 %v5486_v36  ;;  %v4799_v40 = vld [vmem:[%s7114_s18] ss:$0 sm:$0xff] }
0x3004   :  { %v4280_v54 = vmul.f32 0.5, %v4272_v46  ;;  %v4287_v56 = vmul.f32 %v4279_v21, %v6764_v62 }
0x3005   :  { %v4278_v57 = vmul.f32 0.5, %v4270_v7  ;;  %5350 = vmatpush3.bf16.msra.mxu1 %v5485_v33  ;;  %v4285_v12 = vmul.f32 %v4277_v10, %v6766_v39 }
0x3006   :  { %v4288_v49 = vmul.f32 %v4280_v54, %v6770_v9 }
0x3007   :  { %v5605_v20 = vpop.eup %5604  ;;  %v4286_v48 = vmul.f32 %v4278_v57, %v6774_v53 }
0x3008   :  { %v5607_v61 = vpop.eup %5606  ;;  %v4294_v22 = vpack.c.bf16 %v4288_v49, %v4287_v56  ;;  %v4275_v23 = vadd.f32 1.0, %v5605_v20 }
0x3009   :  { %v5609_v63 = vpop.eup %5608  ;;  %v4273_v2 = vadd.f32 1.0, %v5607_v61  ;;  %v4293_v1 = vpack.c.bf16 %v4286_v48, %v4285_v12 }
0x300a   :  { %v5611_v14 = vpop.eup %5610  ;;  %v4283_v16 = vmul.f32 0.5, %v4275_v23  ;;  %v4276_v31 = vadd.f32 1.0, %v5609_v63 }
0x300b   :  { %v4281_v43 = vmul.f32 0.5, %v4273_v2  ;;  %v4274_v24 = vadd.f32 1.0, %v5611_v14  ;;  %5351 = vmatprep.mubr.msk.bf16.mxu1 %vm163_vm3, %v4293_v1 }
0x300c   :  { %v4284_v62 = vmul.f32 0.5, %v4276_v31  ;;  %5352 = vmatmul.mubr.msk.bf16.vlgmr.msra.gmra.mrb[100].mxu1 %vm163_vm3, %v4294_v22  ;;  %v4291_v39 = vmul.f32 %v4283_v16, %v6785_v4  ;;  %v5487_v4 = vld [vmem:[%s7113_s19 + $0x8] sm:$0xff]  }
0x300d   :  { %v4282_v9 = vmul.f32 0.5, %v4274_v24  ;;  %v4289_v50 = vmul.f32 %v4281_v43, %v6788_v19  ;;  %5361 = vmatprep.subr.bf16.mxu0 %v5487_v4  ;;  %v4780_v19 = vld [vmem:[%s7107_s14] ss:$0 sm:$0xff] }
0x300e   :  { %v4292_v53 = vmul.f32 %v4284_v62, %v6793_v32  ;;  %5362 = vmatpush3.bf16.msra.mxu0 %v5487_v4 }
0x300f   :  { %v4290_v30 = vmul.f32 %v4282_v9, %v6798_v38 }
0x3010   :  { %v4296_v33 = vpack.c.bf16 %v4292_v53, %v4291_v39 }
0x3011   :  { %v4295_v35 = vpack.c.bf16 %v4290_v30, %v4289_v50 }
0x3013   :  { %5355 = vmatprep.mubr.msk.bf16.mxu1 %vm163_vm3, %v4295_v35 }
0x3014   :  { %5356 = vmatmul.mubr.msk.bf16.gmra.mrb[104].mxu1 %vm163_vm3, %v4296_v33 }
0x30d3   :  { %v3750_v32 = vpop.f32.mrb[96].mxu1 }
0x30d4   :  { %v6839_v38 = vadd.f32 %v4780_v19, %v3750_v32  ;;  %v5333_v51 = vpop.f32.mrb[97].mxu1 }
0x30d5   :  { %v3753_v27 = vpop.f32.mrb[98].mxu1 }
0x30d6   :  { %5612 = vtanh.f32 %v6839_v38  ;;  %v5334_v29 = vpop.f32.mrb[99].mxu1 }
0x30df   :  { %v5353_v21 = vpop.f32.mrb[100].mxu1 }
0x30e0   :  { %v5613_v46 = vpop.eup %5612  ;;  %v6845_v10 = vadd.f32 %v5353_v21, %v4799_v40  ;;  %v4366_v7 = vpop.f32.mrb[101].mxu1 }
0x30e1   :  { %v6847_v54 = vadd.f32 %v4799_v40, %v4366_v7  ;;  %v5354_v57 = vpop.f32.mrb[102].mxu1  ;;  %v3757_v56 = vmul.f32 4.0, %v5613_v46 }
0x30e2   :  { %v4399_v49 = vmul.f32 %v6845_v10, %v6845_v10  ;;  %v6851_v20 = vadd.f32 %v5354_v57, %v4799_v40  ;;  %v4369_v12 = vpop.f32.mrb[103].mxu1 }
0x30e3   :  { %v4397_v48 = vmul.f32 %v6847_v54, %v6847_v54  ;;  %v6855_v61 = vadd.f32 %v4799_v40, %v4369_v12  ;;  %3789 = vrot.lane.b32.xlu0 %v3757_v56, %s7153_s29  ;;  %v3766_v22 = vmul.f32 0.5, %v3757_v56 }
0x30e4   :  { %v4407_v23 = vmul.f32 %v4399_v49, %v6845_v10  ;;  %v4400_v63 = vmul.f32 %v6851_v20, %v6851_v20 }
0x30e5   :  { %v4405_v2 = vmul.f32 %v4397_v48, %v6847_v54  ;;  %v4398_v1 = vmul.f32 %v6855_v61, %v6855_v61  ;;  %v3767_v14 = vmul.f32 1.442695, %v3766_v22 }
0x30e6   :  { %v4415_v16 = vmul.f32 0.044715, %v4407_v23  ;;  %v4408_v31 = vmul.f32 %v4400_v63, %v6851_v20 }
0x30e7   :  { %v4413_v43 = vmul.f32 0.044715, %v4405_v2  ;;  %v4406_v24 = vmul.f32 %v4398_v1, %v6855_v61  ;;  %5614 = vpow2.f32 %v3767_v14  ;;  %4063 = vperm.xlu0 %5401, %v6554_v5   ;;  %v5357_v62 = vpop.f32.mrb[104].mxu1 }
0x30e8   :  { %v4423_v9 = vadd.f32 %v4415_v16, %v6845_v10  ;;  %v4416_v39 = vmul.f32 0.044715, %v4408_v31  ;;  %v6868_v53 = vadd.f32 %v5357_v62, %v4799_v40  ;;  %v4382_v50 = vpop.f32.mrb[105].mxu1  ;;  %v3812_v16 = vld [vmem:[%s7105_s3 + $0x10] sm:$0xff] }
0x30e9   :  { %v4421_v30 = vadd.f32 %v4413_v43, %v6847_v54  ;;  %v4414_v33 = vmul.f32 0.044715, %v4406_v24  ;;  %v6871_v35 = vadd.f32 %v4799_v40, %v4382_v50  ;;  %v5358_v36 = vpop.f32.mrb[106].mxu1 }
0x30ea   :  { %v4431_v4 = vmul.f32 0.7978846, %v4423_v9  ;;  %v4424_v19 = vadd.f32 %v4416_v39, %v6851_v20  ;;  %v4403_v32 = vmul.f32 %v6868_v53, %v6868_v53  ;;  %v6876_v5 = vadd.f32 %v5358_v36, %v4799_v40  ;;  %v4385_v51 = vpop.f32.mrb[107].mxu1 }
0x30eb   :  { %v4429_v27 = vmul.f32 0.7978846, %v4421_v30  ;;  %v4422_v29 = vadd.f32 %v4414_v33, %v6855_v61  ;;  %v4401_v21 = vmul.f32 %v6871_v35, %v6871_v35  ;;  %v6881_v46 = vadd.f32 %v4799_v40, %v4385_v51 }
0x30ec   :  { %5616 = vtanh.f32 %v4431_v4  ;;  %v4432_v7 = vmul.f32 0.7978846, %v4424_v19  ;;  %v4411_v57 = vmul.f32 %v4403_v32, %v6868_v53  ;;  %v4404_v56 = vmul.f32 %v6876_v5, %v6876_v5 }
0x30ed   :  { %5618 = vtanh.f32 %v4429_v27  ;;  %v4430_v49 = vmul.f32 0.7978846, %v4422_v29  ;;  %v4409_v12 = vmul.f32 %v4401_v21, %v6871_v35  ;;  %v4402_v48 = vmul.f32 %v6881_v46, %v6881_v46 }
0x30ee   :  { %5620 = vtanh.f32 %v4432_v7  ;;  %v4419_v22 = vmul.f32 0.044715, %v4411_v57  ;;  %v4412_v23 = vmul.f32 %v4404_v56, %v6876_v5  ;;  %v3820_v30 = vmul.f32 %v3812_v16, %v3812_v16  ;;  %v5635_v57 = vld [vmem:[%s7105_s3 + $0x20] sm:$0xff] }
0x30ef   :  { %5622 = vtanh.f32 %v4430_v49  ;;  %v4417_v40 = vmul.f32 0.044715, %v4409_v12  ;;  %v4410_v63 = vmul.f32 %v4402_v48, %v6881_v46  ;;  %v3822_v56 = vmul.f32 %v5635_v57, %v5635_v57  ;;  %v3806_v57 = vld [vmem:[#allocation3 + $0x20] sm:$0xff] }
0x30f0   :  { %v4427_v2 = vadd.f32 %v4419_v22, %v6868_v53  ;;  %v4420_v1 = vmul.f32 0.044715, %v4412_v23  ;;  %v3828_v29 = vadd.f32 1.837877, %v3820_v30 }
0x30f1   :  { %v5615_v14 = vpop.eup %5614  ;;  %v4425_v31 = vadd.f32 %v4417_v40, %v6871_v35  ;;  %v4418_v43 = vmul.f32 0.044715, %v4410_v63  ;;  %v5636_v63 = vld [vmem:[%s7105_s3 + $0x30] sm:$0xff] }
0x30f2   :  { %v4435_v24 = vmul.f32 0.7978846, %v4427_v2  ;;  %v4428_v62 = vadd.f32 %v4420_v1, %v6876_v5  ;;  %v3773_v9 = vmul.f32 %v5615_v14, %v6061_v15  ;;  %v6904_v15 = vld [vmem:[%s7108_s21 + $0x8] sm:$0xff]  ;;  %v3876_v40 = vadd.f32 %v6600_v18, %v3828_v29 }
0x30f3   :  { %v4433_v39 = vmul.f32 0.7978846, %v4425_v31  ;;  %v4426_v50 = vadd.f32 %v4418_v43, %v6881_v46  ;;  %v3824_v2 = vmul.f32 %v5636_v63, %v5636_v63  ;;  %v3830_v14 = vadd.f32 1.837877, %v3822_v56 }
0x30f4   :  { %5624 = vtanh.f32 %v4435_v24  ;;  %v4436_v33 = vmul.f32 0.7978846, %v4428_v62  ;;  %v3778_v36 = vmul.f32 %v6610_v55, %v3773_v9  ;;  %v3968_v55 = vmul.f32 %v6624_v28, %v6904_v15 }
0x30f5   :  { %5626 = vtanh.f32 %v4433_v39  ;;  %v4434_v4 = vmul.f32 0.7978846, %v4426_v50  ;;  %v3804_v39 = vld [vmem:[#allocation3 + $0x10] sm:$0xff]  ;;  %v3832_v30 = vadd.f32 1.837877, %v3824_v2 }
0x30f6   :  { %v5617_v19 = vpop.eup %5616  ;;  %5628 = vtanh.f32 %v4436_v33  ;;  %3780 = vrot.lane.b32.xlu1 %v3778_v36, %s7153_s29  ;;  %v3975_v1 = vsub.f32 %v6904_v15, %v3968_v55  ;;  %v3932_v33 = vld [vmem:[%s7108_s21] sm:$0xff] }
0x30f7   :  { %v5619_v32 = vpop.eup %5618  ;;  %v4447_v51 = vadd.f32 1.0, %v5617_v19  ;;  %5630 = vtanh.f32 %v4434_v4  ;;  %v3880_v56 = vadd.f32 %v6677_v60, %v3832_v30 }
0x30f8   :  { %v5621_v27 = vpop.eup %5620  ;;  %v4445_v21 = vadd.f32 1.0, %v5619_v32  ;;  %v3982_v19 = vsub.f32 %v3932_v33, %v3975_v1  ;;  %v3995_v33 = vpop.permute.xlu0 %3994 }
0x30f9   :  { %v5623_v7 = vpop.eup %5622  ;;  %v4455_v49 = vmul.f32 0.5, %v4447_v51  ;;  %v4448_v12 = vadd.f32 1.0, %v5621_v27  ;;  %v5637_v27 = vld [vmem:[%s7104_s4 + $0x28] sm:$0xff] }
0x30fa   :  { %v4453_v48 = vmul.f32 0.5, %v4445_v21  ;;  %v4446_v22 = vadd.f32 1.0, %v5623_v7  ;;  %4047 = vperm.xlu1 %5400, %v6544_v47   ;;  %v4017_v29 = vmul.f32 %v6643_v8, %v3982_v19  ;;  %v6932_v7 = vpop.permute.xlu1 %4014 }
0x30fb   :  { %v4456_v23 = vmul.f32 0.5, %v4448_v12  ;;  %v4463_v16 = vmul.f32 %v4455_v49, %v6845_v10 }
0x30fc   :  { %v4454_v28 = vmul.f32 0.5, %v4446_v22  ;;  %v4461_v24 = vmul.f32 %v4453_v48, %v6847_v54  ;;  %v3878_v54 = vadd.f32 %v6675_v59, %v3830_v14 }
0x30fd   :  { %v4464_v31 = vmul.f32 %v4456_v23, %v6851_v20  ;;  %v3884_v20 = vadd.f32 %v3876_v40, %v3804_v39  ;;  %v5638_v23 = vld [vmem:[%s7104_s4 + $0x30] sm:$0xff]  ;;  %v4024_v40 = vmul.f32 %v4017_v29, %v4017_v29  ;;  %v5639_v39 = vld [vmem:[%s7105_s3 + $0x28] sm:$0xff] }
0x30fe   :  { %v5625_v43 = vpop.eup %5624  ;;  %v4462_v47 = vmul.f32 %v4454_v28, %v6855_v61  ;;  %4051 = vperm.xlu1 %5400, %v6574_v11   ;;  %v3886_v48 = vadd.f32 %v3878_v54, %v3806_v57  ;;  %v3808_v28 = vld [vmem:[#allocation3 + $0x30] sm:$0xff]  ;;  %v4040_v1 = vpop.permute.xlu1 %4039  ;;  %v3805_v54 = vld [vmem:[#allocation3 + $0x18] sm:$0xff] }
0x30ff   :  { %v5627_v18 = vpop.eup %5626  ;;  %v4470_v62 = vpack.c.bf16 %v4464_v31, %v4463_v16  ;;  %v4451_v9 = vadd.f32 1.0, %v5625_v43  ;;  %v3896_v55 = vsel %vm82_vm2, %v3884_v20, 0.0  ;;  %v3811_v16 = vld [vmem:[%s7105_s3 + $0x8] sm:$0xff]  ;;  %v3813_v43 = vld [vmem:[%s7105_s3 + $0x18] sm:$0xff] }
0x3100   :  { %v5629_v50 = vpop.eup %5628  ;;  %v4449_v10 = vadd.f32 1.0, %v5627_v18  ;;  %v4469_v36 = vpack.c.bf16 %v4462_v47, %v4461_v24  ;;  %v3902_v60 = vsel %vm82_vm2, %v3886_v48, 0.0  ;;  %v3819_v31 = vmul.f32 %v3811_v16, %v3811_v16 }
0x3101   :  { %v5631_v4 = vpop.eup %5630  ;;  %v4459_v61 = vmul.f32 0.5, %v4451_v9  ;;  %v4452_v32 = vadd.f32 1.0, %v5629_v50  ;;  %v3969_v24 = vmul.f32 %v6626_v6, %v6635_v34  ;;  %v3821_v47 = vmul.f32 %v3813_v43, %v3813_v43 }
0x3102   :  { %v4457_v11 = vmul.f32 0.5, %v4449_v10  ;;  %v4450_v51 = vadd.f32 1.0, %v5631_v4  ;;  %4055 = vperm.xlu1 %5400, %v5637_v27   ;;  %5363 = vmatprep.mubr.msk.bf16.mxu0 %vm163_vm3, %v4469_v36  ;;  %v3827_v18 = vadd.f32 1.837877, %v3819_v31  ;;  %v3823_v50 = vmul.f32 %v5639_v39, %v5639_v39  ;;  %v3803_v10 = vld [vmem:[#allocation3 + $0x8] sm:$0xff] }
0x3103   :  { %v4460_v21 = vmul.f32 0.5, %v4452_v32  ;;  %5364 = vmatmul.mubr.msk.bf16.vlgmr.msra.gmra.mrb[100].mxu0 %vm163_vm3, %v4470_v62  ;;  %v4467_v49 = vmul.f32 %v4459_v61, %v6868_v53  ;;  %v3888_v53 = vadd.f32 %v3880_v56, %v3808_v28  ;;  %v3976_v62 = vsub.f32 %v6635_v34, %v3969_v24 }
0x3104   :  { %v4458_v59 = vmul.f32 0.5, %v4450_v51  ;;  %v4465_v22 = vmul.f32 %v4457_v11, %v6871_v35  ;;  %v4031_v35 = vadd.f32 1.837877, %v4024_v40  ;;  %v3829_v9 = vadd.f32 1.837877, %v3821_v47  ;;  %v3807_v11 = vld [vmem:[#allocation3 + $0x28] sm:$0xff] }
0x3105   :  { %v4468_v12 = vmul.f32 %v4460_v21, %v6876_v5  ;;  %v3875_v30 = vadd.f32 %v6673_v58, %v3827_v18  ;;  %v3983_v6 = vsub.f32 %v6904_v15, %v3976_v62  ;;  %v3831_v36 = vadd.f32 1.837877, %v3823_v50  ;;  %v4044_v15 = vpop.permute.xlu1 %4043 }
0x3106   :  { %v4466_v8 = vmul.f32 %v4458_v59, %v6881_v46  ;;  %3897 = vadd.xlane.f32.xlu0 %v3896_v55  ;;  %4059 = vperm.xlu1 %5400, %v5638_v23   ;;  %v4066_v5 = vadd.f32 %v4040_v1, %v4031_v35  ;;  %v3908_v46 = vsel %vm82_vm2, %v3888_v53, 0.0  ;;  %v3877_v34 = vadd.f32 %v6613_v17, %v3829_v9 }
0x3107   :  { %v4472_v63 = vpack.c.bf16 %v4468_v12, %v4467_v49  ;;  %v4018_v20 = vmul.f32 %v3995_v33, %v3983_v6  ;;  %v3883_v4 = vadd.f32 %v3875_v30, %v3803_v10  ;;  %v3879_v0 = vadd.f32 %v6618_v42, %v3831_v36 }
0x3108   :  { %v4471_v2 = vpack.c.bf16 %v4466_v8, %v4465_v22  ;;  %v4073_v14 = vsel %vm82_vm2, %v4066_v5, 0.0  ;;  %v3885_v32 = vadd.f32 %v3877_v34, %v3805_v54  ;;  %v30_v42 = vstv %s7156_s23 }
0x3109   :  { %v4025_v19 = vmul.f32 %v4018_v20, %v4018_v20  ;;  %v3893_v61 = vsel %vm82_vm2, %v3883_v4, 0.0  ;;  %v3887_v27 = vadd.f32 %v3879_v0, %v3807_v11  ;;  %31 = vst [vmem:[#allocation4] sm:$0x1] %v30_v42  ;;  %v3764_v55 = vmul.f32 %v6671_v25, %v6839_v38 }
0x310a   :  { %3903 = vadd.xlane.f32.xlu0 %v3902_v60  ;;  %5367 = vmatprep.mubr.msk.bf16.mxu0 %vm163_vm3, %v4471_v2  ;;  %v3899_v58 = vsel %vm82_vm2, %v3885_v32, 0.0  ;;  %v4026_v22 = vmul.f32 %v6648_v41, %v6648_v41  ;;  %v4027_v38 = vmul.f32 %v6656_v52, %v6656_v52  ;;  %v4028_v2 = vmul.f32 %v6659_v13, %v6659_v13 }
0x310b   :  { %5368 = vmatmul.mubr.msk.bf16.gmra.mrb[104].mxu0 %vm163_vm3, %v4472_v63  ;;  %v4032_v51 = vadd.f32 1.837877, %v4025_v19  ;;  %v3905_v17 = vsel %vm82_vm2, %v3887_v27, 0.0  ;;  %v3765_v57 = vadd.f32 %v3764_v55, %v6598_v3  ;;  %v4029_v35 = vmul.f32 %v6661_v44, %v6661_v44 }
0x310c   :  { %v4033_v3 = vadd.f32 1.837877, %v4026_v22  ;;  %v4034_v28 = vadd.f32 1.837877, %v4027_v38 }
0x310d   :  { %v4067_v29 = vadd.f32 %v4044_v15, %v4032_v51  ;;  %v4036_v16 = vadd.f32 1.837877, %v4029_v35 }
0x310e   :  { %3909 = vadd.xlane.f32.xlu0 %v3908_v46 }
0x310f   :  { %v4076_v21 = vsel %vm82_vm2, %v4067_v29, 0.0 }
0x3110   :  { %v4806_v32 = vld [vmem:[#allocation4] ss:$0 sm:$0xff] }
0x3112   :  { %4074 = vadd.xlane.f32.xlu0 %v4073_v14 }
0x312a   :  { %3894 = vadd.xlane.f32.xlu1 %v3893_v61 }
0x312e   :  { %3900 = vadd.xlane.f32.xlu1 %v3899_v58 }
0x3132   :  { %3906 = vadd.xlane.f32.xlu1 %v3905_v17 }
0x3136   :  { %4077 = vadd.xlane.f32.xlu1 %v4076_v21 }
0x3155   :  { %v3790_v59 = vpop.permute.xlu0 %3789 }
0x3156   :  { %3793 = vst.msk [vmem:[#allocation3 + $0x38] sm:$0xff] %vm82_vm2, %v3790_v59 }
0x315d   :  { %v3809_v53 = vld [vmem:[#allocation3 + $0x38] sm:$0xff] }
0x3166   :  { %v4064_v46 = vpop.permute.xlu0 %4063 }
0x3168   :  { %v3781_v56 = vpop.permute.xlu1 %3780 }
0x3169   :  { %v3783_v49 = vadd.f32 %v3781_v56, %v3765_v57 }
0x316b   :  { %4784 = vst.msk [vmem:[%s7108_s21 + $0x38] sm:$0xff] %vm82_vm2, %v3783_v49 }
0x3172   :  { %v3939_v12 = vld [vmem:[%s7108_s21 + $0x38] sm:$0xff] }
0x3173   :  { %v3974_v48 = vmul.f32 %v6638_v37, %v3939_v12 }
0x3175   :  { %v3981_v8 = vsub.f32 %v3939_v12, %v3974_v48 }
0x3177   :  { %v3988_v25 = vsub.f32 %v6653_v45, %v3981_v8  ;;  %v4035_v45 = vadd.f32 1.837877, %v4028_v2 }
0x3179   :  { %v4048_v23 = vpop.permute.xlu1 %4047  ;;  %v4023_v40 = vmul.f32 %v6932_v7, %v3988_v25  ;;  %v3889_v7 = vadd.f32 %v6621_v26, %v3809_v53 }
0x317a   :  { %v4068_v63 = vadd.f32 %v4048_v23, %v4033_v3 }
0x317b   :  { %v4030_v60 = vmul.f32 %v4023_v40, %v4023_v40  ;;  %v3911_v43 = vsel %vm82_vm2, %v3889_v7, 0.0 }
0x317c   :  { %v4079_v37 = vsel %vm82_vm2, %v4068_v63, 0.0 }
0x317d   :  { %4080 = vadd.xlane.f32.xlu0 %v4079_v37  ;;  %v4052_v41 = vpop.permute.xlu1 %4051  ;;  %v4037_v52 = vadd.f32 1.837877, %v4030_v60 }
0x317e   :  { %v4069_v1 = vadd.f32 %v4052_v41, %v4034_v28 }
0x317f   :  { %v4072_v31 = vadd.f32 %v4064_v46, %v4037_v52 }
0x3180   :  { %v4082_v5 = vsel %vm82_vm2, %v4069_v1, 0.0 }
0x3181   :  { %4083 = vadd.xlane.f32.xlu1 %v4082_v5  ;;  %v4056_v13 = vpop.permute.xlu1 %4055  ;;  %v4091_v44 = vsel %vm82_vm2, %v4072_v31, 0.0 }
0x3182   :  { %v4070_v14 = vadd.f32 %v4056_v13, %v4035_v45 }
0x3184   :  { %v4085_v24 = vsel %vm82_vm2, %v4070_v14, 0.0 }
0x3185   :  { %3912 = vadd.xlane.f32.xlu1 %v3911_v43  ;;  %4086 = vadd.xlane.f32.xlu0 %v4085_v24  ;;  %v4060_v47 = vpop.permute.xlu1 %4059 }
0x3186   :  { %v4071_v18 = vadd.f32 %v4060_v47, %v4036_v16 }
0x3188   :  { %v4088_v62 = vsel %vm82_vm2, %v4071_v18, 0.0 }
0x3189   :  { %4092 = vadd.xlane.f32.xlu0 %v4091_v44  ;;  %4089 = vadd.xlane.f32.xlu1 %v4088_v62 }
0x3193   :  { %v3898_v26 = vpop.xlane.xlu0 %3897 }
0x3194   :  { %v3916_v9 = vmul.f32 -0.5, %v3898_v26 }
0x3196   :  { %3925 = vst.msk [vmem:[%s7109_s22 + $0x10] sm:$0xff] %vm3922_vm4, %v3916_v9 }
0x3197   :  { %v3904_v39 = vpop.xlane.xlu0 %3903 }
0x3198   :  { %v3918_v50 = vmul.f32 -0.5, %v3904_v39 }
0x319a   :  { %3927 = vst.msk [vmem:[%s7109_s22 + $0x20] sm:$0xff] %vm3922_vm4, %v3918_v50 }
0x319b   :  { %v3910_v30 = vpop.xlane.xlu0 %3909 }
0x319c   :  { %v3920_v33 = vmul.f32 -0.5, %v3910_v30 }
0x319e   :  { %3929 = vst.msk [vmem:[%s7109_s22 + $0x30] sm:$0xff] %vm3922_vm4, %v3920_v33 }
0x319f   :  { %v4075_v6 = vpop.xlane.xlu0 %4074 }
0x31a0   :  { %v4094_v10 = vmul.f32 -0.5, %v4075_v6 }
0x31a2   :  { %4785 = vst.msk [vmem:[%s7155_s17 + $0x8] sm:$0xff] %vm3922_vm4, %v4094_v10 }
0x31b7   :  { %v3895_v34 = vpop.xlane.xlu1 %3894 }
0x31b8   :  { %v3915_v36 = vmul.f32 -0.5, %v3895_v34 }
0x31ba   :  { %3924 = vst.msk [vmem:[%s7109_s22 + $0x8] sm:$0xff] %vm3922_vm4, %v3915_v36 }
0x31bb   :  { %v3901_v20 = vpop.xlane.xlu1 %3900 }
0x31bc   :  { %v3917_v4 = vmul.f32 -0.5, %v3901_v20 }
0x31be   :  { %3926 = vst.msk [vmem:[%s7109_s22 + $0x18] sm:$0xff] %vm3922_vm4, %v3917_v4 }
0x31bf   :  { %v3907_v54 = vpop.xlane.xlu1 %3906 }
0x31c0   :  { %v3919_v0 = vmul.f32 -0.5, %v3907_v54 }
0x31c2   :  { %3928 = vst.msk [vmem:[%s7109_s22 + $0x28] sm:$0xff] %vm3922_vm4, %v3919_v0 }
0x31c3   :  { %v4078_v19 = vpop.xlane.xlu1 %4077 }
0x31c4   :  { %v4095_v61 = vmul.f32 -0.5, %v4078_v19 }
0x31c6   :  { %4786 = vst.msk [vmem:[%s7155_s17 + $0x10] sm:$0xff] %vm3922_vm4, %v4095_v61 }
0x31d6   :  { %v5365_v11 = vpop.f32.mrb[100].mxu0 }
0x31d7   :  { %v4551_v51 = vadd.f32 %v5365_v11, %v4806_v32  ;;  %v4542_v58 = vpop.f32.mrb[101].mxu0 }
0x31d8   :  { %v4543_v27 = vadd.f32 %v4806_v32, %v4542_v58  ;;  %v5366_v15 = vpop.f32.mrb[102].mxu0 }
0x31d9   :  { %4575 = vst.msk [vmem:[%s7157_s12 + $0x10] sm:$0xff] %vm3922_vm4, %v4551_v51  ;;  %v4554_v29 = vadd.f32 %v5366_v15, %v4806_v32  ;;  %v4545_v17 = vpop.f32.mrb[103].mxu0 }
0x31da   :  { %4573 = vst.msk [vmem:[%s7157_s12] sm:$0xff] %vm3922_vm4, %v4543_v27  ;;  %v4546_v21 = vadd.f32 %v4806_v32, %v4545_v17 }
0x31db   :  { %4576 = vst.msk [vmem:[%s7157_s12 + $0x18] sm:$0xff] %vm3922_vm4, %v4554_v29 }
0x31dc   :  { %4574 = vst.msk [vmem:[%s7157_s12 + $0x8] sm:$0xff] %vm3922_vm4, %v4546_v21 }
0x31de   :  { %v5369_v42 = vpop.f32.mrb[104].mxu0 }
0x31df   :  { %v4567_v59 = vadd.f32 %v5369_v42, %v4806_v32  ;;  %v4558_v55 = vpop.f32.mrb[105].mxu0 }
0x31e0   :  { %v4559_v57 = vadd.f32 %v4806_v32, %v4558_v55  ;;  %v5370_v56 = vpop.f32.mrb[106].mxu0 }
0x31e1   :  { %4579 = vst.msk [vmem:[%s7157_s12 + $0x30] sm:$0xff] %vm3922_vm4, %v4567_v59  ;;  %v4570_v49 = vadd.f32 %v5370_v56, %v4806_v32  ;;  %v4561_v12 = vpop.f32.mrb[107].mxu0 }
0x31e2   :  { %4577 = vst.msk [vmem:[%s7157_s12 + $0x20] sm:$0xff] %vm3922_vm4, %v4559_v57  ;;  %v4562_v48 = vadd.f32 %v4806_v32, %v4561_v12 }
0x31e3   :  { %4580 = vst.msk [vmem:[%s7157_s12 + $0x38] sm:$0xff] %vm3922_vm4, %v4570_v49 }
0x31e4   :  { %4578 = vst.msk [vmem:[%s7157_s12 + $0x28] sm:$0xff] %vm3922_vm4, %v4562_v48 }
0x320a   :  { %v4081_v22 = vpop.xlane.xlu0 %4080 }
0x320b   :  { %v4096_v8 = vmul.f32 -0.5, %v4081_v22 }
0x320d   :  { %4787 = vst.msk [vmem:[%s7155_s17 + $0x18] sm:$0xff] %vm3922_vm4, %v4096_v8 }
0x320e   :  { %v4084_v25 = vpop.xlane.xlu1 %4083 }
0x320f   :  { %v4097_v3 = vmul.f32 -0.5, %v4084_v25 }
0x3211   :  { %4788 = vst.msk [vmem:[%s7155_s17 + $0x20] sm:$0xff] %vm3922_vm4, %v4097_v3 }
0x3212   :  { %v4087_v38 = vpop.xlane.xlu0 %4086  ;;  %v3913_v23 = vpop.xlane.xlu1 %3912 }
0x3213   :  { %v4098_v40 = vmul.f32 -0.5, %v4087_v38  ;;  %v3921_v63 = vmul.f32 -0.5, %v3913_v23 }
0x3215   :  { %4789 = vst.msk [vmem:[%s7155_s17 + $0x28] sm:$0xff] %vm3922_vm4, %v4098_v40  ;;  %3930 = vst.msk [vmem:[%s7109_s22 + $0x38] sm:$0xff] %vm3922_vm4, %v3921_v63 }
0x3216   :  { %v4093_v2 = vpop.xlane.xlu0 %4092  ;;  %v4090_v28 = vpop.xlane.xlu1 %4089 }
0x3217   :  { %v4100_v37 = vmul.f32 -0.5, %v4093_v2  ;;  %v4099_v60 = vmul.f32 -0.5, %v4090_v28 }
0x3219   :  { %4791 = vst.msk [vmem:[%s7155_s17 + $0x38] sm:$0xff] %vm3922_vm4, %v4100_v37  ;;  %4790 = vst.msk [vmem:[%s7155_s17 + $0x30] sm:$0xff] %vm3922_vm4, %v4099_v60 }

</bundles_post_ra>
